<compile_context>
chip_gen: v6e
topology: v6e:2x2x1
jax: 0.10.0
libtpu: 0.0.40
codegen_flags: <defaults>
</compile_context>

<pallas_src>
import math
from functools import partial

import jax
import jax.numpy as jnp
from jax.experimental import pallas as pl
from jax.experimental.pallas import tpu as pltpu

_GELU_DTYPE = jnp.bfloat16          # set to jnp.float32 on v5e (no bf16 VPU/EUP)
_VMEM_LIMIT = 56 * 1024 * 1024      # > v5e's 16 MiB default, < v7x's 64 MiB physical


# ----------------------------------------------------------------------------
# In-kernel helpers (traced inside the Pallas kernel bodies)
# ----------------------------------------------------------------------------
def _layer_norm(z, g, b, eps=1e-6):
    # BERT-pytorch custom LayerNorm: unbiased std, (std + eps) denominator,
    # exact divide (review: no approx reciprocal in LN).
    n = z.shape[-1]
    mean = jnp.mean(z, axis=-1, keepdims=True)
    var = jnp.sum((z - mean) ** 2, axis=-1, keepdims=True) * (1.0 / (n - 1))
    return g * (z - mean) / (jnp.sqrt(var) + eps) + b


def _gelu(x):
    # BERT-pytorch GELU (tanh approximation).
    return 0.5 * x * (1.0 + jnp.tanh(math.sqrt(2.0 / math.pi) * (x + 0.044715 * x ** 3)))


def _attention_residual(x, q, k, v, wo_r, bo, *, n_heads, s_valid):
    """x + Wo(attention(q, k, v)).  x:(TQ,H) f32, q:(TQ,H) bf16, k/v:(S,H) bf16."""
    TQ, H = q.shape
    S = k.shape[0]
    dh = H // n_heads
    scale = 1.0 / math.sqrt(dh)

    qh = jnp.transpose(q.reshape(TQ, n_heads, dh), (1, 0, 2))      # (nh, TQ, dh)
    kh = jnp.transpose(k.reshape(S, n_heads, dh), (1, 0, 2))       # (nh, S,  dh)
    vh = jnp.transpose(v.reshape(S, n_heads, dh), (1, 0, 2))       # (nh, S,  dh)

    sc = jnp.einsum('hqd,hkd->hqk', qh, kh,
                    preferred_element_type=jnp.float32) * scale    # (nh, TQ, S)
    if s_valid < S:                     # static: only emitted when seq was padded
        key_ids = jax.lax.broadcasted_iota(jnp.int32, sc.shape, 2)
        sc = jnp.where(key_ids < s_valid, sc, -1e30)
    # eval-mode attention mask is all ones -> masked_fill is a no-op here.
    sc = sc - jnp.max(sc, axis=-1, keepdims=True)
    p = jnp.exp(sc)
    p = p * pl.reciprocal(jnp.sum(p, axis=-1, keepdims=True), approx=True)

    ctx = jnp.einsum('hqk,hkd->hqd', p.astype(jnp.bfloat16), vh,
                     preferred_element_type=jnp.float32)           # (nh, TQ, dh)
    # Head recombine folded into Wo: per-head (TQ,dh)@(dh,H) batched matmul
    # against wo reshaped (nh, dh, H), summed over heads on the VPU. Avoids the
    # (nh,TQ,dh)->(TQ,H) transpose + relayout copy of the previous version.
    attn = jnp.einsum('hqd,hdn->hqn', ctx.astype(jnp.bfloat16), wo_r,
                      preferred_element_type=jnp.float32)          # (nh, TQ, H)
    attn = jnp.sum(attn, axis=0) + bo
    return x + attn


def _ffn_residual(x, g, b, w1, bf1, w2, bf2):
    """x + W2(gelu(W1(LN(x)))).  x:(T,H) f32; w1/w2 bf16."""
    h = _layer_norm(x, g, b)
    ff = jnp.dot(h.astype(jnp.bfloat16), w1, preferred_element_type=jnp.float32) + bf1
    ff = _gelu(ff.astype(_GELU_DTYPE)).astype(jnp.bfloat16)
    ff = jnp.dot(ff, w2, preferred_element_type=jnp.float32) + bf2
    return x + ff


# ----------------------------------------------------------------------------
# Pallas kernels
# ----------------------------------------------------------------------------
def _fused_layer_kernel(x_ref, g1_ref, b1_ref, wqkv_ref, bqkv_ref, wo_ref, bo_ref,
                        g2_ref, b2_ref, w1_ref, bf1_ref, w2_ref, bf2_ref, o_ref,
                        *, n_heads, s_valid):
    """Whole transformer layer for one batch element; everything stays in VMEM."""
    H = x_ref.shape[-1]
    x = x_ref[0]                                                   # (S, H) f32
    h = _layer_norm(x, g1_ref[0], b1_ref[0])
    qkv = jnp.dot(h.astype(jnp.bfloat16), wqkv_ref[...],
                  preferred_element_type=jnp.float32) + bqkv_ref[0]
    qkv = qkv.astype(jnp.bfloat16)                                 # (S, 3H)
    x = _attention_residual(x, qkv[:, :H], qkv[:, H:2 * H], qkv[:, 2 * H:],
                            wo_ref[...], bo_ref[0],
                            n_heads=n_heads, s_valid=s_valid)
    x = _ffn_residual(x, g2_ref[0], b2_ref[0], w1_ref[...], bf1_ref[0],
                      w2_ref[...], bf2_ref[0])
    o_ref[0] = x.astype(o_ref.dtype)


def _ln_qkv_kernel(x_ref, g_ref, b_ref, wqkv_ref, bqkv_ref, qkv_ref):
    """LN1 + fused QKV projection over a flattened (rows, H) tile."""
    h = _layer_norm(x_ref[...], g_ref[0], b_ref[0])
    qkv = jnp.dot(h.astype(jnp.bfloat16), wqkv_ref[...],
                  preferred_element_type=jnp.float32) + bqkv_ref[0]
    qkv_ref[...] = qkv.astype(qkv_ref.dtype)


def _attn_ffn_kernel(x_ref, qkvq_ref, qkv_ref, wo_ref, bo_ref, g2_ref, b2_ref,
                     w1_ref, bf1_ref, w2_ref, bf2_ref, o_ref, *, n_heads, s_valid):
    """Attention + Wo + residual + LN2 + FFN + residual for one (batch, q-tile)."""
    H = x_ref.shape[-1]
    x = x_ref[0]                                                   # (tq, H) f32
    q = qkvq_ref[0][:, :H]                                         # (tq, H) bf16
    kv = qkv_ref[0]                                                # (S, 3H) bf16
    x = _attention_residual(x, q, kv[:, H:2 * H], kv[:, 2 * H:],
                            wo_ref[...], bo_ref[0],
                            n_heads=n_heads, s_valid=s_valid)
    x = _ffn_residual(x, g2_ref[0], b2_ref[0], w1_ref[...], bf1_ref[0],
                      w2_ref[...], bf2_ref[0])
    o_ref[0] = x.astype(o_ref.dtype)


# ----------------------------------------------------------------------------
# pallas_call wrappers
# ----------------------------------------------------------------------------
def _choose_seq_tile(s_pad):
    for cand in (256, 128, 64, 32, 16):
        if s_pad % cand == 0:
            return cand
    return s_pad


def _choose_row_tile(rows):
    for cand in (256, 128, 64, 32, 16, 8):
        if rows % cand == 0:
            return cand
    return rows


def _bytes(*arrays):
    return sum(int(a.size) * a.dtype.itemsize for a in arrays)


def _resident_spec(a, grid_rank):
    """Grid-invariant weight/bias spec: full block, constant index, SINGLE VMEM
    buffer (no pointless double-buffering of resident weights)."""
    zeros = (0,) * a.ndim
    index_map = (lambda i: zeros) if grid_rank == 1 else (lambda i, j: zeros)
    return pl.BlockSpec(a.shape, index_map,
                        pipeline_mode=pl.Buffered(buffer_count=1))


def _compiler_params(dimension_semantics):
    return pltpu.CompilerParams(dimension_semantics=dimension_semantics,
                                vmem_limit_bytes=_VMEM_LIMIT)


def fused_layer(x, lp, wo_r, *, n_heads, s_valid):
    """One transformer layer in a single pallas_call (grid over batch)."""
    B, S, H = x.shape
    F = lp["w1"].shape[1]
    weights = [lp["g1"], lp["b1"], lp["wqkv"], lp["bqkv"], wo_r, lp["bo"],
               lp["g2"], lp["b2"], lp["w1"], lp["bf1"], lp["w2"], lp["bf2"]]
    cost = pl.CostEstimate(
        flops=2 * B * S * H * (3 * H + H + 2 * F) + 4 * B * S * S * H,
        transcendentals=B * S * (n_heads * S + F + 2),
        bytes_accessed=2 * _bytes(x) + _bytes(*weights),
    )
    return pl.pallas_call(
        partial(_fused_layer_kernel, n_heads=n_heads, s_valid=s_valid),
        out_shape=jax.ShapeDtypeStruct((B, S, H), x.dtype),
        grid=(B,),
        in_specs=[pl.BlockSpec((1, S, H), lambda bi: (bi, 0, 0))]
                 + [_resident_spec(w, 1) for w in weights],
        out_specs=pl.BlockSpec((1, S, H), lambda bi: (bi, 0, 0)),
        compiler_params=_compiler_params(("parallel",)),
        cost_estimate=cost,
    )(x, *weights)


def ln_qkv_rows(x2, g, b, wqkv, bqkv, *, tr):
    """LN1 + QKV over flattened (B*S, H) rows -> one packed (B*S, 3H) bf16 array."""
    R, H = x2.shape
    cost = pl.CostEstimate(
        flops=2 * R * H * 3 * H,
        transcendentals=R,
        bytes_accessed=_bytes(x2, g, b, wqkv, bqkv) + R * 3 * H * 2,
    )
    return pl.pallas_call(
        _ln_qkv_kernel,
        out_shape=jax.ShapeDtypeStruct((R, 3 * H), jnp.bfloat16),
        grid=(R // tr,),
        in_specs=[pl.BlockSpec((tr, H), lambda r: (r, 0)),
                  _resident_spec(g, 1), _resident_spec(b, 1),
                  _resident_spec(wqkv, 1), _resident_spec(bqkv, 1)],
        out_specs=pl.BlockSpec((tr, 3 * H), lambda r: (r, 0)),
        compiler_params=_compiler_params(("parallel",)),
        cost_estimate=cost,
    )(x2, g, b, wqkv, bqkv)


def attn_ffn(x, qkv, lp, wo_r, *, n_heads, s_valid, tq):
    """Attention + Wo + residual + LN2 + FFN + residual, consuming packed qkv."""
    B, S, H = x.shape
    F = lp["w1"].shape[1]
    weights = [wo_r, lp["bo"], lp["g2"], lp["b2"],
               lp["w1"], lp["bf1"], lp["w2"], lp["bf2"]]
    cost = pl.CostEstimate(
        flops=4 * B * S * S * H + 2 * B * S * H * H + 4 * B * S * H * F,
        transcendentals=B * S * (n_heads * S + F + 1),
        bytes_accessed=2 * _bytes(x) + _bytes(qkv, *weights),
    )
    return pl.pallas_call(
        partial(_attn_ffn_kernel, n_heads=n_heads, s_valid=s_valid),
        out_shape=jax.ShapeDtypeStruct((B, S, H), x.dtype),
        grid=(B, S // tq),
        in_specs=[pl.BlockSpec((1, tq, H), lambda bi, qi: (bi, qi, 0)),      # residual
                  pl.BlockSpec((1, tq, 3 * H), lambda bi, qi: (bi, qi, 0)),  # q rows (packed)
                  pl.BlockSpec((1, S, 3 * H), lambda bi, qi: (bi, 0, 0))]    # full-S k/v (packed)
                 + [_resident_spec(w, 2) for w in weights],
        out_specs=pl.BlockSpec((1, tq, H), lambda bi, qi: (bi, qi, 0)),
        compiler_params=_compiler_params(("parallel", "parallel")),
        cost_estimate=cost,
    )(x, qkv, qkv, *weights)


# ----------------------------------------------------------------------------
# Parameter construction (deterministic, synthetic)
# ----------------------------------------------------------------------------
def init_params(key, *, input_dim, max_len, hidden, n_layers, ff_hidden):
    assert input_dim == hidden, "transformer blocks operate on `hidden`; input_dim must equal hidden"
    ks = jax.random.split(key, 2 + n_layers)
    params = {
        "clsToken": 0.02 * jax.random.normal(ks[0], (1, 1, input_dim), jnp.float32),
        "pe": 0.02 * jax.random.normal(ks[1], (1, max_len + 1, input_dim), jnp.float32),
        "layers": [],
    }
    for li in range(n_layers):
        lk = jax.random.split(ks[2 + li], 6)
        wq = 0.02 * jax.random.normal(lk[0], (hidden, hidden), jnp.float32)
        wk = 0.02 * jax.random.normal(lk[1], (hidden, hidden), jnp.float32)
        wv = 0.02 * jax.random.normal(lk[2], (hidden, hidden), jnp.float32)
        lp = {
            "g1": jnp.ones((1, hidden), jnp.float32),
            "b1": jnp.zeros((1, hidden), jnp.float32),
            # fused QKV weight (H, 3H), stored bf16 (halves weight DMA, bf16 MXU)
            "wqkv": jnp.concatenate([wq, wk, wv], axis=1).astype(jnp.bfloat16),
            "bqkv": jnp.zeros((1, 3 * hidden), jnp.float32),
            "wo": (0.02 * jax.random.normal(lk[3], (hidden, hidden), jnp.float32)).astype(jnp.bfloat16),
            "bo": jnp.zeros((1, hidden), jnp.float32),
            "g2": jnp.ones((1, hidden), jnp.float32),
            "b2": jnp.zeros((1, hidden), jnp.float32),
            "w1": (0.02 * jax.random.normal(lk[4], (hidden, ff_hidden), jnp.float32)).astype(jnp.bfloat16),
            "bf1": jnp.zeros((1, ff_hidden), jnp.float32),
            "w2": (0.02 * jax.random.normal(lk[5], (ff_hidden, hidden), jnp.float32)).astype(jnp.bfloat16),
            "bf2": jnp.zeros((1, hidden), jnp.float32),
        }
        params["layers"].append(lp)
    return params


# ----------------------------------------------------------------------------
# BERT forward (eval mode)
# ----------------------------------------------------------------------------
def bert_forward(params, input_vectors, *, n_heads, fuse_max_seq=256):
    # TODO(synk): training-mode Bernoulli token masking / dropout not implemented
    # (eval semantics only: mask = all ones, dropout = identity, sample = None).
    B, L, H = input_vectors.shape
    cls = jnp.broadcast_to(params["clsToken"], (B, 1, H))            # cls token prepend
    x = jnp.concatenate([cls, input_vectors], axis=1)                # (B, S, H), S = L + 1
    x = x + params["pe"][:, :L + 1, :]                               # BERTEmbedding add (plain XLA)

    S = L + 1
    S_pad = -(-S // 16) * 16                                         # sublane/bf16 alignment
    if S_pad != S:
        x = jnp.pad(x, ((0, 0), (0, S_pad - S), (0, 0)))

    use_fused = S_pad <= fuse_max_seq
    tq = _choose_seq_tile(S_pad)
    tr = _choose_row_tile(B * S_pad)

    for lp in params["layers"]:
        wo_r = lp["wo"].reshape(n_heads, H // n_heads, H)            # fold head-recombine into Wo
        if use_fused:
            # Whole layer in one pallas_call; q/k/v never leave VMEM.
            x = fused_layer(x, lp, wo_r, n_heads=n_heads, s_valid=S)
        else:
            # Two calls per layer: flattened-row LN+QKV (packed output), then
            # fused attention + FFN.  Padded rows are computed but discarded.
            qkv = ln_qkv_rows(x.reshape(B * S_pad, H), lp["g1"], lp["b1"],
                              lp["wqkv"], lp["bqkv"], tr=tr).reshape(B, S_pad, 3 * H)
            x = attn_ffn(x, qkv, lp, wo_r, n_heads=n_heads, s_valid=S, tq=tq)

    if S_pad != S:
        x = x[:, :S, :]
    return x, None                                                   # (x, sample=None) in eval


if __name__ == "__main__":
    batch, hidden, n_layers, n_heads = 2, 128, 2, 4                  # dh = 32 (lane-aligned)
    ff_hidden = hidden * 4
    key = jax.random.PRNGKey(0)
    pkey, xkey = jax.random.split(key)

    # --- test 1: toy shape (max_len=15 -> S=16), fully fused per-layer path ---
    max_len = 15
    params = init_params(pkey, input_dim=hidden, max_len=max_len, hidden=hidden,
                         n_layers=n_layers, ff_hidden=ff_hidden)
    x1 = jax.random.normal(xkey, (batch, max_len, hidden), jnp.float32)
    out1, sample1 = jax.jit(partial(bert_forward, n_heads=n_heads))(params, x1)
    out1 = jax.block_until_ready(out1)
    assert out1.shape == (batch, max_len + 1, hidden)
    assert sample1 is None
    assert bool(jnp.all(jnp.isfinite(out1)))

    # --- test 2: padded sequence (max_len=13 -> S=14 -> S_pad=16), both paths --
    max_len2 = 13
    params2 = init_params(pkey, input_dim=hidden, max_len=max_len2, hidden=hidden,
                          n_layers=n_layers, ff_hidden=ff_hidden)
    x2 = jax.random.normal(jax.random.fold_in(xkey, 1),
                           (batch, max_len2, hidden), jnp.float32)
    out2a, _ = jax.jit(partial(bert_forward, n_heads=n_heads))(params2, x2)
    out2b, _ = jax.jit(partial(bert_forward, n_heads=n_heads, fuse_max_seq=0))(params2, x2)
    out2a, out2b = jax.block_until_ready((out2a, out2b))
    assert out2a.shape == (batch, max_len2 + 1, hidden)
    assert bool(jnp.all(jnp.isfinite(out2a))) and bool(jnp.all(jnp.isfinite(out2b)))
    assert bool(jnp.allclose(out2a, out2b, rtol=2e-3, atol=2e-3))

    print("KERNEL_OK")
</pallas_src>

<mosaic_0001>
module attributes {stable_mosaic.version = 11 : i64} {
  func.func @_fused_layer_kernel(%arg0: i32, %arg1: memref<1x16x128xf32, #tpu.memory_space<vmem>>, %arg2: memref<1x128xf32, #tpu.memory_space<vmem>>, %arg3: memref<1x128xf32, #tpu.memory_space<vmem>>, %arg4: memref<128x384xbf16, #tpu.memory_space<vmem>>, %arg5: memref<1x384xf32, #tpu.memory_space<vmem>>, %arg6: memref<4x32x128xbf16, #tpu.memory_space<vmem>>, %arg7: memref<1x128xf32, #tpu.memory_space<vmem>>, %arg8: memref<1x128xf32, #tpu.memory_space<vmem>>, %arg9: memref<1x128xf32, #tpu.memory_space<vmem>>, %arg10: memref<128x512xbf16, #tpu.memory_space<vmem>>, %arg11: memref<1x512xf32, #tpu.memory_space<vmem>>, %arg12: memref<512x128xbf16, #tpu.memory_space<vmem>>, %arg13: memref<1x128xf32, #tpu.memory_space<vmem>>, %arg14: memref<1x16x128xf32, #tpu.memory_space<vmem>>) attributes {dimension_semantics = [#tpu.dimension_semantics<parallel>], iteration_bounds = array<i64: 2>, scalar_prefetch = 0 : i64, scratch_operands = 0 : i64, tpu.core_type = #tpu.core_type<tc>, window_params = [{transform_indices = @transform_0, window_bounds = array<i64: 1, 16, 128>}, {pipeline_mode = #tpu.pipeline_mode<synchronous>, transform_indices = @transform_1, window_bounds = array<i64: 1, 128>}, {pipeline_mode = #tpu.pipeline_mode<synchronous>, transform_indices = @transform_2, window_bounds = array<i64: 1, 128>}, {pipeline_mode = #tpu.pipeline_mode<synchronous>, transform_indices = @transform_3, window_bounds = array<i64: 128, 384>}, {pipeline_mode = #tpu.pipeline_mode<synchronous>, transform_indices = @transform_4, window_bounds = array<i64: 1, 384>}, {pipeline_mode = #tpu.pipeline_mode<synchronous>, transform_indices = @transform_5, window_bounds = array<i64: 4, 32, 128>}, {pipeline_mode = #tpu.pipeline_mode<synchronous>, transform_indices = @transform_6, window_bounds = array<i64: 1, 128>}, {pipeline_mode = #tpu.pipeline_mode<synchronous>, transform_indices = @transform_7, window_bounds = array<i64: 1, 128>}, {pipeline_mode = #tpu.pipeline_mode<synchronous>, transform_indices = @transform_8, window_bounds = array<i64: 1, 128>}, {pipeline_mode = #tpu.pipeline_mode<synchronous>, transform_indices = @transform_9, window_bounds = array<i64: 128, 512>}, {pipeline_mode = #tpu.pipeline_mode<synchronous>, transform_indices = @transform_10, window_bounds = array<i64: 1, 512>}, {pipeline_mode = #tpu.pipeline_mode<synchronous>, transform_indices = @transform_11, window_bounds = array<i64: 512, 128>}, {pipeline_mode = #tpu.pipeline_mode<synchronous>, transform_indices = @transform_12, window_bounds = array<i64: 1, 128>}, {transform_indices = @transform_13, window_bounds = array<i64: 1, 16, 128>}]} {
    %c0 = arith.constant 0 : index
    %c0_0 = arith.constant 0 : index
    %c0_1 = arith.constant 0 : index
    %0 = vector.load %arg1[%c0, %c0_0, %c0_1] : memref<1x16x128xf32, #tpu.memory_space<vmem>>, vector<1x16x128xf32>
    %1 = vector.shape_cast %0 : vector<1x16x128xf32> to vector<16x128xf32>
    %c0_2 = arith.constant 0 : index
    %c0_3 = arith.constant 0 : index
    %2 = vector.load %arg2[%c0_2, %c0_3] : memref<1x128xf32, #tpu.memory_space<vmem>>, vector<1x128xf32>
    %3 = vector.shape_cast %2 : vector<1x128xf32> to vector<128xf32>
    %c0_4 = arith.constant 0 : index
    %c0_5 = arith.constant 0 : index
    %4 = vector.load %arg3[%c0_4, %c0_5] : memref<1x128xf32, #tpu.memory_space<vmem>>, vector<1x128xf32>
    %5 = vector.shape_cast %4 : vector<1x128xf32> to vector<128xf32>
    %cst = arith.constant dense<0.000000e+00> : vector<16xf32>
    %6 = vector.multi_reduction <add>, %1, %cst [1] : vector<16x128xf32> to vector<16xf32>
    %7 = vector.shape_cast %6 : vector<16xf32> to vector<16x1xf32>
    %cst_6 = arith.constant 1.280000e+02 : f32
    %8 = vector.broadcast %cst_6 : f32 to vector<16x1xf32>
    %9 = arith.divf %7, %8 : vector<16x1xf32>
    %10 = vector.broadcast %9 : vector<16x1xf32> to vector<16x128xf32>
    %11 = arith.subf %1, %10 : vector<16x128xf32>
    %12 = arith.mulf %11, %11 : vector<16x128xf32>
    %cst_7 = arith.constant dense<0.000000e+00> : vector<16xf32>
    %13 = vector.multi_reduction <add>, %12, %cst_7 [1] : vector<16x128xf32> to vector<16xf32>
    %14 = vector.shape_cast %13 : vector<16xf32> to vector<16x1xf32>
    %cst_8 = arith.constant 0.00787401571 : f32
    %15 = vector.broadcast %cst_8 : f32 to vector<16x1xf32>
    %16 = arith.mulf %14, %15 : vector<16x1xf32>
    %17 = vector.broadcast %9 : vector<16x1xf32> to vector<16x128xf32>
    %18 = arith.subf %1, %17 : vector<16x128xf32>
    %19 = vector.shape_cast %3 : vector<128xf32> to vector<1x128xf32>
    %20 = vector.broadcast %19 : vector<1x128xf32> to vector<16x128xf32>
    %21 = arith.mulf %20, %18 : vector<16x128xf32>
    %22 = math.sqrt %16 : vector<16x1xf32>
    %cst_9 = arith.constant 9.99999997E-7 : f32
    %23 = vector.broadcast %cst_9 : f32 to vector<16x1xf32>
    %24 = arith.addf %22, %23 : vector<16x1xf32>
    %25 = vector.broadcast %24 : vector<16x1xf32> to vector<16x128xf32>
    %26 = arith.divf %21, %25 : vector<16x128xf32>
    %27 = vector.shape_cast %5 : vector<128xf32> to vector<1x128xf32>
    %28 = vector.broadcast %27 : vector<1x128xf32> to vector<16x128xf32>
    %29 = arith.addf %26, %28 : vector<16x128xf32>
    %30 = arith.truncf %29 : vector<16x128xf32> to vector<16x128xbf16>
    %c0_10 = arith.constant 0 : index
    %c0_11 = arith.constant 0 : index
    %31 = vector.load %arg4[%c0_10, %c0_11] : memref<128x384xbf16, #tpu.memory_space<vmem>>, vector<128x384xbf16>
    %cst_12 = arith.constant dense<0.000000e+00> : vector<16x384xf32>
    %32 = tpu.matmul %30, %31, %cst_12 {dimension_numbers = #tpu.dot_dimension_numbers<[1], [0], [0], [1], [0, 0, 1, 1], [], []>} : vector<16x128xbf16>, vector<128x384xbf16>, vector<16x384xf32> -> vector<16x384xf32>
    %c0_13 = arith.constant 0 : index
    %c0_14 = arith.constant 0 : index
    %33 = vector.load %arg5[%c0_13, %c0_14] : memref<1x384xf32, #tpu.memory_space<vmem>>, vector<1x384xf32>
    %34 = vector.shape_cast %33 : vector<1x384xf32> to vector<384xf32>
    %35 = vector.shape_cast %34 : vector<384xf32> to vector<1x384xf32>
    %36 = vector.broadcast %35 : vector<1x384xf32> to vector<16x384xf32>
    %37 = arith.addf %32, %36 : vector<16x384xf32>
    %38 = arith.truncf %37 : vector<16x384xf32> to vector<16x384xbf16>
    %39 = vector.extract_strided_slice %38 {offsets = [0, 0], sizes = [16, 128], strides = [1, 1]} : vector<16x384xbf16> to vector<16x128xbf16>
    %40 = vector.extract_strided_slice %38 {offsets = [0, 128], sizes = [16, 128], strides = [1, 1]} : vector<16x384xbf16> to vector<16x128xbf16>
    %41 = vector.extract_strided_slice %38 {offsets = [0, 256], sizes = [16, 128], strides = [1, 1]} : vector<16x384xbf16> to vector<16x128xbf16>
    %c0_15 = arith.constant 0 : index
    %c0_16 = arith.constant 0 : index
    %c0_17 = arith.constant 0 : index
    %42 = vector.load %arg6[%c0_15, %c0_16, %c0_17] : memref<4x32x128xbf16, #tpu.memory_space<vmem>>, vector<4x32x128xbf16>
    %c0_18 = arith.constant 0 : index
    %c0_19 = arith.constant 0 : index
    %43 = vector.load %arg7[%c0_18, %c0_19] : memref<1x128xf32, #tpu.memory_space<vmem>>, vector<1x128xf32>
    %44 = vector.shape_cast %43 : vector<1x128xf32> to vector<128xf32>
    %45 = vector.shape_cast %39 : vector<16x128xbf16> to vector<16x4x32xbf16>
    %46 = tpu.transpose %45, [1, 0, 2] : vector<16x4x32xbf16> -> vector<4x16x32xbf16>
    %47 = vector.shape_cast %40 : vector<16x128xbf16> to vector<16x4x32xbf16>
    %48 = tpu.transpose %47, [1, 0, 2] : vector<16x4x32xbf16> -> vector<4x16x32xbf16>
    %49 = vector.shape_cast %41 : vector<16x128xbf16> to vector<16x4x32xbf16>
    %50 = tpu.transpose %49, [1, 0, 2] : vector<16x4x32xbf16> -> vector<4x16x32xbf16>
    "tpu.trace_start"() <{level = 10 : i32, message = "hqd,hkd->hqk"}> : () -> ()
    %cst_20 = arith.constant dense<0.000000e+00> : vector<4x16x16xf32>
    %51 = tpu.matmul %46, %48, %cst_20 {dimension_numbers = #tpu.dot_dimension_numbers<[2], [2], [1], [1], [0, 0, 0, 1, 1, 1], [0], [0]>} : vector<4x16x32xbf16>, vector<4x16x32xbf16>, vector<4x16x16xf32> -> vector<4x16x16xf32>
    "tpu.trace_stop"() : () -> ()
    %cst_21 = arith.constant 0.176776692 : f32
    %52 = vector.broadcast %cst_21 : f32 to vector<4x16x16xf32>
    %53 = arith.mulf %51, %52 : vector<4x16x16xf32>
    %cst_22 = arith.constant dense<0xFF800000> : vector<4x16xf32>
    %54 = vector.multi_reduction <maximumf>, %53, %cst_22 [2] : vector<4x16x16xf32> to vector<4x16xf32>
    %55 = vector.shape_cast %54 : vector<4x16xf32> to vector<4x16x1xf32>
    %56 = vector.broadcast %55 : vector<4x16x1xf32> to vector<4x16x16xf32>
    %57 = arith.subf %53, %56 : vector<4x16x16xf32>
    %58 = math.exp %57 : vector<4x16x16xf32>
    %cst_23 = arith.constant dense<0.000000e+00> : vector<4x16xf32>
    %59 = vector.multi_reduction <add>, %58, %cst_23 [2] : vector<4x16x16xf32> to vector<4x16xf32>
    %60 = vector.shape_cast %59 : vector<4x16xf32> to vector<4x16x1xf32>
    %61 = tpu.reciprocal %60 {approx = true} : vector<4x16x1xf32> -> vector<4x16x1xf32>
    %62 = vector.broadcast %61 : vector<4x16x1xf32> to vector<4x16x16xf32>
    %63 = arith.mulf %58, %62 : vector<4x16x16xf32>
    %64 = arith.truncf %63 : vector<4x16x16xf32> to vector<4x16x16xbf16>
    "tpu.trace_start"() <{level = 10 : i32, message = "hqk,hkd->hqd"}> : () -> ()
    %cst_24 = arith.constant dense<0.000000e+00> : vector<4x16x32xf32>
    %65 = tpu.matmul %64, %50, %cst_24 {dimension_numbers = #tpu.dot_dimension_numbers<[2], [1], [1], [2], [0, 0, 0, 1, 1, 2], [0], [0]>} : vector<4x16x16xbf16>, vector<4x16x32xbf16>, vector<4x16x32xf32> -> vector<4x16x32xf32>
    "tpu.trace_stop"() : () -> ()
    %66 = arith.truncf %65 : vector<4x16x32xf32> to vector<4x16x32xbf16>
    "tpu.trace_start"() <{level = 10 : i32, message = "hqd,hdn->hqn"}> : () -> ()
    %cst_25 = arith.constant dense<0.000000e+00> : vector<4x16x128xf32>
    %67 = tpu.matmul %66, %42, %cst_25 {dimension_numbers = #tpu.dot_dimension_numbers<[2], [1], [1], [2], [0, 0, 0, 1, 1, 2], [0], [0]>} : vector<4x16x32xbf16>, vector<4x32x128xbf16>, vector<4x16x128xf32> -> vector<4x16x128xf32>
    "tpu.trace_stop"() : () -> ()
    %cst_26 = arith.constant dense<0.000000e+00> : vector<16x128xf32>
    %68 = vector.multi_reduction <add>, %67, %cst_26 [0] : vector<4x16x128xf32> to vector<16x128xf32>
    %69 = vector.shape_cast %44 : vector<128xf32> to vector<1x128xf32>
    %70 = vector.broadcast %69 : vector<1x128xf32> to vector<16x128xf32>
    %71 = arith.addf %68, %70 : vector<16x128xf32>
    %72 = arith.addf %1, %71 : vector<16x128xf32>
    %c0_27 = arith.constant 0 : index
    %c0_28 = arith.constant 0 : index
    %73 = vector.load %arg8[%c0_27, %c0_28] : memref<1x128xf32, #tpu.memory_space<vmem>>, vector<1x128xf32>
    %74 = vector.shape_cast %73 : vector<1x128xf32> to vector<128xf32>
    %c0_29 = arith.constant 0 : index
    %c0_30 = arith.constant 0 : index
    %75 = vector.load %arg9[%c0_29, %c0_30] : memref<1x128xf32, #tpu.memory_space<vmem>>, vector<1x128xf32>
    %76 = vector.shape_cast %75 : vector<1x128xf32> to vector<128xf32>
    %c0_31 = arith.constant 0 : index
    %c0_32 = arith.constant 0 : index
    %77 = vector.load %arg10[%c0_31, %c0_32] : memref<128x512xbf16, #tpu.memory_space<vmem>>, vector<128x512xbf16>
    %c0_33 = arith.constant 0 : index
    %c0_34 = arith.constant 0 : index
    %78 = vector.load %arg11[%c0_33, %c0_34] : memref<1x512xf32, #tpu.memory_space<vmem>>, vector<1x512xf32>
    %79 = vector.shape_cast %78 : vector<1x512xf32> to vector<512xf32>
    %c0_35 = arith.constant 0 : index
    %c0_36 = arith.constant 0 : index
    %80 = vector.load %arg12[%c0_35, %c0_36] : memref<512x128xbf16, #tpu.memory_space<vmem>>, vector<512x128xbf16>
    %c0_37 = arith.constant 0 : index
    %c0_38 = arith.constant 0 : index
    %81 = vector.load %arg13[%c0_37, %c0_38] : memref<1x128xf32, #tpu.memory_space<vmem>>, vector<1x128xf32>
    %82 = vector.shape_cast %81 : vector<1x128xf32> to vector<128xf32>
    %cst_39 = arith.constant dense<0.000000e+00> : vector<16xf32>
    %83 = vector.multi_reduction <add>, %72, %cst_39 [1] : vector<16x128xf32> to vector<16xf32>
    %84 = vector.shape_cast %83 : vector<16xf32> to vector<16x1xf32>
    %cst_40 = arith.constant 1.280000e+02 : f32
    %85 = vector.broadcast %cst_40 : f32 to vector<16x1xf32>
    %86 = arith.divf %84, %85 : vector<16x1xf32>
    %87 = vector.broadcast %86 : vector<16x1xf32> to vector<16x128xf32>
    %88 = arith.subf %72, %87 : vector<16x128xf32>
    %89 = arith.mulf %88, %88 : vector<16x128xf32>
    %cst_41 = arith.constant dense<0.000000e+00> : vector<16xf32>
    %90 = vector.multi_reduction <add>, %89, %cst_41 [1] : vector<16x128xf32> to vector<16xf32>
    %91 = vector.shape_cast %90 : vector<16xf32> to vector<16x1xf32>
    %cst_42 = arith.constant 0.00787401571 : f32
    %92 = vector.broadcast %cst_42 : f32 to vector<16x1xf32>
    %93 = arith.mulf %91, %92 : vector<16x1xf32>
    %94 = vector.broadcast %86 : vector<16x1xf32> to vector<16x128xf32>
    %95 = arith.subf %72, %94 : vector<16x128xf32>
    %96 = vector.shape_cast %74 : vector<128xf32> to vector<1x128xf32>
    %97 = vector.broadcast %96 : vector<1x128xf32> to vector<16x128xf32>
    %98 = arith.mulf %97, %95 : vector<16x128xf32>
    %99 = math.sqrt %93 : vector<16x1xf32>
    %cst_43 = arith.constant 9.99999997E-7 : f32
    %100 = vector.broadcast %cst_43 : f32 to vector<16x1xf32>
    %101 = arith.addf %99, %100 : vector<16x1xf32>
    %102 = vector.broadcast %101 : vector<16x1xf32> to vector<16x128xf32>
    %103 = arith.divf %98, %102 : vector<16x128xf32>
    %104 = vector.shape_cast %76 : vector<128xf32> to vector<1x128xf32>
    %105 = vector.broadcast %104 : vector<1x128xf32> to vector<16x128xf32>
    %106 = arith.addf %103, %105 : vector<16x128xf32>
    %107 = arith.truncf %106 : vector<16x128xf32> to vector<16x128xbf16>
    %cst_44 = arith.constant dense<0.000000e+00> : vector<16x512xf32>
    %108 = tpu.matmul %107, %77, %cst_44 {dimension_numbers = #tpu.dot_dimension_numbers<[1], [0], [0], [1], [0, 0, 1, 1], [], []>} : vector<16x128xbf16>, vector<128x512xbf16>, vector<16x512xf32> -> vector<16x512xf32>
    %109 = vector.shape_cast %79 : vector<512xf32> to vector<1x512xf32>
    %110 = vector.broadcast %109 : vector<1x512xf32> to vector<16x512xf32>
    %111 = arith.addf %108, %110 : vector<16x512xf32>
    %112 = arith.truncf %111 : vector<16x512xf32> to vector<16x512xbf16>
    %cst_45 = arith.constant 5.000000e-01 : bf16
    %113 = vector.broadcast %cst_45 : bf16 to vector<16x512xbf16>
    %114 = arith.mulf %113, %112 : vector<16x512xbf16>
    %115 = arith.mulf %112, %112 : vector<16x512xbf16>
    %116 = arith.mulf %112, %115 : vector<16x512xbf16>
    %cst_46 = arith.constant 4.467770e-02 : bf16
    %117 = vector.broadcast %cst_46 : bf16 to vector<16x512xbf16>
    %118 = arith.mulf %117, %116 : vector<16x512xbf16>
    %119 = arith.addf %112, %118 : vector<16x512xbf16>
    %cst_47 = arith.constant 7.968750e-01 : bf16
    %120 = vector.broadcast %cst_47 : bf16 to vector<16x512xbf16>
    %121 = arith.mulf %120, %119 : vector<16x512xbf16>
    %122 = math.tanh %121 : vector<16x512xbf16>
    %cst_48 = arith.constant 1.000000e+00 : bf16
    %123 = vector.broadcast %cst_48 : bf16 to vector<16x512xbf16>
    %124 = arith.addf %123, %122 : vector<16x512xbf16>
    %125 = arith.mulf %114, %124 : vector<16x512xbf16>
    %cst_49 = arith.constant dense<0.000000e+00> : vector<16x128xf32>
    %126 = tpu.matmul %125, %80, %cst_49 {dimension_numbers = #tpu.dot_dimension_numbers<[1], [0], [0], [1], [0, 0, 1, 1], [], []>} : vector<16x512xbf16>, vector<512x128xbf16>, vector<16x128xf32> -> vector<16x128xf32>
    %127 = vector.shape_cast %82 : vector<128xf32> to vector<1x128xf32>
    %128 = vector.broadcast %127 : vector<1x128xf32> to vector<16x128xf32>
    %129 = arith.addf %126, %128 : vector<16x128xf32>
    %130 = arith.addf %72, %129 : vector<16x128xf32>
    %c0_50 = arith.constant 0 : index
    %c0_51 = arith.constant 0 : index
    %c0_52 = arith.constant 0 : index
    %131 = vector.load %arg14[%c0_50, %c0_51, %c0_52] : memref<1x16x128xf32, #tpu.memory_space<vmem>>, vector<1x16x128xf32>
    %132 = vector.shape_cast %131 : vector<1x16x128xf32> to vector<16x128xf32>
    %133 = vector.shape_cast %130 : vector<16x128xf32> to vector<1x16x128xf32>
    tpu.vector_store %arg14[%c0_50, %c0_51, %c0_52], %133 {strides = array<i32>} : memref<1x16x128xf32, #tpu.memory_space<vmem>>, vector<1x16x128xf32>,
    return
  }
  func.func @transform_0(%arg0: i32) -> (i32, i32, i32) {
    %c0_i32 = arith.constant 0 : i32
    %c0_i32_0 = arith.constant 0 : i32
    %c0_i32_1 = arith.constant 0 : i32
    return %arg0, %c0_i32, %c0_i32_0 : i32, i32, i32
  }
  func.func @transform_1(%arg0: i32) -> (i32, i32) {
    %c0_i32 = arith.constant 0 : i32
    %c0_i32_0 = arith.constant 0 : i32
    %c0_i32_1 = arith.constant 0 : i32
    return %c0_i32, %c0_i32_0 : i32, i32
  }
  func.func @transform_2(%arg0: i32) -> (i32, i32) {
    %c0_i32 = arith.constant 0 : i32
    %c0_i32_0 = arith.constant 0 : i32
    %c0_i32_1 = arith.constant 0 : i32
    return %c0_i32, %c0_i32_0 : i32, i32
  }
  func.func @transform_3(%arg0: i32) -> (i32, i32) {
    %c0_i32 = arith.constant 0 : i32
    %c0_i32_0 = arith.constant 0 : i32
    %c0_i32_1 = arith.constant 0 : i32
    return %c0_i32, %c0_i32_0 : i32, i32
  }
  func.func @transform_4(%arg0: i32) -> (i32, i32) {
    %c0_i32 = arith.constant 0 : i32
    %c0_i32_0 = arith.constant 0 : i32
    %c0_i32_1 = arith.constant 0 : i32
    return %c0_i32, %c0_i32_0 : i32, i32
  }
  func.func @transform_5(%arg0: i32) -> (i32, i32, i32) {
    %c0_i32 = arith.constant 0 : i32
    %c0_i32_0 = arith.constant 0 : i32
    %c0_i32_1 = arith.constant 0 : i32
    %c0_i32_2 = arith.constant 0 : i32
    return %c0_i32, %c0_i32_0, %c0_i32_1 : i32, i32, i32
  }
  func.func @transform_6(%arg0: i32) -> (i32, i32) {
    %c0_i32 = arith.constant 0 : i32
    %c0_i32_0 = arith.constant 0 : i32
    %c0_i32_1 = arith.constant 0 : i32
    return %c0_i32, %c0_i32_0 : i32, i32
  }
  func.func @transform_7(%arg0: i32) -> (i32, i32) {
    %c0_i32 = arith.constant 0 : i32
    %c0_i32_0 = arith.constant 0 : i32
    %c0_i32_1 = arith.constant 0 : i32
    return %c0_i32, %c0_i32_0 : i32, i32
  }
  func.func @transform_8(%arg0: i32) -> (i32, i32) {
    %c0_i32 = arith.constant 0 : i32
    %c0_i32_0 = arith.constant 0 : i32
    %c0_i32_1 = arith.constant 0 : i32
    return %c0_i32, %c0_i32_0 : i32, i32
  }
  func.func @transform_9(%arg0: i32) -> (i32, i32) {
    %c0_i32 = arith.constant 0 : i32
    %c0_i32_0 = arith.constant 0 : i32
    %c0_i32_1 = arith.constant 0 : i32
    return %c0_i32, %c0_i32_0 : i32, i32
  }
  func.func @transform_10(%arg0: i32) -> (i32, i32) {
    %c0_i32 = arith.constant 0 : i32
    %c0_i32_0 = arith.constant 0 : i32
    %c0_i32_1 = arith.constant 0 : i32
    return %c0_i32, %c0_i32_0 : i32, i32
  }
  func.func @transform_11(%arg0: i32) -> (i32, i32) {
    %c0_i32 = arith.constant 0 : i32
    %c0_i32_0 = arith.constant 0 : i32
    %c0_i32_1 = arith.constant 0 : i32
    return %c0_i32, %c0_i32_0 : i32, i32
  }
  func.func @transform_12(%arg0: i32) -> (i32, i32) {
    %c0_i32 = arith.constant 0 : i32
    %c0_i32_0 = arith.constant 0 : i32
    %c0_i32_1 = arith.constant 0 : i32
    return %c0_i32, %c0_i32_0 : i32, i32
  }
  func.func @transform_13(%arg0: i32) -> (i32, i32, i32) {
    %c0_i32 = arith.constant 0 : i32
    %c0_i32_0 = arith.constant 0 : i32
    %c0_i32_1 = arith.constant 0 : i32
    return %arg0, %c0_i32, %c0_i32_0 : i32, i32, i32
  }
}

module attributes {stable_mosaic.version = 11 : i64} {
  func.func @_fused_layer_kernel(%arg0: i32, %arg1: memref<1x16x128xf32, #tpu.memory_space<vmem>>, %arg2: memref<1x128xf32, #tpu.memory_space<vmem>>, %arg3: memref<1x128xf32, #tpu.memory_space<vmem>>, %arg4: memref<128x384xbf16, #tpu.memory_space<vmem>>, %arg5: memref<1x384xf32, #tpu.memory_space<vmem>>, %arg6: memref<4x32x128xbf16, #tpu.memory_space<vmem>>, %arg7: memref<1x128xf32, #tpu.memory_space<vmem>>, %arg8: memref<1x128xf32, #tpu.memory_space<vmem>>, %arg9: memref<1x128xf32, #tpu.memory_space<vmem>>, %arg10: memref<128x512xbf16, #tpu.memory_space<vmem>>, %arg11: memref<1x512xf32, #tpu.memory_space<vmem>>, %arg12: memref<512x128xbf16, #tpu.memory_space<vmem>>, %arg13: memref<1x128xf32, #tpu.memory_space<vmem>>, %arg14: memref<1x16x128xf32, #tpu.memory_space<vmem>>) attributes {dimension_semantics = [#tpu.dimension_semantics<parallel>], iteration_bounds = array<i64: 2>, scalar_prefetch = 0 : i64, scratch_operands = 0 : i64, tpu.core_type = #tpu.core_type<tc>, window_params = [{transform_indices = @transform_0, window_bounds = array<i64: 1, 16, 128>}, {pipeline_mode = #tpu.pipeline_mode<synchronous>, transform_indices = @transform_1, window_bounds = array<i64: 1, 128>}, {pipeline_mode = #tpu.pipeline_mode<synchronous>, transform_indices = @transform_2, window_bounds = array<i64: 1, 128>}, {pipeline_mode = #tpu.pipeline_mode<synchronous>, transform_indices = @transform_3, window_bounds = array<i64: 128, 384>}, {pipeline_mode = #tpu.pipeline_mode<synchronous>, transform_indices = @transform_4, window_bounds = array<i64: 1, 384>}, {pipeline_mode = #tpu.pipeline_mode<synchronous>, transform_indices = @transform_5, window_bounds = array<i64: 4, 32, 128>}, {pipeline_mode = #tpu.pipeline_mode<synchronous>, transform_indices = @transform_6, window_bounds = array<i64: 1, 128>}, {pipeline_mode = #tpu.pipeline_mode<synchronous>, transform_indices = @transform_7, window_bounds = array<i64: 1, 128>}, {pipeline_mode = #tpu.pipeline_mode<synchronous>, transform_indices = @transform_8, window_bounds = array<i64: 1, 128>}, {pipeline_mode = #tpu.pipeline_mode<synchronous>, transform_indices = @transform_9, window_bounds = array<i64: 128, 512>}, {pipeline_mode = #tpu.pipeline_mode<synchronous>, transform_indices = @transform_10, window_bounds = array<i64: 1, 512>}, {pipeline_mode = #tpu.pipeline_mode<synchronous>, transform_indices = @transform_11, window_bounds = array<i64: 512, 128>}, {pipeline_mode = #tpu.pipeline_mode<synchronous>, transform_indices = @transform_12, window_bounds = array<i64: 1, 128>}, {transform_indices = @transform_13, window_bounds = array<i64: 1, 16, 128>}]} {
    %c0 = arith.constant 0 : index
    %c0_0 = arith.constant 0 : index
    %c0_1 = arith.constant 0 : index
    %0 = vector.load %arg1[%c0, %c0_0, %c0_1] : memref<1x16x128xf32, #tpu.memory_space<vmem>>, vector<1x16x128xf32>
    %1 = vector.shape_cast %0 : vector<1x16x128xf32> to vector<16x128xf32>
    %c0_2 = arith.constant 0 : index
    %c0_3 = arith.constant 0 : index
    %2 = vector.load %arg2[%c0_2, %c0_3] : memref<1x128xf32, #tpu.memory_space<vmem>>, vector<1x128xf32>
    %3 = vector.shape_cast %2 : vector<1x128xf32> to vector<128xf32>
    %c0_4 = arith.constant 0 : index
    %c0_5 = arith.constant 0 : index
    %4 = vector.load %arg3[%c0_4, %c0_5] : memref<1x128xf32, #tpu.memory_space<vmem>>, vector<1x128xf32>
    %5 = vector.shape_cast %4 : vector<1x128xf32> to vector<128xf32>
    %cst = arith.constant dense<0.000000e+00> : vector<16xf32>
    %6 = vector.multi_reduction <add>, %1, %cst [1] : vector<16x128xf32> to vector<16xf32>
    %7 = vector.shape_cast %6 : vector<16xf32> to vector<16x1xf32>
    %cst_6 = arith.constant 1.280000e+02 : f32
    %8 = vector.broadcast %cst_6 : f32 to vector<16x1xf32>
    %9 = arith.divf %7, %8 : vector<16x1xf32>
    %10 = vector.broadcast %9 : vector<16x1xf32> to vector<16x128xf32>
    %11 = arith.subf %1, %10 : vector<16x128xf32>
    %12 = arith.mulf %11, %11 : vector<16x128xf32>
    %cst_7 = arith.constant dense<0.000000e+00> : vector<16xf32>
    %13 = vector.multi_reduction <add>, %12, %cst_7 [1] : vector<16x128xf32> to vector<16xf32>
    %14 = vector.shape_cast %13 : vector<16xf32> to vector<16x1xf32>
    %cst_8 = arith.constant 0.00787401571 : f32
    %15 = vector.broadcast %cst_8 : f32 to vector<16x1xf32>
    %16 = arith.mulf %14, %15 : vector<16x1xf32>
    %17 = vector.broadcast %9 : vector<16x1xf32> to vector<16x128xf32>
    %18 = arith.subf %1, %17 : vector<16x128xf32>
    %19 = vector.shape_cast %3 : vector<128xf32> to vector<1x128xf32>
    %20 = vector.broadcast %19 : vector<1x128xf32> to vector<16x128xf32>
    %21 = arith.mulf %20, %18 : vector<16x128xf32>
    %22 = math.sqrt %16 : vector<16x1xf32>
    %cst_9 = arith.constant 9.99999997E-7 : f32
    %23 = vector.broadcast %cst_9 : f32 to vector<16x1xf32>
    %24 = arith.addf %22, %23 : vector<16x1xf32>
    %25 = vector.broadcast %24 : vector<16x1xf32> to vector<16x128xf32>
    %26 = arith.divf %21, %25 : vector<16x128xf32>
    %27 = vector.shape_cast %5 : vector<128xf32> to vector<1x128xf32>
    %28 = vector.broadcast %27 : vector<1x128xf32> to vector<16x128xf32>
    %29 = arith.addf %26, %28 : vector<16x128xf32>
    %30 = arith.truncf %29 : vector<16x128xf32> to vector<16x128xbf16>
    %c0_10 = arith.constant 0 : index
    %c0_11 = arith.constant 0 : index
    %31 = vector.load %arg4[%c0_10, %c0_11] : memref<128x384xbf16, #tpu.memory_space<vmem>>, vector<128x384xbf16>
    %cst_12 = arith.constant dense<0.000000e+00> : vector<16x384xf32>
    %32 = tpu.matmul %30, %31, %cst_12 {dimension_numbers = #tpu.dot_dimension_numbers<[1], [0], [0], [1], [0, 0, 1, 1], [], []>} : vector<16x128xbf16>, vector<128x384xbf16>, vector<16x384xf32> -> vector<16x384xf32>
    %c0_13 = arith.constant 0 : index
    %c0_14 = arith.constant 0 : index
    %33 = vector.load %arg5[%c0_13, %c0_14] : memref<1x384xf32, #tpu.memory_space<vmem>>, vector<1x384xf32>
    %34 = vector.shape_cast %33 : vector<1x384xf32> to vector<384xf32>
    %35 = vector.shape_cast %34 : vector<384xf32> to vector<1x384xf32>
    %36 = vector.broadcast %35 : vector<1x384xf32> to vector<16x384xf32>
    %37 = arith.addf %32, %36 : vector<16x384xf32>
    %38 = arith.truncf %37 : vector<16x384xf32> to vector<16x384xbf16>
    %39 = vector.extract_strided_slice %38 {offsets = [0, 0], sizes = [16, 128], strides = [1, 1]} : vector<16x384xbf16> to vector<16x128xbf16>
    %40 = vector.extract_strided_slice %38 {offsets = [0, 128], sizes = [16, 128], strides = [1, 1]} : vector<16x384xbf16> to vector<16x128xbf16>
    %41 = vector.extract_strided_slice %38 {offsets = [0, 256], sizes = [16, 128], strides = [1, 1]} : vector<16x384xbf16> to vector<16x128xbf16>
    %c0_15 = arith.constant 0 : index
    %c0_16 = arith.constant 0 : index
    %c0_17 = arith.constant 0 : index
    %42 = vector.load %arg6[%c0_15, %c0_16, %c0_17] : memref<4x32x128xbf16, #tpu.memory_space<vmem>>, vector<4x32x128xbf16>
    %c0_18 = arith.constant 0 : index
    %c0_19 = arith.constant 0 : index
    %43 = vector.load %arg7[%c0_18, %c0_19] : memref<1x128xf32, #tpu.memory_space<vmem>>, vector<1x128xf32>
    %44 = vector.shape_cast %43 : vector<1x128xf32> to vector<128xf32>
    %45 = vector.shape_cast %39 : vector<16x128xbf16> to vector<16x4x32xbf16>
    %46 = tpu.transpose %45, [1, 0, 2] : vector<16x4x32xbf16> -> vector<4x16x32xbf16>
    %47 = vector.shape_cast %40 : vector<16x128xbf16> to vector<16x4x32xbf16>
    %48 = tpu.transpose %47, [1, 0, 2] : vector<16x4x32xbf16> -> vector<4x16x32xbf16>
    %49 = vector.shape_cast %41 : vector<16x128xbf16> to vector<16x4x32xbf16>
    %50 = tpu.transpose %49, [1, 0, 2] : vector<16x4x32xbf16> -> vector<4x16x32xbf16>
    "tpu.trace_start"() <{level = 10 : i32, message = "hqd,hkd->hqk"}> : () -> ()
    %cst_20 = arith.constant dense<0.000000e+00> : vector<4x16x16xf32>
    %51 = tpu.matmul %46, %48, %cst_20 {dimension_numbers = #tpu.dot_dimension_numbers<[2], [2], [1], [1], [0, 0, 0, 1, 1, 1], [0], [0]>} : vector<4x16x32xbf16>, vector<4x16x32xbf16>, vector<4x16x16xf32> -> vector<4x16x16xf32>
    "tpu.trace_stop"() : () -> ()
    %cst_21 = arith.constant 0.176776692 : f32
    %52 = vector.broadcast %cst_21 : f32 to vector<4x16x16xf32>
    %53 = arith.mulf %51, %52 : vector<4x16x16xf32>
    %cst_22 = arith.constant dense<0xFF800000> : vector<4x16xf32>
    %54 = vector.multi_reduction <maximumf>, %53, %cst_22 [2] : vector<4x16x16xf32> to vector<4x16xf32>
    %55 = vector.shape_cast %54 : vector<4x16xf32> to vector<4x16x1xf32>
    %56 = vector.broadcast %55 : vector<4x16x1xf32> to vector<4x16x16xf32>
    %57 = arith.subf %53, %56 : vector<4x16x16xf32>
    %58 = math.exp %57 : vector<4x16x16xf32>
    %cst_23 = arith.constant dense<0.000000e+00> : vector<4x16xf32>
    %59 = vector.multi_reduction <add>, %58, %cst_23 [2] : vector<4x16x16xf32> to vector<4x16xf32>
    %60 = vector.shape_cast %59 : vector<4x16xf32> to vector<4x16x1xf32>
    %61 = tpu.reciprocal %60 {approx = true} : vector<4x16x1xf32> -> vector<4x16x1xf32>
    %62 = vector.broadcast %61 : vector<4x16x1xf32> to vector<4x16x16xf32>
    %63 = arith.mulf %58, %62 : vector<4x16x16xf32>
    %64 = arith.truncf %63 : vector<4x16x16xf32> to vector<4x16x16xbf16>
    "tpu.trace_start"() <{level = 10 : i32, message = "hqk,hkd->hqd"}> : () -> ()
    %cst_24 = arith.constant dense<0.000000e+00> : vector<4x16x32xf32>
    %65 = tpu.matmul %64, %50, %cst_24 {dimension_numbers = #tpu.dot_dimension_numbers<[2], [1], [1], [2], [0, 0, 0, 1, 1, 2], [0], [0]>} : vector<4x16x16xbf16>, vector<4x16x32xbf16>, vector<4x16x32xf32> -> vector<4x16x32xf32>
    "tpu.trace_stop"() : () -> ()
    %66 = arith.truncf %65 : vector<4x16x32xf32> to vector<4x16x32xbf16>
    "tpu.trace_start"() <{level = 10 : i32, message = "hqd,hdn->hqn"}> : () -> ()
    %cst_25 = arith.constant dense<0.000000e+00> : vector<4x16x128xf32>
    %67 = tpu.matmul %66, %42, %cst_25 {dimension_numbers = #tpu.dot_dimension_numbers<[2], [1], [1], [2], [0, 0, 0, 1, 1, 2], [0], [0]>} : vector<4x16x32xbf16>, vector<4x32x128xbf16>, vector<4x16x128xf32> -> vector<4x16x128xf32>
    "tpu.trace_stop"() : () -> ()
    %cst_26 = arith.constant dense<0.000000e+00> : vector<16x128xf32>
    %68 = vector.multi_reduction <add>, %67, %cst_26 [0] : vector<4x16x128xf32> to vector<16x128xf32>
    %69 = vector.shape_cast %44 : vector<128xf32> to vector<1x128xf32>
    %70 = vector.broadcast %69 : vector<1x128xf32> to vector<16x128xf32>
    %71 = arith.addf %68, %70 : vector<16x128xf32>
    %72 = arith.addf %1, %71 : vector<16x128xf32>
    %c0_27 = arith.constant 0 : index
    %c0_28 = arith.constant 0 : index
    %73 = vector.load %arg8[%c0_27, %c0_28] : memref<1x128xf32, #tpu.memory_space<vmem>>, vector<1x128xf32>
    %74 = vector.shape_cast %73 : vector<1x128xf32> to vector<128xf32>
    %c0_29 = arith.constant 0 : index
    %c0_30 = arith.constant 0 : index
    %75 = vector.load %arg9[%c0_29, %c0_30] : memref<1x128xf32, #tpu.memory_space<vmem>>, vector<1x128xf32>
    %76 = vector.shape_cast %75 : vector<1x128xf32> to vector<128xf32>
    %c0_31 = arith.constant 0 : index
    %c0_32 = arith.constant 0 : index
    %77 = vector.load %arg10[%c0_31, %c0_32] : memref<128x512xbf16, #tpu.memory_space<vmem>>, vector<128x512xbf16>
    %c0_33 = arith.constant 0 : index
    %c0_34 = arith.constant 0 : index
    %78 = vector.load %arg11[%c0_33, %c0_34] : memref<1x512xf32, #tpu.memory_space<vmem>>, vector<1x512xf32>
    %79 = vector.shape_cast %78 : vector<1x512xf32> to vector<512xf32>
    %c0_35 = arith.constant 0 : index
    %c0_36 = arith.constant 0 : index
    %80 = vector.load %arg12[%c0_35, %c0_36] : memref<512x128xbf16, #tpu.memory_space<vmem>>, vector<512x128xbf16>
    %c0_37 = arith.constant 0 : index
    %c0_38 = arith.constant 0 : index
    %81 = vector.load %arg13[%c0_37, %c0_38] : memref<1x128xf32, #tpu.memory_space<vmem>>, vector<1x128xf32>
    %82 = vector.shape_cast %81 : vector<1x128xf32> to vector<128xf32>
    %cst_39 = arith.constant dense<0.000000e+00> : vector<16xf32>
    %83 = vector.multi_reduction <add>, %72, %cst_39 [1] : vector<16x128xf32> to vector<16xf32>
    %84 = vector.shape_cast %83 : vector<16xf32> to vector<16x1xf32>
    %cst_40 = arith.constant 1.280000e+02 : f32
    %85 = vector.broadcast %cst_40 : f32 to vector<16x1xf32>
    %86 = arith.divf %84, %85 : vector<16x1xf32>
    %87 = vector.broadcast %86 : vector<16x1xf32> to vector<16x128xf32>
    %88 = arith.subf %72, %87 : vector<16x128xf32>
    %89 = arith.mulf %88, %88 : vector<16x128xf32>
    %cst_41 = arith.constant dense<0.000000e+00> : vector<16xf32>
    %90 = vector.multi_reduction <add>, %89, %cst_41 [1] : vector<16x128xf32> to vector<16xf32>
    %91 = vector.shape_cast %90 : vector<16xf32> to vector<16x1xf32>
    %cst_42 = arith.constant 0.00787401571 : f32
    %92 = vector.broadcast %cst_42 : f32 to vector<16x1xf32>
    %93 = arith.mulf %91, %92 : vector<16x1xf32>
    %94 = vector.broadcast %86 : vector<16x1xf32> to vector<16x128xf32>
    %95 = arith.subf %72, %94 : vector<16x128xf32>
    %96 = vector.shape_cast %74 : vector<128xf32> to vector<1x128xf32>
    %97 = vector.broadcast %96 : vector<1x128xf32> to vector<16x128xf32>
    %98 = arith.mulf %97, %95 : vector<16x128xf32>
    %99 = math.sqrt %93 : vector<16x1xf32>
    %cst_43 = arith.constant 9.99999997E-7 : f32
    %100 = vector.broadcast %cst_43 : f32 to vector<16x1xf32>
    %101 = arith.addf %99, %100 : vector<16x1xf32>
    %102 = vector.broadcast %101 : vector<16x1xf32> to vector<16x128xf32>
    %103 = arith.divf %98, %102 : vector<16x128xf32>
    %104 = vector.shape_cast %76 : vector<128xf32> to vector<1x128xf32>
    %105 = vector.broadcast %104 : vector<1x128xf32> to vector<16x128xf32>
    %106 = arith.addf %103, %105 : vector<16x128xf32>
    %107 = arith.truncf %106 : vector<16x128xf32> to vector<16x128xbf16>
    %cst_44 = arith.constant dense<0.000000e+00> : vector<16x512xf32>
    %108 = tpu.matmul %107, %77, %cst_44 {dimension_numbers = #tpu.dot_dimension_numbers<[1], [0], [0], [1], [0, 0, 1, 1], [], []>} : vector<16x128xbf16>, vector<128x512xbf16>, vector<16x512xf32> -> vector<16x512xf32>
    %109 = vector.shape_cast %79 : vector<512xf32> to vector<1x512xf32>
    %110 = vector.broadcast %109 : vector<1x512xf32> to vector<16x512xf32>
    %111 = arith.addf %108, %110 : vector<16x512xf32>
    %112 = arith.truncf %111 : vector<16x512xf32> to vector<16x512xbf16>
    %cst_45 = arith.constant 5.000000e-01 : bf16
    %113 = vector.broadcast %cst_45 : bf16 to vector<16x512xbf16>
    %114 = arith.mulf %113, %112 : vector<16x512xbf16>
    %115 = arith.mulf %112, %112 : vector<16x512xbf16>
    %116 = arith.mulf %112, %115 : vector<16x512xbf16>
    %cst_46 = arith.constant 4.467770e-02 : bf16
    %117 = vector.broadcast %cst_46 : bf16 to vector<16x512xbf16>
    %118 = arith.mulf %117, %116 : vector<16x512xbf16>
    %119 = arith.addf %112, %118 : vector<16x512xbf16>
    %cst_47 = arith.constant 7.968750e-01 : bf16
    %120 = vector.broadcast %cst_47 : bf16 to vector<16x512xbf16>
    %121 = arith.mulf %120, %119 : vector<16x512xbf16>
    %122 = math.tanh %121 : vector<16x512xbf16>
    %cst_48 = arith.constant 1.000000e+00 : bf16
    %123 = vector.broadcast %cst_48 : bf16 to vector<16x512xbf16>
    %124 = arith.addf %123, %122 : vector<16x512xbf16>
    %125 = arith.mulf %114, %124 : vector<16x512xbf16>
    %cst_49 = arith.constant dense<0.000000e+00> : vector<16x128xf32>
    %126 = tpu.matmul %125, %80, %cst_49 {dimension_numbers = #tpu.dot_dimension_numbers<[1], [0], [0], [1], [0, 0, 1, 1], [], []>} : vector<16x512xbf16>, vector<512x128xbf16>, vector<16x128xf32> -> vector<16x128xf32>
    %127 = vector.shape_cast %82 : vector<128xf32> to vector<1x128xf32>
    %128 = vector.broadcast %127 : vector<1x128xf32> to vector<16x128xf32>
    %129 = arith.addf %126, %128 : vector<16x128xf32>
    %130 = arith.addf %72, %129 : vector<16x128xf32>
    %c0_50 = arith.constant 0 : index
    %c0_51 = arith.constant 0 : index
    %c0_52 = arith.constant 0 : index
    %131 = vector.load %arg14[%c0_50, %c0_51, %c0_52] : memref<1x16x128xf32, #tpu.memory_space<vmem>>, vector<1x16x128xf32>
    %132 = vector.shape_cast %131 : vector<1x16x128xf32> to vector<16x128xf32>
    %133 = vector.shape_cast %130 : vector<16x128xf32> to vector<1x16x128xf32>
    tpu.vector_store %arg14[%c0_50, %c0_51, %c0_52], %133 {strides = array<i32>} : memref<1x16x128xf32, #tpu.memory_space<vmem>>, vector<1x16x128xf32>,
    return
  }
  func.func @transform_0(%arg0: i32) -> (i32, i32, i32) {
    %c0_i32 = arith.constant 0 : i32
    %c0_i32_0 = arith.constant 0 : i32
    %c0_i32_1 = arith.constant 0 : i32
    return %arg0, %c0_i32, %c0_i32_0 : i32, i32, i32
  }
  func.func @transform_1(%arg0: i32) -> (i32, i32) {
    %c0_i32 = arith.constant 0 : i32
    %c0_i32_0 = arith.constant 0 : i32
    %c0_i32_1 = arith.constant 0 : i32
    return %c0_i32, %c0_i32_0 : i32, i32
  }
  func.func @transform_2(%arg0: i32) -> (i32, i32) {
    %c0_i32 = arith.constant 0 : i32
    %c0_i32_0 = arith.constant 0 : i32
    %c0_i32_1 = arith.constant 0 : i32
    return %c0_i32, %c0_i32_0 : i32, i32
  }
  func.func @transform_3(%arg0: i32) -> (i32, i32) {
    %c0_i32 = arith.constant 0 : i32
    %c0_i32_0 = arith.constant 0 : i32
    %c0_i32_1 = arith.constant 0 : i32
    return %c0_i32, %c0_i32_0 : i32, i32
  }
  func.func @transform_4(%arg0: i32) -> (i32, i32) {
    %c0_i32 = arith.constant 0 : i32
    %c0_i32_0 = arith.constant 0 : i32
    %c0_i32_1 = arith.constant 0 : i32
    return %c0_i32, %c0_i32_0 : i32, i32
  }
  func.func @transform_5(%arg0: i32) -> (i32, i32, i32) {
    %c0_i32 = arith.constant 0 : i32
    %c0_i32_0 = arith.constant 0 : i32
    %c0_i32_1 = arith.constant 0 : i32
    %c0_i32_2 = arith.constant 0 : i32
    return %c0_i32, %c0_i32_0, %c0_i32_1 : i32, i32, i32
  }
  func.func @transform_6(%arg0: i32) -> (i32, i32) {
    %c0_i32 = arith.constant 0 : i32
    %c0_i32_0 = arith.constant 0 : i32
    %c0_i32_1 = arith.constant 0 : i32
    return %c0_i32, %c0_i32_0 : i32, i32
  }
  func.func @transform_7(%arg0: i32) -> (i32, i32) {
    %c0_i32 = arith.constant 0 : i32
    %c0_i32_0 = arith.constant 0 : i32
    %c0_i32_1 = arith.constant 0 : i32
    return %c0_i32, %c0_i32_0 : i32, i32
  }
  func.func @transform_8(%arg0: i32) -> (i32, i32) {
    %c0_i32 = arith.constant 0 : i32
    %c0_i32_0 = arith.constant 0 : i32
    %c0_i32_1 = arith.constant 0 : i32
    return %c0_i32, %c0_i32_0 : i32, i32
  }
  func.func @transform_9(%arg0: i32) -> (i32, i32) {
    %c0_i32 = arith.constant 0 : i32
    %c0_i32_0 = arith.constant 0 : i32
    %c0_i32_1 = arith.constant 0 : i32
    return %c0_i32, %c0_i32_0 : i32, i32
  }
  func.func @transform_10(%arg0: i32) -> (i32, i32) {
    %c0_i32 = arith.constant 0 : i32
    %c0_i32_0 = arith.constant 0 : i32
    %c0_i32_1 = arith.constant 0 : i32
    return %c0_i32, %c0_i32_0 : i32, i32
  }
  func.func @transform_11(%arg0: i32) -> (i32, i32) {
    %c0_i32 = arith.constant 0 : i32
    %c0_i32_0 = arith.constant 0 : i32
    %c0_i32_1 = arith.constant 0 : i32
    return %c0_i32, %c0_i32_0 : i32, i32
  }
  func.func @transform_12(%arg0: i32) -> (i32, i32) {
    %c0_i32 = arith.constant 0 : i32
    %c0_i32_0 = arith.constant 0 : i32
    %c0_i32_1 = arith.constant 0 : i32
    return %c0_i32, %c0_i32_0 : i32, i32
  }
  func.func @transform_13(%arg0: i32) -> (i32, i32, i32) {
    %c0_i32 = arith.constant 0 : i32
    %c0_i32_0 = arith.constant 0 : i32
    %c0_i32_1 = arith.constant 0 : i32
    return %arg0, %c0_i32, %c0_i32_0 : i32, i32, i32
  }
}

</mosaic_0001>

<bundles_post_ra>
// kernel: bert_forward.3
= control target key start
LH: loop header
LB: loop body
LE: loop exit
PB: predicated region body
PF: predicated region fallthrough
CT: control target
= control target key end

     0   :  { %s4532_s0 = inlined_call_operand.vmem [shape: f32[2,16,128], index: 0, kind: input, shape index: {}]   ;;  %s4533_s1 = inlined_call_operand.vmem [shape: f32[1,128], index: 1, kind: input, shape index: {}]   ;;  %s4534_s2 = inlined_call_operand.vmem [shape: f32[1,128], index: 2, kind: input, shape index: {}]   ;;  %s4535_s3 = inlined_call_operand.vmem [shape: bf16[128,384], index: 3, kind: input, shape index: {}]   ;;  %s4536_s4 = inlined_call_operand.vmem [shape: f32[1,384], index: 4, kind: input, shape index: {}]   ;;  %s4537_s5 = inlined_call_operand.vmem [shape: bf16[4,32,128], index: 5, kind: input, shape index: {}]   ;;  %s4538_s6 = inlined_call_operand.vmem [shape: f32[1,128], index: 6, kind: input, shape index: {}]   ;;  %s4539_s7 = inlined_call_operand.vmem [shape: f32[1,128], index: 7, kind: input, shape index: {}]   ;;  %s4540_s8 = inlined_call_operand.vmem [shape: f32[1,128], index: 8, kind: input, shape index: {}]   ;;  %s4541_s9 = inlined_call_operand.vmem [shape: bf16[128,512], index: 9, kind: input, shape index: {}]   ;;  %s4542_s10 = inlined_call_operand.vmem [shape: f32[1,512], index: 10, kind: input, shape index: {}]   ;;  %s4543_s11 = inlined_call_operand.vmem [shape: bf16[512,128], index: 11, kind: input, shape index: {}]   ;;  %s4544_s12 = inlined_call_operand.vmem [shape: f32[1,128], index: 12, kind: input, shape index: {}]   ;;  %s4545_s13 = inlined_call_operand.hbm [shape: f32[2,16,128], index: 13, kind: output, shape index: {}]  }
   0x1   :  { %4547 = sst [smem:[#allocation7_spill]] %s4532_s0 }
   0x2   :  { %18 = vsyncpa [#allocation3], 0 }
   0x3   :  { %20 = vsyncpa [#allocation3 + $0x1], 0  ;;  %s3815_s25 = smov 0   ;;  %s3817_s26 = smov 0  }
   0x4   :  { %s3819_s27 = smov 0   ;;  %s3821_s28 = smov 0  }
   0x5 LB: > { %4548 = sst [smem:[#allocation5_spill]] %s3728_s27  ;;  %s3836_s29 = sadd.s32 4294967295, %s3732_s28   ;;  %s3732_s28 = sphi %s3821_s28, %s4557_s28   ;;  %s3728_s27 = sphi %s3819_s27, %s4554_s27   ;;  %s3724_s26 = sphi %s3817_s26, %s4556_s26   ;;  %s3720_s25 = sphi %s3815_s25, %s4555_s25  }
   0x6   : > { %s3124_s30 = sadd.s32 4294967294, %s3732_s28   ;;  %s3840_s14 = sadd.s32 1, %s3732_s28  }
   0x7   : > { %s311_s15 = sadd.s32 1, %s3728_s27  ;;  %s308_s16 = ssub.s32 %s3732_s28, %s3840_s14 }
   0x8   : > { %p321_p0 = scmp.ne.s32.totalorder %s3728_s27, %s3724_s26  ;;  %p309_p1 = scmp.eq.s32.totalorder %s308_s16, 0 }
   0x9   : > { %p322_p2 = scmp.eq.s32.totalorder %s3836_s29, 1  ;;  %p327_p3 = scmp.ne.s32.totalorder %s3724_s26, %s3720_s25 }
   0xa   : > { %p328_p4 = scmp.eq.s32.totalorder %s3124_s30, 1  ;;  %p3127_p7 = scmp.ge.s32.totalorder %s3732_s28, 1 }
   0xb   : > { %s3851_s17 = scalar_select %p309_p1, %s3728_s27, %s311_s15  }
   0xc   : > { %p3853_p5 = por %p322_p2, %p321_p0  ;;  %p3857_p6 = por %p328_p4, %p327_p3 }
   0xd   : > { %4549 = sst [smem:[#allocation6_spill]] %s3851_s17  ;;  %p390_p8 = scmp.lt.s32.totalorder %s3732_s28, 3 }
   0xf   : > { %p391_p9 = pnand %p3127_p7, %p390_p8 }
  0x10   : > { %p434_p10 = scmp.lt.s32.totalorder (!%p391_p9), %s3836_s29, 1  ;;  %s4552_s0 = sld [smem:[#allocation7_spill]] (!%p391_p9) }
  0x11   : > { %394 = sbr.rel (%p391_p9) target bundleno = 2471 (0x9a7), region = 72  ;;  %s3737_s17 = smov (!%p391_p9), 64  }
  0x12   : > { %s3738_s23 = smov (!%p391_p9), 96   ;;  %s3739_s27 = smov (!%p391_p9), 32  }
  0x13   : > { %s431_s15 = sand.u32 (!%p391_p9), 1, %s3724_s26   ;;  %s3263_s22 = sshll.u32 (!%p391_p9), %s3836_s29, 8 }
  0x14   : > { %s3128_s16 = sshll.u32 (!%p391_p9), %s431_s15, 4 }
  0x16   : > { %s435_s20 = scalar_select %p434_p10, %s3836_s29, 1  ;;  %v3494_v10 = vld [vmem:[%s4535_s3 + $0xac] ss:$12 sps:$4 sm:$0xff]   ;;  %v3496_v11 = vld [vmem:[%s4535_s3 + $0xa8] ss:$12 sps:$4 sm:$0xff]   ;;  %v3734_v13 = vmov 0.0   ;;  %v536_v63 = vlaneseq }
  0x17   : > { %v3497_v12 = vld [vmem:[%s4535_s3 + $0xb0] ss:$12 sps:$4 sm:$0xff]   ;;  %679 = vmatprep.subr.bf16.mxu0 %v3494_v10  ;;  %3345 = vmatprep.subr.bf16.mxu1 %v3734_v13  ;;  %v3498_v14 = vld [vmem:[%s4535_s3 + $0x94] ss:$12 sps:$4 sm:$0xff]   ;;  %v3501_v16 = vld [vmem:[%s4535_s3 + $0x98] ss:$12 sps:$4 sm:$0xff]  }
  0x18   : > { %s3262_s21 = sshll.u32 %s435_s20, 4  ;;  %680 = vmatpush1.bf16.msra.mxu0 %v3496_v11  ;;  %3346 = vmatpush3.bf16.msra.mxu1 %v3497_v12  ;;  %v3500_v15 = vld [vmem:[%s4535_s3 + $0x90] ss:$12 sps:$4 sm:$0xff]   ;;  %v3504_v18 = vld [vmem:[%s4535_s3 + $0x78] ss:$12 sps:$4 sm:$0xff]   ;;  %v3735_v30 = vmov 0  }
  0x19   : > { %s3868_s24 = scalar_lea.vmem %s4552_s0, %s3262_s21  ;;  %3347 = vmatprep.subr.bf16.mxu1 %v3734_v13  ;;  %681 = vmatprep.subr.bf16.mxu0 %v3498_v14  ;;  %v3502_v17 = vld [vmem:[%s4535_s3 + $0x7c] ss:$12 sps:$4 sm:$0xff]   ;;  %v3505_v19 = vld [vmem:[%s4535_s3 + $0x80] ss:$12 sps:$4 sm:$0xff]   ;;  %v3506_v20 = vld [vmem:[%s4535_s3 + $0x64] ss:$12 sps:$4 sm:$0xff]  }
  0x1a   : > { %v444_v0 = vld [vmem:[%s3868_s24] sm:$0xff]  ;;  %v445_v1 = vld [vmem:[%s3868_s24 + $0x8] sm:$0xff]  ;;  %v3513_v25 = vld [vmem:[%s4535_s3 + $0x50] ss:$12 sps:$4 sm:$0xff]   ;;  %711 = vmatprep.mubr.bf16.mxu0 %v3735_v30  ;;  %vm3736_vm0 = vmmov 0   ;;  %vm1594_vm5 = vcmask 261120  }
  0x1b   : > { %448 = vadd.xlane.f32.xlu0 %v444_v0  ;;  %v3508_v21 = vld [vmem:[%s4535_s3 + $0x60] ss:$12 sps:$4 sm:$0xff]   ;;  %v3509_v22 = vld [vmem:[%s4535_s3 + $0x68] ss:$12 sps:$4 sm:$0xff]   ;;  %v3516_v27 = vld [vmem:[%s4535_s3 + $0x30] ss:$12 sps:$4 sm:$0xff]   ;;  %3361 = vmatprep.mubr.msk.bf16.mxu1 %vm3736_vm0, %v3734_v13 }
  0x1c   : > { %682 = vmatpush1.bf16.msra.mxu0 %v3500_v15  ;;  %3348 = vmatpush3.bf16.msra.mxu1 %v3501_v16  ;;  %v3510_v23 = vld [vmem:[%s4535_s3 + $0x4c] ss:$12 sps:$4 sm:$0xff]   ;;  %v3512_v24 = vld [vmem:[%s4535_s3 + $0x48] ss:$12 sps:$4 sm:$0xff]   ;;  %v3522_v33 = vld [vmem:[%s4535_s3 + $0x4] ss:$12 sps:$4 sm:$0xff]  }
  0x1d   : > { %3349 = vmatprep.subr.bf16.mxu1 %v3734_v13  ;;  %683 = vmatprep.subr.bf16.mxu0 %v3502_v17  ;;  %v3514_v26 = vld [vmem:[%s4535_s3 + $0x34] ss:$12 sps:$4 sm:$0xff]   ;;  %v3517_v28 = vld [vmem:[%s4535_s3 + $0x38] ss:$12 sps:$4 sm:$0xff]   ;;  %v3518_v29 = vld [vmem:[%s4535_s3 + $0x1c] ss:$12 sps:$4 sm:$0xff]  }
  0x1e   : > { %v3520_v31 = vld [vmem:[%s4535_s3 + $0x18] ss:$12 sps:$4 sm:$0xff]   ;;  %v3521_v32 = vld [vmem:[%s4535_s3 + $0x20] ss:$12 sps:$4 sm:$0xff]   ;;  %v3525_v35 = vld [vmem:[%s4535_s3 + $0x8] ss:$12 sps:$4 sm:$0xff]  }
  0x1f   : > { %450 = vadd.xlane.f32.xlu0 %v445_v1  ;;  %v3524_v34 = vld [vmem:[%s4535_s3] ss:$12 sps:$4 sm:$0xff]   ;;  %vm1791_vm6 = vcmask 130048   ;;  %s433_s20 = scalar_lea.vmem [#allocation2], %s3128_s16  ;;  %s3742_s29 = smov [#allocation2]  }
  0x20   : > { %684 = vmatpush1.bf16.msra.mxu0 %v3504_v18  ;;  %3350 = vmatpush3.bf16.msra.mxu1 %v3505_v19  ;;  %v3131_v52 = vld [vmem:[%s4533_s1] ss:$0 sm:$0xff]  ;;  %s3062_s21 = sshll.u32 %s433_s20, 4  ;;  %s3676_s30 = sshll.u32 %s3742_s29, 4  ;;  %s4484_s21 = int_to_ptr.vmem [resolvable:$true] %s3062_s21  ;;  %s3677_s30 = int_to_ptr.vmem [resolvable:$false] %s3676_s30 }
  0x21   : > { %3351 = vmatprep.subr.bf16.mxu1 %v3734_v13  ;;  %685 = vmatprep.subr.bf16.mxu0 %v3506_v20  ;;  %v3132_v58 = vld [vmem:[%s4534_s2] ss:$0 sm:$0xff]  ;;  %s3678_s16 = scalar_lea.vmem %s3677_s30, 512  ;;  %p3679_p0 = scmp.lt.s32.totalorder %s4484_s21, %s3677_s30 }
  0x24   : > { %686 = vmatpush1.bf16.msra.mxu0 %v3508_v21  ;;  %3352 = vmatpush3.bf16.msra.mxu1 %v3509_v22 }
  0x25   : > { %687 = vmatprep.subr.bf16.mxu0 %v3510_v23  ;;  %3353 = vmatprep.subr.bf16.mxu1 %v3734_v13 }
  0x28   : > { %688 = vmatpush1.bf16.msra.mxu0 %v3512_v24  ;;  %3354 = vmatpush3.bf16.msra.mxu1 %v3513_v25 }
  0x29   : > { %689 = vmatprep.subr.bf16.mxu0 %v3514_v26  ;;  %3355 = vmatprep.subr.bf16.mxu1 %v3734_v13  ;;  %v3740_v26 = vmov 1983009808  }
  0x2c   : > { %690 = vmatpush1.bf16.msra.mxu0 %v3516_v27  ;;  %3356 = vmatpush3.bf16.msra.mxu1 %v3517_v28  ;;  %v814_v27 = vunpack.c.l.s4 %v3740_v26 }
  0x2d   : > { %691 = vmatprep.subr.bf16.mxu0 %v3518_v29  ;;  %3357 = vmatprep.subr.bf16.mxu1 %v3734_v13  ;;  %v3741_v29 = vmov 1934713408  }
  0x2e   : > { %v815_v28 = vunpack.c.0.s8 %v814_v27 }
  0x30   : > { %692 = vmatpush1.bf16.msra.mxu0 %v3520_v31  ;;  %3358 = vmatpush3.bf16.msra.mxu1 %v3521_v32  ;;  %v845_v31 = vunpack.c.l.s4 %v3741_v29  ;;  %v4001_v32 = vpack.i.b16 %v3735_v30, %v3735_v30 }
  0x31   : > { %693 = vmatprep.subr.bf16.mxu0 %v3522_v33  ;;  %3359 = vmatprep.subr.bf16.mxu1 %v3734_v13 }
  0x34   : > { %694 = vmatpush1.bf16.msra.mxu0 %v3524_v34  ;;  %3360 = vmatpush3.bf16.msra.mxu1 %v3525_v35 }
  0x35   : > { %3365 = vmatprep.subr.bf16.mxu0 %v3734_v13  ;;  %3371 = vmatprep.subr.bf16.mxu1 %v3734_v13 }
  0xa4   : > { %v449_v2 = vpop.xlane.xlu0 %448 }
  0xa5   : > { %v453_v3 = vmul.f32 0.0078125, %v449_v2  ;;  %v534_v2 = vld [vmem:[%s4536_s4] sm:$0x7] }
  0xa7   : > { %v3872_v4 = vsub.f32 %v444_v0, %v453_v3  ;;  %v3977_v0 = vshrl.u32 %v536_v63, 7 }
  0xa8   : > { %v451_v5 = vpop.xlane.xlu0 %450 }
  0xa9   : > { %v454_v6 = vmul.f32 0.0078125, %v451_v5  ;;  %v457_v7 = vmul.f32 %v3872_v4, %v3872_v4  ;;  %v471_v54 = vmul.f32 %v3131_v52, %v3872_v4  ;;  %v542_v3 = vsub.s32 1, %v3977_v0 }
  0xab   : > { %v3876_v8 = vsub.f32 %v445_v1, %v454_v6  ;;  %459 = vadd.xlane.f32.xlu1 %v457_v7  ;;  %v546_v1 = vsub.s32 2, %v3977_v0  ;;  %v543_v10 = vrot.slane %v534_v2, %v542_v3 }
  0xad   : > { %v458_v9 = vmul.f32 %v3876_v8, %v3876_v8  ;;  %v472_v55 = vmul.f32 %v3131_v52, %v3876_v8  ;;  %v547_v6 = vrot.slane %v534_v2, %v546_v1 }
  0xaf   : > { %461 = vadd.xlane.f32.xlu1 %v458_v9  ;;  %v538_v9 = vsub.s32 0, %v3977_v0 }
  0xb1   : > { %v539_v18 = vrot.slane %v534_v2, %v538_v9 }
 0x134   : > { %v460_v36 = vpop.xlane.xlu1 %459 }
 0x135   : > { %v463_v37 = vmul.f32 0.007874016, %v460_v36 }
 0x137   : > { %3614 = vrsqrt.f32 %v463_v37  ;;  %vm475_vm1 = vcmp.eq.f32.partialorder %v463_v37, inf  ;;  %v478_v42 = vand.u32 2147483648, %v463_v37  ;;  %vm477_vm2 = vcmp.eq.f32.partialorder %v463_v37, 0.0 }
 0x138   : > { %v462_v38 = vpop.xlane.xlu1 %461 }
 0x139   : > { %v464_v39 = vmul.f32 0.007874016, %v462_v38  ;;  %v4004_v38 = vsub.s32 %v815_v28, %v3977_v0 }
 0x13b   : > { %3616 = vrsqrt.f32 %v464_v39  ;;  %vm482_vm3 = vcmp.eq.f32.partialorder %v464_v39, inf  ;;  %v485_v48 = vand.u32 2147483648, %v464_v39  ;;  %vm484_vm4 = vcmp.eq.f32.partialorder %v464_v39, 0.0 }
 0x144   : > { %v3615_v40 = vpop.eup %3614 }
 0x145   : > { %v474_v41 = vmul.f32 %v3615_v40, %v463_v37 }
 0x147   : > { %v476_v43 = vsel %vm475_vm1, %v463_v37, %v474_v41 }
 0x148   : > { %v3617_v44 = vpop.eup %3616  ;;  %v479_v45 = vsel %vm477_vm2, %v478_v42, %v476_v43 }
 0x149   : > { %v487_v46 = vadd.f32 1e-06, %v479_v45  ;;  %v481_v47 = vmul.f32 %v3617_v44, %v464_v39 }
 0x14b   : > { %3618 = vrcp.f32 %v487_v46  ;;  %v483_v49 = vsel %vm482_vm3, %v464_v39, %v481_v47  ;;  %v846_v39 = vunpack.c.0.s8 %v845_v31 }
 0x14c   : > { %v486_v50 = vsel %vm484_vm4, %v485_v48, %v483_v49 }
 0x14d   : > { %v488_v51 = vadd.f32 1e-06, %v486_v50  ;;  %v4009_v47 = vsub.s32 %v846_v39, %v3977_v0 }
 0x14f   : > { %3620 = vrcp.f32 %v488_v51 }
 0x158   : > { %v3619_v53 = vpop.eup %3618 }
 0x159   : > { %v490_v56 = vmul.f32 %v3619_v53, %v471_v54 }
 0x15b   : > { %v499_v60 = vadd.f32 %v3132_v58, %v490_v56 }
 0x15c   : > { %v3621_v57 = vpop.eup %3620 }
 0x15d   : > { %v492_v59 = vmul.f32 %v3621_v57, %v472_v55 }
 0x15f   : > { %v500_v61 = vadd.f32 %v3132_v58, %v492_v59 }
 0x161   : > { %v501_v62 = vpack.c.bf16 %v500_v61, %v499_v60 }
 0x163   : > { %712 = vmatmul.mubr.bf16.vlgmr.msra.gmra.mxu0 %v501_v62  ;;  %3362 = vmatmul.mubr.bf16.vlgmr.msra.gmra.mxu1 %v501_v62 }
 0x164   : > { %3367 = vmatprep.mubr.msk.bf16.mxu0 %vm3736_vm0, %v3734_v13  ;;  %3373 = vmatprep.mubr.msk.bf16.mxu1 %vm3736_vm0, %v3734_v13 }
 0x223   : > { %v713_v4 = vpop.f32.mrf.mxu0  ;;  %v756_v5 = vpop.f32.mrf.mxu1 }
 0x224   : > { %v757_v14 = vadd.f32 %v756_v5, %v547_v6  ;;  %v714_v24 = vadd.f32 %v713_v4, %v539_v18 }
 0x225   : > { %v715_v7 = vpop.f32.mrf.mxu0  ;;  %v3363_v8 = vpop.f32.mrf.mxu1 }
 0x226   : > { %v716_v19 = vadd.f32 %v715_v7, %v543_v10 }
 0x227   : > { %v717_v11 = vpop.f32.mrf.mxu0  ;;  %v759_v12 = vpop.f32.mrf.mxu1 }
 0x228   : > { %v760_v15 = vadd.f32 %v759_v12, %v547_v6  ;;  %v718_v22 = vadd.f32 %v717_v11, %v539_v18 }
 0x229   : > { %v719_v16 = vpop.f32.mrf.mxu0  ;;  %v3364_v17 = vpop.f32.mrf.mxu1 }
 0x22a   : > { %v3991_v20 = vpack.c.bf16 %v760_v15, %v757_v14  ;;  %v720_v21 = vadd.f32 %v719_v16, %v543_v10  ;;  %v763_v25 = vpack.c.bf16 %v718_v22, %v714_v24 }
 0x22c   : > { %v764_v23 = vpack.c.bf16 %v720_v21, %v716_v19  ;;  %v794_v55 = vshrl.u32 %v763_v25, 16 }
 0x22e   : > { %1059 = vrot.lane.b32.xlu1 %v764_v23, %s3737_s17  ;;  %1057 = vrot.lane.b32.xlu0 %v764_v23, %s3738_s23  ;;  %v1067_v36 = vshrl.u32 %v764_v23, 16 }
 0x232   : > { %1061 = vrot.lane.b32.xlu1 %v764_v23, %s3739_s27  ;;  %786 = vrot.lane.b32.xlu0 %v763_v25, %s3737_s17 }
 0x236   : > { %784 = vrot.lane.b32.xlu1 %v763_v25, %s3738_s23 }
 0x23a   : > { %788 = vrot.lane.b32.xlu1 %v763_v25, %s3739_s27 }
 0x2a0   : > { %v1060_v33 = vpop.permute.xlu1 %1059  ;;  %v1058_v34 = vpop.permute.xlu0 %1057 }
 0x2a1   : > { %v1065_v35 = vpack.i.b16 %v1058_v34, %v764_v23  ;;  %v1068_v37 = vshrl.u32 %v1058_v34, 16  ;;  %v1075_v45 = vshrl.u32 %v1060_v33, 16 }
 0x2a3   : > { %v1069_v40 = vpack.i.b16 %v1068_v37, %v1067_v36  ;;  %v1079_v41 = vcombine.high %v1065_v35, %v4001_v32  ;;  %v1086_v48 = vrot.slane %v1065_v35, %v4004_v38 }
 0x2a4   : > { %v1062_v42 = vpop.permute.xlu1 %1061  ;;  %v787_v17 = vpop.permute.xlu0 %786 }
 0x2a5   : > { %v1145_v43 = vcombine.high %v1069_v40, %v4001_v32  ;;  %v1073_v44 = vpack.i.b16 %v1062_v42, %v1060_v33  ;;  %v1076_v46 = vshrl.u32 %v1062_v42, 16  ;;  %v1093_v51 = vrot.slane %v1079_v41, %v4004_v38 }
 0x2a6   : > { %v1152_v52 = vrot.slane %v1069_v40, %v4004_v38  ;;  %v802_v29 = vshrl.u32 %v787_v17, 16 }
 0x2a7   : > { %v1094_v49 = vcombine.high %v1073_v44, %v4001_v32  ;;  %v1101_v50 = vrot.slane %v1073_v44, %v4004_v38  ;;  %v1077_v53 = vpack.i.b16 %v1076_v46, %v1075_v45  ;;  %v1159_v56 = vrot.slane %v1145_v43, %v4004_v38 }
 0x2a8   : > { %v785_v54 = vpop.permute.xlu1 %784 }
 0x2a9   : > { %v1108_v57 = vrot.slane %v1094_v49, %v4004_v38  ;;  %v1109_v58 = vcombine.low %v1086_v48, %v1101_v50  ;;  %v1110_v59 = vcombine.high %v1086_v48, %v1101_v50  ;;  %v1160_v60 = vcombine.high %v1077_v53, %v4001_v32 }
 0x2aa   : > { %v1167_v61 = vrot.slane %v1077_v53, %v4004_v38  ;;  %v792_v62 = vpack.i.b16 %v785_v54, %v763_v25  ;;  %v795_v63 = vshrl.u32 %v785_v54, 16 }
 0x2ab   : > { %v1117_v2 = vrot.slane %v1109_v58, %v4009_v47  ;;  %v1124_v4 = vrot.slane %v1110_v59, %v4009_v47  ;;  %v1125_v5 = vcombine.low %v1093_v51, %v1108_v57  ;;  %v1126_v6 = vcombine.high %v1093_v51, %v1108_v57 }
 0x2ac   : > { %v1174_v7 = vrot.slane %v1160_v60, %v4004_v38  ;;  %v1175_v8 = vcombine.low %v1152_v52, %v1167_v61  ;;  %v1176_v10 = vcombine.high %v1152_v52, %v1167_v61  ;;  %v796_v11 = vpack.i.b16 %v795_v63, %v794_v55  ;;  %v789_v25 = vpop.permute.xlu1 %788 }
 0x2ad   : > { %v1133_v12 = vrot.slane %v1125_v5, %v4009_v47  ;;  %v1140_v14 = vrot.slane %v1126_v6, %v4009_v47  ;;  %v1211_v15 = vcombine.low %v1117_v2, %v1124_v4  ;;  %v3161_v16 = vcombine.high %v1117_v2, %v1124_v4 }
 0x2ae   : > { %v1183_v18 = vrot.slane %v1175_v8, %v4009_v47  ;;  %v1190_v19 = vrot.slane %v1176_v10, %v4009_v47  ;;  %v1191_v21 = vcombine.low %v1159_v56, %v1174_v7  ;;  %v1192_v22 = vcombine.high %v1159_v56, %v1174_v7 }
 0x2af   : > { %v1227_v23 = vcombine.low %v1133_v12, %v1140_v14  ;;  %v3162_v24 = vcombine.high %v1133_v12, %v1140_v14  ;;  %v4030_v28 = vrot.slane %v1211_v15, %v4004_v38  ;;  %v1226_v31 = vrot.slane %v3161_v16, %v4004_v38 }
 0x2b0   : > { %v1199_v26 = vrot.slane %v1191_v21, %v4009_v47  ;;  %v1206_v27 = vrot.slane %v1192_v22, %v4009_v47  ;;  %v1261_v33 = vcombine.low %v1183_v18, %v1190_v19  ;;  %v812_v34 = vcombine.high %v792_v62, %v4001_v32 }
 0x2b1   : > { %v878_v35 = vcombine.high %v796_v11, %v4001_v32  ;;  %v3163_v36 = vcombine.high %v1183_v18, %v1190_v19  ;;  %v819_v37 = vrot.slane %v792_v62, %v4004_v38  ;;  %v800_v39 = vpack.i.b16 %v789_v25, %v787_v17 }
 0x2b2   : > { %v803_v40 = vshrl.u32 %v789_v25, 16  ;;  %v1277_v41 = vcombine.low %v1199_v26, %v1206_v27  ;;  %v885_v42 = vrot.slane %v796_v11, %v4004_v38  ;;  %v1234_v43 = vrot.slane %v1227_v23, %v4004_v38 }
 0x2b3   : > { %v1242_v44 = vrot.slane %v3162_v24, %v4004_v38  ;;  %v3164_v45 = vcombine.high %v1199_v26, %v1206_v27  ;;  %v827_v48 = vcombine.high %v800_v39, %v4001_v32  ;;  %v834_v49 = vrot.slane %v800_v39, %v4004_v38 }
 0x2b4   : > { %v804_v46 = vpack.i.b16 %v803_v40, %v802_v29  ;;  %v826_v50 = vrot.slane %v812_v34, %v4004_v38  ;;  %v892_v51 = vrot.slane %v878_v35, %v4004_v38  ;;  %v1243_v52 = vcombine.low %v4030_v28, %v1226_v31 }
 0x2b5   : > { %v1251_v53 = vcombine.low %v1234_v43, %v1242_v44  ;;  %v841_v54 = vrot.slane %v827_v48, %v4004_v38  ;;  %v842_v55 = vcombine.low %v819_v37, %v834_v49  ;;  %v843_v56 = vcombine.high %v819_v37, %v834_v49 }
 0x2b6   : > { %v893_v57 = vcombine.high %v804_v46, %v4001_v32  ;;  %v900_v58 = vrot.slane %v804_v46, %v4004_v38  ;;  %v1268_v59 = vrot.slane %v1261_v33, %v4004_v38  ;;  %v1276_v60 = vrot.slane %v3163_v36, %v4004_v38 }
 0x2b7   : > { %v1284_v61 = vrot.slane %v1277_v41, %v4004_v38  ;;  %v850_v62 = vrot.slane %v842_v55, %v4009_v47  ;;  %v857_v63 = vrot.slane %v843_v56, %v4009_v47  ;;  %v858_v2 = vcombine.low %v826_v50, %v841_v54 }
 0x2b8   : > { %v859_v4 = vcombine.high %v826_v50, %v841_v54  ;;  %v907_v5 = vrot.slane %v893_v57, %v4004_v38  ;;  %v908_v6 = vcombine.low %v885_v42, %v900_v58  ;;  %v909_v7 = vcombine.high %v885_v42, %v900_v58 }
 0x2b9   : > { %v1292_v8 = vrot.slane %v3164_v45, %v4004_v38  ;;  %v866_v10 = vrot.slane %v858_v2, %v4009_v47  ;;  %v944_v12 = vcombine.low %v850_v62, %v857_v63  ;;  %v3157_v14 = vcombine.high %v850_v62, %v857_v63 }
 0x2ba   : > { %v873_v11 = vrot.slane %v859_v4, %v4009_v47  ;;  %v916_v15 = vrot.slane %v908_v6, %v4009_v47  ;;  %v923_v16 = vrot.slane %v909_v7, %v4009_v47  ;;  %v924_v17 = vcombine.low %v892_v51, %v907_v5 }
 0x2bb   : > { %v925_v18 = vcombine.high %v892_v51, %v907_v5  ;;  %v951_v19 = vrot.slane %v944_v12, %v4004_v38  ;;  %v959_v21 = vrot.slane %v3157_v14, %v4004_v38  ;;  %v1258_v31 = vrot.slane %v1251_v53, %v4009_v47 }
 0x2bc   : > { %v960_v22 = vcombine.low %v866_v10, %v873_v11  ;;  %v3158_v23 = vcombine.high %v866_v10, %v873_v11  ;;  %v932_v24 = vrot.slane %v924_v17, %v4009_v47  ;;  %v994_v26 = vcombine.low %v916_v15, %v923_v16 }
 0x2bd   : > { %v939_v25 = vrot.slane %v925_v18, %v4009_v47  ;;  %v3159_v27 = vcombine.high %v916_v15, %v923_v16  ;;  %v1293_v33 = vcombine.low %v1268_v59, %v1276_v60  ;;  %v1250_v40 = vrot.slane %v1243_v52, %v4009_v47 }
 0x2be   : > { %v967_v28 = vrot.slane %v960_v22, %v4004_v38  ;;  %v975_v29 = vrot.slane %v3158_v23, %v4004_v38  ;;  %v1001_v34 = vrot.slane %v994_v26, %v4004_v38  ;;  %v1301_v41 = vcombine.low %v1284_v61, %v1292_v8 }
 0x2bf   : > { %v1009_v35 = vrot.slane %v3159_v27, %v4004_v38  ;;  %v1010_v36 = vcombine.low %v932_v24, %v939_v25  ;;  %v3160_v37 = vcombine.high %v932_v24, %v939_v25  ;;  %v976_v42 = vcombine.low %v951_v19, %v959_v21 }
 0x2c0   : > { %v984_v39 = vcombine.low %v967_v28, %v975_v29  ;;  %v1259_v46 = vcombine.low %v1250_v40, %v1258_v31  ;;  %v1300_v48 = vrot.slane %v1293_v33, %v4009_v47  ;;  %v1308_v49 = vrot.slane %v1301_v41, %v4009_v47 }
 0x2c1   : > { %v1017_v43 = vrot.slane %v1010_v36, %v4004_v38  ;;  %v1025_v44 = vrot.slane %v3160_v37, %v4004_v38  ;;  %v1026_v45 = vcombine.low %v1001_v34, %v1009_v35  ;;  %v983_v54 = vrot.slane %v976_v42, %v4009_v47 }
 0x2c2   : > { %v1309_v51 = vcombine.low %v1300_v48, %v1308_v49  ;;  %v991_v53 = vrot.slane %v984_v39, %v4009_v47  ;;  %v1314_v57 = vshrl.u32 %v1259_v46, 16  ;;  %v1310_v59 = vcombine.high %v1300_v48, %v1308_v49 }
 0x2c3   : > { %v1034_v50 = vcombine.low %v1017_v43, %v1025_v44  ;;  %v1033_v52 = vrot.slane %v1026_v45, %v4009_v47  ;;  %v1260_v2 = vcombine.high %v1250_v40, %v1258_v31 }
 0x2c4   : > { %v1313_v56 = vpack.i.b16 %v1309_v51, %v1259_v46  ;;  %v1315_v58 = vshrl.u32 %v1309_v51, 16  ;;  %v992_v63 = vcombine.low %v983_v54, %v991_v53  ;;  %v1321_v6 = vshrl.u32 %v1310_v59, 16 }
 0x2c5   : > { %v1041_v55 = vrot.slane %v1034_v50, %v4009_v47  ;;  %v1319_v8 = vpack.i.b16 %v1310_v59, %v1260_v2  ;;  %v1320_v11 = vshrl.u32 %v1260_v2, 16  ;;  %v993_v18 = vcombine.high %v983_v54, %v991_v53 }
 0x2c6   : > { %v1599_v61 = vsel %vm1594_vm5, %v1313_v56, 0  ;;  %v1316_v62 = vpack.i.b16 %v1315_v58, %v1314_v57  ;;  %v1047_v10 = vshrl.u32 %v992_v63, 16 }
 0x2c7   : > { %v1042_v60 = vcombine.low %v1033_v52, %v1041_v55  ;;  %3366 = vmatpush3.bf16.xpose.msra.mxu0 %v1599_v61  ;;  %v1322_v14 = vpack.i.b16 %v1321_v6, %v1320_v11  ;;  %v1693_v15 = vsel %vm1594_vm5, %v1319_v8, 0  ;;  %v1043_v16 = vcombine.high %v1033_v52, %v1041_v55 }
 0x2c8   : > { %v1646_v4 = vsel %vm1594_vm5, %v1316_v62, 0  ;;  %3377 = vmatprep.subr.bf16.mxu0 %v3734_v13  ;;  %v1053_v22 = vshrl.u32 %v993_v18, 16 }
 0x2c9   : > { %v1048_v5 = vshrl.u32 %v1042_v60, 16  ;;  %3372 = vmatpush3.bf16.xpose.msra.mxu1 %v1646_v4  ;;  %v1046_v7 = vpack.i.b16 %v1042_v60, %v992_v63  ;;  %v1740_v17 = vsel %vm1594_vm5, %v1322_v14, 0  ;;  %v1054_v19 = vshrl.u32 %v1043_v16, 16 }
 0x2ca   : > { %3383 = vmatprep.subr.bf16.mxu1 %v3734_v13  ;;  %v1052_v21 = vpack.i.b16 %v1043_v16, %v993_v18 }
 0x2cb   : > { %v1049_v12 = vpack.i.b16 %v1048_v5, %v1047_v10  ;;  %v1055_v23 = vpack.i.b16 %v1054_v19, %v1053_v22 }
 0x2ce   : > { %3368 = vmatmul.mubr.msk.bf16.vlgmr.msra.gmra.mxu0 %vm1594_vm5, %v1046_v7 }
 0x2cf   : > { %3378 = vmatpush3.bf16.xpose.msra.mxu0 %v1693_v15  ;;  %3379 = vmatprep.mubr.msk.bf16.mxu0 %vm3736_vm0, %v3734_v13 }
 0x2d0   : > { %3374 = vmatmul.mubr.msk.bf16.vlgmr.msra.gmra.mxu1 %vm1594_vm5, %v1049_v12  ;;  %3389 = vmatprep.subr.bf16.mxu0 %v3734_v13 }
 0x2d1   : > { %3384 = vmatpush3.bf16.xpose.msra.mxu1 %v1740_v17  ;;  %3385 = vmatprep.mubr.msk.bf16.mxu1 %vm3736_vm0, %v3734_v13 }
 0x2d2   : > { %3395 = vmatprep.subr.bf16.mxu1 %v3734_v13 }
 0x2d6   : > { %3380 = vmatmul.mubr.msk.bf16.vlgmr.msra.gmra.mxu0 %vm1594_vm5, %v1052_v21 }
 0x2d7   : > { %3391 = vmatprep.mubr.msk.bf16.mxu0 %vm3736_vm0, %v3734_v13 }
 0x2d8   : > { %3386 = vmatmul.mubr.msk.bf16.vlgmr.msra.gmra.mxu1 %vm1594_vm5, %v1055_v23 }
 0x2d9   : > { %3397 = vmatprep.mubr.msk.bf16.mxu1 %vm3736_vm0, %v3734_v13 }
 0x38e   : > { %v1635_v24 = vpop.f32.mrf.mxu0 }
 0x38f   : > { %v1783_v25 = vmul.f32 0.17677669, %v1635_v24 }
 0x390   : > { %v3369_v26 = vpop.f32.mrf.mxu0  ;;  %v1682_v27 = vpop.f32.mrf.mxu1 }
 0x391   : > { %v1785_v28 = vmul.f32 0.17677669, %v1682_v27  ;;  %v1792_v29 = vsel %vm1791_vm6, %v1783_v25, -inf }
 0x392   : > { %v3375_v31 = vpop.f32.mrf.mxu1  ;;  %1793 = vmax.xlane.f32.xlu0 %v1792_v29  ;;  %v1638_v33 = vpop.f32.mrf.mxu0 }
 0x393   : > { %v1784_v34 = vmul.f32 0.17677669, %v1638_v33  ;;  %v1798_v39 = vsel %vm1791_vm6, %v1785_v28, -inf }
 0x394   : > { %v3370_v35 = vpop.f32.mrf.mxu0  ;;  %v1685_v36 = vpop.f32.mrf.mxu1 }
 0x395   : > { %v1786_v37 = vmul.f32 0.17677669, %v1685_v36  ;;  %v1795_v40 = vsel %vm1791_vm6, %v1784_v34, -inf }
 0x396   : > { %v3376_v41 = vpop.f32.mrf.mxu1  ;;  %1799 = vmax.xlane.f32.xlu0 %v1798_v39  ;;  %1796 = vmax.xlane.f32.xlu1 %v1795_v40  ;;  %v1729_v42 = vpop.f32.mrf.mxu0 }
 0x397   : > { %v4099_v45 = vmul.f32 0.17677669, %v1729_v42  ;;  %v1801_v46 = vsel %vm1791_vm6, %v1786_v37, -inf }
 0x398   : > { %v3381_v43 = vpop.f32.mrf.mxu0  ;;  %v1776_v44 = vpop.f32.mrf.mxu1 }
 0x399   : > { %v1789_v54 = vmul.f32 0.17677669, %v1776_v44  ;;  %v1804_v55 = vsel %vm1791_vm6, %v4099_v45, -inf }
 0x39a   : > { %v3387_v48 = vpop.f32.mrf.mxu1  ;;  %1802 = vmax.xlane.f32.xlu0 %v1801_v46  ;;  %v1732_v49 = vpop.f32.mrf.mxu0 }
 0x39b   : > { %v1788_v50 = vmul.f32 0.17677669, %v1732_v49  ;;  %v1810_v58 = vsel %vm1791_vm6, %v1789_v54, -inf }
 0x39c   : > { %v3382_v51 = vpop.f32.mrf.mxu0  ;;  %v1779_v53 = vpop.f32.mrf.mxu1 }
 0x39d   : > { %v1790_v52 = vmul.f32 0.17677669, %v1779_v53  ;;  %v1807_v56 = vsel %vm1791_vm6, %v1788_v50, -inf  ;;  %v1334_v53 = vshrl.u32 %v3991_v20, 16 }
 0x39e   : > { %v3388_v57 = vpop.f32.mrf.mxu1  ;;  %1805 = vmax.xlane.f32.xlu0 %v1804_v55  ;;  %1808 = vmax.xlane.f32.xlu1 %v1807_v56 }
 0x39f   : > { %v1813_v59 = vsel %vm1791_vm6, %v1790_v52, -inf }
 0x3a2   : > { %1811 = vmax.xlane.f32.xlu0 %v1810_v58  ;;  %1814 = vmax.xlane.f32.xlu1 %v1813_v59 }
 0x3b3   : > { %1326 = vrot.lane.b32.xlu1 %v3991_v20, %s3737_s17 }
 0x3b8   : > { %1324 = vrot.lane.b32.xlu0 %v3991_v20, %s3738_s23  ;;  %s4492_s23 = scalar_lea.sflag [#allocation3], %s431_s15 }
 0x41b   : > { %v1794_v60 = vpop.xlane.xlu0 %1793 }
 0x41c   : > { %v1816_v61 = vsub.f32 %v1783_v25, %v1794_v60 }
 0x41e   : > { %v1824_v62 = vmul.f32 1.442695, %v1816_v61 }
 0x41f   : > { %v1800_v63 = vpop.xlane.xlu0 %1799  ;;  %v1797_v2 = vpop.xlane.xlu1 %1796 }
 0x420   : > { %3622 = vpow2.f32 %v1824_v62  ;;  %v1818_v4 = vsub.f32 %v1785_v28, %v1800_v63  ;;  %v1817_v5 = vsub.f32 %v1784_v34, %v1797_v2 }
 0x422   : > { %v1828_v6 = vmul.f32 1.442695, %v1818_v4  ;;  %v1826_v7 = vmul.f32 1.442695, %v1817_v5 }
 0x423   : > { %v1803_v8 = vpop.xlane.xlu0 %1802 }
 0x424   : > { %3624 = vpow2.f32 %v1828_v6  ;;  %v1819_v10 = vsub.f32 %v1786_v37, %v1803_v8 }
 0x425   : > { %3626 = vpow2.f32 %v1826_v7 }
 0x426   : > { %v1830_v11 = vmul.f32 1.442695, %v1819_v10 }
 0x427   : > { %v1806_v12 = vpop.xlane.xlu0 %1805  ;;  %v1809_v14 = vpop.xlane.xlu1 %1808 }
 0x428   : > { %3628 = vpow2.f32 %v1830_v11  ;;  %v1821_v15 = vsub.f32 %v1788_v50, %v1809_v14  ;;  %v1820_v41 = vsub.f32 %v4099_v45, %v1806_v12 }
 0x42a   : > { %v1834_v21 = vmul.f32 1.442695, %v1821_v15  ;;  %v1832_v42 = vmul.f32 1.442695, %v1820_v41 }
 0x42b   : > { %v1812_v16 = vpop.xlane.xlu0 %1811  ;;  %v1815_v17 = vpop.xlane.xlu1 %1814 }
 0x42c   : > { %v1822_v18 = vsub.f32 %v1789_v54, %v1812_v16  ;;  %v1823_v23 = vsub.f32 %v1790_v52, %v1815_v17 }
 0x42d   : > { %v4111_v19 = vpop.eup %3622 }
 0x42e   : > { %v1836_v22 = vmul.f32 1.442695, %v1822_v18  ;;  %v1840_v24 = vsel %vm1791_vm6, %v4111_v19, 0.0  ;;  %v1838_v27 = vmul.f32 1.442695, %v1823_v23 }
 0x42f   : > { %1841 = vadd.xlane.f32.xlu0 %v1840_v24  ;;  %v1327_v46 = vpop.permute.xlu1 %1326  ;;  %v1325_v48 = vpop.permute.xlu0 %1324 }
 0x430   : > { %3630 = vpow2.f32 %v1836_v22  ;;  %v1335_v51 = vshrl.u32 %v1325_v48, 16  ;;  %v1332_v54 = vpack.i.b16 %v1325_v48, %v3991_v20  ;;  %v1342_v58 = vshrl.u32 %v1327_v46, 16 }
 0x431   : > { %v4115_v25 = vpop.eup %3624  ;;  %3632 = vpow2.f32 %v1834_v21 }
 0x432   : > { %v4117_v26 = vpop.eup %3626  ;;  %v1846_v28 = vsel %vm1791_vm6, %v4115_v25, 0.0  ;;  %3634 = vpow2.f32 %v1838_v27  ;;  %v1336_v55 = vpack.i.b16 %v1335_v51, %v1334_v53  ;;  %v1346_v56 = vcombine.high %v1332_v54, %v4001_v32 }
 0x433   : > { %1847 = vadd.xlane.f32.xlu0 %v1846_v28  ;;  %v1843_v29 = vsel %vm1791_vm6, %v4117_v26, 0.0  ;;  %3636 = vpow2.f32 %v1832_v42  ;;  %v1353_v61 = vrot.slane %v1332_v54, %v4004_v38 }
 0x434   : > { %1844 = vadd.xlane.f32.xlu1 %v1843_v29  ;;  %v1412_v62 = vcombine.high %v1336_v55, %v4001_v32  ;;  %v1360_v5 = vrot.slane %v1346_v56, %v4004_v38  ;;  %v1419_v11 = vrot.slane %v1336_v55, %v4004_v38 }
 0x435   : > { %v4123_v31 = vpop.eup %3628 }
 0x436   : > { %v1849_v33 = vsel %vm1791_vm6, %v4123_v31, 0.0  ;;  %v1426_v12 = vrot.slane %v1412_v62, %v4004_v38 }
 0x438   : > { %1850 = vadd.xlane.f32.xlu1 %v1849_v33 }
 0x43d   : > { %v4127_v34 = vpop.eup %3630 }
 0x43e   : > { %v1858_v35 = vsel %vm1791_vm6, %v4127_v34, 0.0  ;;  %v4131_v36 = vpop.eup %3632 }
 0x43f   : > { %1859 = vadd.xlane.f32.xlu0 %v1858_v35  ;;  %v1855_v37 = vsel %vm1791_vm6, %v4131_v36, 0.0  ;;  %v4135_v39 = vpop.eup %3634 }
 0x440   : > { %v1861_v40 = vsel %vm1791_vm6, %v4135_v39, 0.0  ;;  %v4142_v43 = vpop.eup %3636 }
 0x441   : > { %v1852_v44 = vsel %vm1791_vm6, %v4142_v43, 0.0 }
 0x443   : > { %1856 = vadd.xlane.f32.xlu0 %v1855_v37 }
 0x447   : > { %1862 = vadd.xlane.f32.xlu0 %v1861_v40 }
 0x449   : > { %1328 = vrot.lane.b32.xlu1 %v3991_v20, %s3739_s27  ;;  %s3672_s27 = scalar_lea.vmem %s4484_s21, 256 }
 0x44a   : > { %p3673_p11 = scmp.ne.s32.totalorder %s4484_s21, %s3672_s27  ;;  %p3680_p1 = scmp.lt.s32.totalorder %s3678_s16, %s3672_s27 }
 0x44c   : > { %p3674_p12 = pnand %p3673_p11, %p3853_p5  ;;  %p3681_p2 = por %p3680_p1, %p3679_p0 }
 0x44e   : > { %p3675_p13 = pneg %p3674_p12 }
 0x450   : > { %p3682_p3 = pnand %p3681_p2, %p3675_p13 }
 0x46d   : > { %1853 = vadd.xlane.f32.xlu1 %v1852_v44 }
 0x4b8   : > { %v1842_v50 = vpop.xlane.xlu0 %1841 }
 0x4b9   : > { %3638 = vrcp.f32 %v1842_v50 }
 0x4bc   : > { %v1848_v45 = vpop.xlane.xlu0 %1847 }
 0x4bd   : > { %v1845_v49 = vpop.xlane.xlu1 %1844  ;;  %3640 = vrcp.f32 %v1848_v45 }
 0x4be   : > { %3642 = vrcp.f32 %v1845_v49 }
 0x4c1   : > { %v1851_v52 = vpop.xlane.xlu1 %1850 }
 0x4c2   : > { %3644 = vrcp.f32 %v1851_v52 }
 0x4c5   : > { %v1329_v57 = vpop.permute.xlu1 %1328 }
 0x4c6   : > { %v1340_v59 = vpack.i.b16 %v1329_v57, %v1327_v46  ;;  %v1343_v60 = vshrl.u32 %v1329_v57, 16 }
 0x4c8   : > { %v1344_v63 = vpack.i.b16 %v1343_v60, %v1342_v58  ;;  %v1361_v2 = vcombine.high %v1340_v59, %v4001_v32  ;;  %v1368_v4 = vrot.slane %v1340_v59, %v4004_v38  ;;  %v1860_v20 = vpop.xlane.xlu0 %1859  ;;  %v3639_v60 = vpop.eup %3638 }
 0x4ca   : > { %v1375_v6 = vrot.slane %v1361_v2, %v4004_v38  ;;  %v1376_v7 = vcombine.low %v1353_v61, %v1368_v4  ;;  %v1377_v8 = vcombine.high %v1353_v61, %v1368_v4  ;;  %v1427_v10 = vcombine.high %v1344_v63, %v4001_v32  ;;  %v3641_v2 = vpop.eup %3640 }
 0x4cb   : > { %v1434_v14 = vrot.slane %v1344_v63, %v4004_v38 }
 0x4cc   : > { %v1384_v15 = vrot.slane %v1376_v7, %v4009_v47  ;;  %v1391_v16 = vrot.slane %v1377_v8, %v4009_v47  ;;  %v1392_v17 = vcombine.low %v1360_v5, %v1375_v6  ;;  %v1393_v18 = vcombine.high %v1360_v5, %v1375_v6  ;;  %v4162_v24 = vpop.xlane.xlu0 %1856  ;;  %v3643_v7 = vpop.eup %3642 }
 0x4cd   : > { %v1441_v21 = vrot.slane %v1427_v10, %v4004_v38  ;;  %v1442_v22 = vcombine.low %v1419_v11, %v1434_v14  ;;  %v1443_v23 = vcombine.high %v1419_v11, %v1434_v14 }
 0x4ce   : > { %v1400_v32 = vrot.slane %v1392_v17, %v4009_v47  ;;  %v1407_v27 = vrot.slane %v1393_v18, %v4009_v47  ;;  %v1478_v28 = vcombine.low %v1384_v15, %v1391_v16  ;;  %v3165_v29 = vcombine.high %v1384_v15, %v1391_v16 }
 0x4cf   : > { %v1450_v33 = vrot.slane %v1442_v22, %v4009_v47  ;;  %v1457_v35 = vrot.slane %v1443_v23, %v4009_v47  ;;  %v1458_v37 = vcombine.low %v1426_v12, %v1441_v21  ;;  %v1459_v40 = vcombine.high %v1426_v12, %v1441_v21  ;;  %v3645_v12 = vpop.eup %3644 }
 0x4d0   : > { %v1485_v41 = vrot.slane %v1478_v28, %v4004_v38  ;;  %v1493_v42 = vrot.slane %v3165_v29, %v4004_v38  ;;  %v1494_v44 = vcombine.low %v1400_v32, %v1407_v27  ;;  %v3166_v46 = vcombine.high %v1400_v32, %v1407_v27  ;;  %v1863_v58 = vpop.xlane.xlu0 %1862 }
 0x4d1   : > { %v1466_v48 = vrot.slane %v1458_v37, %v4009_v47  ;;  %v1473_v49 = vrot.slane %v1459_v40, %v4009_v47  ;;  %v1528_v50 = vcombine.low %v1450_v33, %v1457_v35  ;;  %v3167_v51 = vcombine.high %v1450_v33, %v1457_v35 }
 0x4d2   : > { %v1501_v53 = vrot.slane %v1494_v44, %v4004_v38  ;;  %v1509_v54 = vrot.slane %v3166_v46, %v4004_v38  ;;  %v1510_v52 = vcombine.low %v1485_v41, %v1493_v42  ;;  %3646 = vrcp.f32 %v1863_v58 }
 0x4d3   : > { %v1535_v55 = vrot.slane %v1528_v50, %v4004_v38  ;;  %v1543_v45 = vrot.slane %v3167_v51, %v4004_v38  ;;  %v1544_v56 = vcombine.low %v1466_v48, %v1473_v49  ;;  %v3168_v57 = vcombine.high %v1466_v48, %v1473_v49 }
 0x4d4   : > { %v1518_v59 = vcombine.low %v1501_v53, %v1509_v54  ;;  %v1517_v5 = vrot.slane %v1510_v52, %v4009_v47  ;;  %3648 = vrcp.f32 %v1860_v20  ;;  %v1872_v22 = vmul.f32 %v3639_v60, %v4111_v19  ;;  %v3532_v54 = vld [vmem:[%s4537_s5 + $0x28] sm:$0xff]  }
 0x4d5   : > { %v1551_v61 = vrot.slane %v1544_v56, %v4004_v38  ;;  %v1559_v62 = vrot.slane %v3168_v57, %v4004_v38  ;;  %v1560_v63 = vcombine.low %v1535_v55, %v1543_v45  ;;  %v1873_v38 = vmul.f32 %v3643_v7, %v4117_v26  ;;  %v3530_v56 = vld [vmem:[%s4537_s5 + $0x38] sm:$0xff]  }
 0x4d6   : > { %v1525_v4 = vrot.slane %v1518_v59, %v4009_v47  ;;  %v1875_v23 = vmul.f32 %v3645_v12, %v4123_v31  ;;  %3650 = vrcp.f32 %v4162_v24  ;;  %v3527_v24 = vld [vmem:[%s4537_s5 + $0x18] sm:$0xff]   ;;  %v3533_v59 = vld [vmem:[%s4537_s5 + $0x20] sm:$0xff]  }
 0x4d7   : > { %v1568_v6 = vcombine.low %v1551_v61, %v1559_v62  ;;  %v1567_v10 = vrot.slane %v1560_v63, %v4009_v47  ;;  %v1880_v27 = vpack.c.bf16 %v1873_v38, %v1872_v22  ;;  %v3531_v61 = vld [vmem:[%s4537_s5 + $0x30] sm:$0xff]  }
 0x4d8   : > { %v1526_v8 = vcombine.low %v1517_v5, %v1525_v4  ;;  %v1527_v21 = vcombine.high %v1517_v5, %v1525_v4 }
 0x4d9   : > { %v1575_v11 = vrot.slane %v1568_v6, %v4009_v47  ;;  %v1874_v47 = vmul.f32 %v3641_v2, %v4115_v25 }
 0x4da   : > { %v1582_v17 = vshrl.u32 %v1526_v8, 16  ;;  %v1590_v29 = vshrl.u32 %v1527_v21, 16 }
 0x4db   : > { %v1576_v14 = vcombine.low %v1567_v10, %v1575_v11  ;;  %v1577_v15 = vcombine.high %v1567_v10, %v1575_v11  ;;  %v1881_v26 = vpack.c.bf16 %v1875_v23, %v1874_v47 }
 0x4dd   : > { %v1580_v16 = vpack.i.b16 %v1576_v14, %v1526_v8  ;;  %v1583_v18 = vshrl.u32 %v1576_v14, 16  ;;  %v1591_v32 = vshrl.u32 %v1577_v15, 16  ;;  %v1588_v28 = vpack.i.b16 %v1577_v15, %v1527_v21 }
 0x4df   : > { %3390 = vmatpush3.bf16.msra.mxu0 %v1580_v16  ;;  %v1584_v20 = vpack.i.b16 %v1583_v18, %v1582_v17  ;;  %v3647_v33 = vpop.eup %3646  ;;  %v1592_v19 = vpack.i.b16 %v1591_v32, %v1590_v29 }
 0x4e0   : > { %3401 = vmatprep.subr.bf16.mxu0 %v3734_v13  ;;  %v1879_v25 = vmul.f32 %v3647_v33, %v4135_v39 }
 0x4e1   : > { %3396 = vmatpush3.bf16.msra.mxu1 %v1584_v20  ;;  %v3649_v31 = vpop.eup %3648 }
 0x4e2   : > { %3392 = vmatmul.mubr.msk.bf16.vlgmr.msra.gmra.mxu0 %vm1791_vm6, %v1880_v27  ;;  %3407 = vmatprep.subr.bf16.mxu1 %v3734_v13  ;;  %v1878_v35 = vmul.f32 %v3649_v31, %v4127_v34  ;;  %v3526_v34 = vld [vmem:[%s4537_s5 + $0x8] sm:$0xff]  }
 0x4e3   : > { %3402 = vmatpush3.bf16.msra.mxu0 %v1588_v28  ;;  %3403 = vmatprep.mubr.msk.bf16.mxu0 %vm3736_vm0, %v3734_v13  ;;  %v3651_v41 = vpop.eup %3650 }
 0x4e4   : > { %3398 = vmatmul.mubr.msk.bf16.vlgmr.msra.gmra.mxu1 %vm1791_vm6, %v1881_v26  ;;  %3413 = vmatprep.subr.bf16.mxu0 %v3734_v13  ;;  %v1883_v37 = vpack.c.bf16 %v1879_v25, %v1878_v35  ;;  %v1877_v39 = vmul.f32 %v3651_v41, %v4131_v36  ;;  %v3528_v36 = vld [vmem:[%s4537_s5] sm:$0xff]   ;;  %v3671_v41 = vld [vmem:[%s3868_s24 + $0x8] sm:$0xff] }
 0x4e5   : > { %3408 = vmatpush3.bf16.msra.mxu1 %v1592_v19  ;;  %3409 = vmatprep.mubr.msk.bf16.mxu1 %vm3736_vm0, %v3734_v13  ;;  %v3670_v35 = vld [vmem:[%s3868_s24] sm:$0xff]  ;;  %s4490_s24 = scalar_lea.hbm %s4545_s13, %s3263_s22 }
 0x4e6   : > { %3421 = vmatprep.subr.bf16.mxu1 %v3734_v13 }
 0x4ec   : > { %3410 = vmatmul.mubr.msk.bf16.vlgmr.msra.gmra.mxu1 %vm1791_vm6, %v1883_v37 }
 0x4ed   : > { %3425 = vmatprep.mubr.msk.bf16.mxu1 %vm3736_vm0, %v3734_v13  ;;  %3422 = vmatpush3.bf16.msra.mxu1 %v3527_v24 }
 0x4ee   : > { %3423 = vmatprep.subr.bf16.mxu1 %v3734_v13 }
 0x4f6   : > { %v1854_v40 = vpop.xlane.xlu1 %1853 }
 0x4f7   : > { %3652 = vrcp.f32 %v1854_v40 }
 0x504   : > { %v3653_v42 = vpop.eup %3652 }
 0x505   : > { %v1876_v44 = vmul.f32 %v3653_v42, %v4142_v43  ;;  %v3529_v43 = vld [vmem:[%s4537_s5 + $0x10] sm:$0xff]  }
 0x506   : > { %3424 = vmatpush3.bf16.msra.mxu1 %v3529_v43 }
 0x507   : > { %v1882_v46 = vpack.c.bf16 %v1877_v39, %v1876_v44  ;;  %3437 = vmatprep.subr.bf16.mxu1 %v3734_v13 }
 0x509   : > { %3404 = vmatmul.mubr.msk.bf16.vlgmr.msra.gmra.mxu0 %vm1791_vm6, %v1882_v46 }
 0x50a   : > { %3417 = vmatprep.mubr.msk.bf16.mxu0 %vm3736_vm0, %v3734_v13  ;;  %3414 = vmatpush3.bf16.msra.mxu0 %v3526_v34 }
 0x50b   : > { %3415 = vmatprep.subr.bf16.mxu0 %v3734_v13 }
 0x50e   : > { %3416 = vmatpush3.bf16.msra.mxu0 %v3528_v36 }
 0x50f   : > { %3429 = vmatprep.subr.bf16.mxu0 %v3734_v13 }
 0x5a2   : > { %v1921_v48 = vpop.f32.mrf.mxu0 }
 0x5a4   : > { %v3393_v49 = vpop.f32.mrf.mxu0  ;;  %v1965_v50 = vpop.f32.mrf.mxu1 }
 0x5a5   : > { %v3536_v49 = vld [vmem:[%s4541_s9 + $0xe4] ss:$16 sps:$4 sm:$0xff]  }
 0x5a6   : > { %v1924_v51 = vpop.f32.mrf.mxu0  ;;  %v3399_v53 = vpop.f32.mrf.mxu1 }
 0x5a7   : > { %v2060_v52 = vpack.c.bf16 %v1924_v51, %v1921_v48  ;;  %v3534_v51 = vld [vmem:[%s4541_s9 + $0xe0] ss:$16 sps:$4 sm:$0xff]   ;;  %v3537_v53 = vld [vmem:[%s4541_s9 + $0xe8] ss:$16 sps:$4 sm:$0xff]  }
 0x5a8   : > { %v3394_v55 = vpop.f32.mrf.mxu0  ;;  %v1968_v45 = vpop.f32.mrf.mxu1 }
 0x5a9   : > { %v2061_v57 = vpack.c.bf16 %v1968_v45, %v1965_v50  ;;  %3418 = vmatmul.mubr.msk.bf16.vlgmr.msra.gmra.mxu0 %vm1594_vm5, %v2060_v52  ;;  %v3539_v50 = vld [vmem:[%s4541_s9 + $0xec] ss:$16 sps:$4 sm:$0xff]   ;;  %v3540_v55 = vld [vmem:[%s4541_s9 + $0xc0] ss:$16 sps:$4 sm:$0xff]   ;;  %v3543_v45 = vld [vmem:[%s4541_s9 + $0xc8] ss:$16 sps:$4 sm:$0xff]  }
 0x5aa   : > { %v3400_v58 = vpop.f32.mrf.mxu1  ;;  %3430 = vmatpush3.bf16.msra.mxu0 %v3532_v54  ;;  %3433 = vmatprep.mubr.msk.bf16.mxu0 %vm3736_vm0, %v3734_v13  ;;  %v3542_v54 = vld [vmem:[%s4541_s9 + $0xc4] ss:$16 sps:$4 sm:$0xff]   ;;  %v3545_v52 = vld [vmem:[%s4541_s9 + $0xcc] ss:$16 sps:$4 sm:$0xff]  }
 0x5ab   : > { %3426 = vmatmul.mubr.msk.bf16.vlgmr.msra.gmra.mxu1 %vm1594_vm5, %v2061_v57  ;;  %3431 = vmatprep.subr.bf16.mxu0 %v3734_v13  ;;  %v3546_v57 = vld [vmem:[%s4541_s9 + $0xa0] ss:$16 sps:$4 sm:$0xff]   ;;  %v3549_v58 = vld [vmem:[%s4541_s9 + $0xa8] ss:$16 sps:$4 sm:$0xff]  }
 0x5ac   : > { %v2053_v60 = vpop.f32.mrf.mxu1  ;;  %3438 = vmatpush3.bf16.msra.mxu1 %v3530_v56  ;;  %3441 = vmatprep.mubr.msk.bf16.mxu1 %vm3736_vm0, %v3734_v13  ;;  %v3548_v56 = vld [vmem:[%s4541_s9 + $0xa4] ss:$16 sps:$4 sm:$0xff]  }
 0x5ad   : > { %3439 = vmatprep.subr.bf16.mxu1 %v3734_v13 }
 0x5ae   : > { %v3411_v62 = vpop.f32.mrf.mxu1  ;;  %3432 = vmatpush3.bf16.msra.mxu0 %v3533_v59  ;;  %v3551_v59 = vld [vmem:[%s4541_s9 + $0xac] ss:$16 sps:$4 sm:$0xff]  }
 0x5af   : > { %2638 = vmatprep.subr.bf16.mxu0 %v3536_v49  ;;  %v3552_v62 = vld [vmem:[%s4541_s9 + $0x80] ss:$16 sps:$4 sm:$0xff]  }
 0x5b0   : > { %v2056_v63 = vpop.f32.mrf.mxu1  ;;  %3440 = vmatpush3.bf16.msra.mxu1 %v3531_v61  ;;  %v3557_v61 = vld [vmem:[%s4541_s9 + $0x8c] ss:$16 sps:$4 sm:$0xff]  }
 0x5b1   : > { %v2063_v2 = vpack.c.bf16 %v2056_v63, %v2053_v60  ;;  %2681 = vmatprep.subr.bf16.mxu1 %v3539_v50  ;;  %v3554_v60 = vld [vmem:[%s4541_s9 + $0x84] ss:$16 sps:$4 sm:$0xff]   ;;  %v3555_v63 = vld [vmem:[%s4541_s9 + $0x88] ss:$16 sps:$4 sm:$0xff]  }
 0x5b2   : > { %v3412_v4 = vpop.f32.mrf.mxu1 }
 0x5b3   : > { %3442 = vmatmul.mubr.msk.bf16.vlgmr.msra.gmra.mxu1 %vm1594_vm5, %v2063_v2  ;;  %v3560_v2 = vld [vmem:[%s4541_s9 + $0x64] ss:$16 sps:$4 sm:$0xff]   ;;  %v3563_v4 = vld [vmem:[%s4541_s9 + $0x6c] ss:$16 sps:$4 sm:$0xff]  }
 0x5b4   : > { %2713 = vmatprep.mubr.bf16.mxu1 %v3735_v30  ;;  %2682 = vmatpush1.bf16.msra.mxu1 %v3537_v53  ;;  %v3582_v53 = vld [vmem:[%s4543_s11 + $0x78] sm:$0xff]  }
 0x5b5   : > { %2683 = vmatprep.subr.bf16.mxu1 %v3545_v52  ;;  %v3586_v52 = vld [vmem:[%s4543_s11 + $0x70] sm:$0xff]  }
 0x5b8   : > { %2684 = vmatpush1.bf16.msra.mxu1 %v3543_v45  ;;  %v3588_v45 = vld [vmem:[%s4543_s11 + $0x30] sm:$0xff]  }
 0x5b9   : > { %2685 = vmatprep.subr.bf16.mxu1 %v3551_v59  ;;  %v3592_v59 = vld [vmem:[%s4543_s11 + $0x28] sm:$0xff]  }
 0x5bc   : > { %2686 = vmatpush1.bf16.msra.mxu1 %v3549_v58  ;;  %v3591_v58 = vld [vmem:[%s4543_s11 + $0xe8] sm:$0xff]  }
 0x5bd   : > { %2687 = vmatprep.subr.bf16.mxu1 %v3557_v61  ;;  %v3594_v61 = vld [vmem:[%s4543_s11 + $0x60] sm:$0xff]  }
 0x5c0   : > { %2688 = vmatpush1.bf16.msra.mxu1 %v3555_v63  ;;  %v3596_v63 = vld [vmem:[%s4543_s11 + $0x20] sm:$0xff]  }
 0x5c1   : > { %2689 = vmatprep.subr.bf16.mxu1 %v3563_v4  ;;  %v3598_v4 = vld [vmem:[%s4543_s11 + $0x58] sm:$0xff]  }
 0x5c9   : > { %v2009_v5 = vpop.f32.mrf.mxu0 }
 0x5cb   : > { %v3405_v6 = vpop.f32.mrf.mxu0 }
 0x5cc   : > { %v3561_v6 = vld [vmem:[%s4541_s9 + $0x68] ss:$16 sps:$4 sm:$0xff]  }
 0x5cd   : > { %v2012_v7 = vpop.f32.mrf.mxu0  ;;  %2690 = vmatpush1.bf16.msra.mxu1 %v3561_v6  ;;  %v3600_v6 = vld [vmem:[%s4543_s11 + $0x18] sm:$0xff]  }
 0x5ce   : > { %v2062_v8 = vpack.c.bf16 %v2012_v7, %v2009_v5  ;;  %v3558_v5 = vld [vmem:[%s4541_s9 + $0x60] ss:$16 sps:$4 sm:$0xff]   ;;  %v3566_v7 = vld [vmem:[%s4541_s9 + $0x44] ss:$16 sps:$4 sm:$0xff]  }
 0x5cf   : > { %v3406_v10 = vpop.f32.mrf.mxu0 }
 0x5d0   : > { %3434 = vmatmul.mubr.msk.bf16.vlgmr.msra.gmra.mxu0 %vm1594_vm5, %v2062_v8  ;;  %v3569_v8 = vld [vmem:[%s4541_s9 + $0x4c] ss:$16 sps:$4 sm:$0xff]   ;;  %v3564_v10 = vld [vmem:[%s4541_s9 + $0x40] ss:$16 sps:$4 sm:$0xff]  }
 0x5d1   : > { %2670 = vmatprep.mubr.bf16.mxu0 %v3735_v30  ;;  %v3189_v30 = vld [vmem:[%s4538_s6] ss:$0 sm:$0xff]  ;;  %2639 = vmatpush1.bf16.msra.mxu0 %v3534_v51 }
 0x5d2   : > { %2640 = vmatprep.subr.bf16.mxu0 %v3542_v54  ;;  %2691 = vmatprep.subr.bf16.mxu1 %v3569_v8  ;;  %v3585_v54 = vld [vmem:[%s4543_s11 + $0xb8] sm:$0xff]   ;;  %v3602_v8 = vld [vmem:[%s4543_s11 + $0x50] sm:$0xff]  }
 0x5d5   : > { %2641 = vmatpush1.bf16.msra.mxu0 %v3540_v55  ;;  %v3587_v55 = vld [vmem:[%s4543_s11 + $0xf0] sm:$0xff]  }
 0x5d6   : > { %2642 = vmatprep.subr.bf16.mxu0 %v3548_v56  ;;  %v3589_v56 = vld [vmem:[%s4543_s11 + $0xb0] sm:$0xff]  }
 0x5d9   : > { %2643 = vmatpush1.bf16.msra.mxu0 %v3546_v57  ;;  %v3590_v57 = vld [vmem:[%s4543_s11 + $0x68] sm:$0xff]  }
 0x5da   : > { %2644 = vmatprep.subr.bf16.mxu0 %v3554_v60  ;;  %v3593_v60 = vld [vmem:[%s4543_s11 + $0xa8] sm:$0xff]  }
 0x5dd   : > { %2645 = vmatpush1.bf16.msra.mxu0 %v3552_v62  ;;  %v3595_v62 = vld [vmem:[%s4543_s11 + $0xe0] sm:$0xff]  }
 0x5de   : > { %2646 = vmatprep.subr.bf16.mxu0 %v3560_v2  ;;  %v3597_v2 = vld [vmem:[%s4543_s11 + $0xa0] sm:$0xff]  }
 0x5e1   : > { %2647 = vmatpush1.bf16.msra.mxu0 %v3558_v5  ;;  %v3599_v5 = vld [vmem:[%s4543_s11 + $0xd8] sm:$0xff]  }
 0x5e2   : > { %2648 = vmatprep.subr.bf16.mxu0 %v3566_v7  ;;  %v3601_v7 = vld [vmem:[%s4543_s11 + $0x98] sm:$0xff]  }
 0x5e5   : > { %2649 = vmatpush1.bf16.msra.mxu0 %v3564_v10  ;;  %v3603_v10 = vld [vmem:[%s4543_s11 + $0xd0] sm:$0xff]  }
 0x669   : > { %v2113_v13 = vpop.f32.mrf.mxu0 }
 0x66b   : > { %v3419_v11 = vpop.f32.mrf.mxu0  ;;  %v2169_v12 = vpop.f32.mrf.mxu1 }
 0x66c   : > { %v2288_v20 = vadd.f32 %v2169_v12, %v2113_v13  ;;  %v3567_v13 = vld [vmem:[%s4541_s9 + $0x48] ss:$16 sps:$4 sm:$0xff]   ;;  %v3572_v11 = vld [vmem:[%s4541_s9 + $0x24] ss:$16 sps:$4 sm:$0xff]   ;;  %v3575_v12 = vld [vmem:[%s4541_s9 + $0x2c] ss:$16 sps:$4 sm:$0xff]  }
 0x66d   : > { %v2116_v14 = vpop.f32.mrf.mxu0  ;;  %v3427_v15 = vpop.f32.mrf.mxu1  ;;  %2692 = vmatpush1.bf16.msra.mxu1 %v3567_v13  ;;  %2650 = vmatprep.subr.bf16.mxu0 %v3572_v11  ;;  %v3604_v13 = vld [vmem:[%s4543_s11 + $0x10] sm:$0xff]  }
 0x66e   : > { %v3573_v15 = vld [vmem:[%s4541_s9 + $0x28] ss:$16 sps:$4 sm:$0xff]   ;;  %2693 = vmatprep.subr.bf16.mxu1 %v3575_v12  ;;  %v3605_v11 = vld [vmem:[%s4543_s11 + $0x90] sm:$0xff]  }
 0x66f   : > { %v3420_v38 = vpop.f32.mrf.mxu0  ;;  %v2172_v16 = vpop.f32.mrf.mxu1  ;;  %v3606_v12 = vld [vmem:[%s4543_s11 + $0x48] sm:$0xff]  }
 0x670   : > { %v2291_v28 = vadd.f32 %v2172_v16, %v2116_v14  ;;  %v3570_v14 = vld [vmem:[%s4541_s9 + $0x20] ss:$16 sps:$4 sm:$0xff]   ;;  %v3578_v38 = vld [vmem:[%s4541_s9 + $0x4] ss:$16 sps:$4 sm:$0xff]   ;;  %v3581_v16 = vld [vmem:[%s4541_s9 + $0xc] ss:$16 sps:$4 sm:$0xff]  }
 0x671   : > { %v3428_v17 = vpop.f32.mrf.mxu1  ;;  %2651 = vmatpush1.bf16.msra.mxu0 %v3570_v14  ;;  %2694 = vmatpush1.bf16.msra.mxu1 %v3573_v15  ;;  %v3607_v14 = vld [vmem:[%s4543_s11 + $0xc8] sm:$0xff]  }
 0x672   : > { %v3576_v17 = vld [vmem:[%s4541_s9] ss:$16 sps:$4 sm:$0xff]   ;;  %2652 = vmatprep.subr.bf16.mxu0 %v3578_v38  ;;  %2695 = vmatprep.subr.bf16.mxu1 %v3581_v16  ;;  %v3608_v15 = vld [vmem:[%s4543_s11 + $0x8] sm:$0xff]  }
 0x673   : > { %v2281_v18 = vpop.f32.mrf.mxu1  ;;  %v3609_v38 = vld [vmem:[%s4543_s11 + $0x88] sm:$0xff]   ;;  %v3610_v16 = vld [vmem:[%s4543_s11 + $0x40] sm:$0xff]  }
 0x675   : > { %v3443_v21 = vpop.f32.mrf.mxu1  ;;  %2653 = vmatpush1.bf16.msra.mxu0 %v3576_v17  ;;  %v3611_v17 = vld [vmem:[%s4543_s11 + $0xc0] sm:$0xff]  }
 0x676   : > { %3301 = vmatprep.subr.bf16.mxu0 %v3582_v53 }
 0x677   : > { %v2284_v22 = vpop.f32.mrf.mxu1 }
 0x679   : > { %v3444_v23 = vpop.f32.mrf.mxu1 }
 0x690   : > { %v2225_v32 = vpop.f32.mrf.mxu0 }
 0x691   : > { %v2289_v27 = vadd.f32 %v2288_v20, %v2225_v32 }
 0x692   : > { %v3435_v47 = vpop.f32.mrf.mxu0 }
 0x693   : > { %v2290_v29 = vadd.f32 %v2289_v27, %v2281_v18  ;;  %v3579_v18 = vld [vmem:[%s4541_s9 + $0x8] ss:$16 sps:$4 sm:$0xff]  }
 0x694   : > { %v2228_v26 = vpop.f32.mrf.mxu0  ;;  %2696 = vmatpush1.bf16.msra.mxu1 %v3579_v18  ;;  %v3612_v18 = vld [vmem:[%s4543_s11] sm:$0xff]  }
 0x695   : > { %v2300_v33 = vadd.f32 %v3189_v30, %v2290_v29  ;;  %v2292_v19 = vadd.f32 %v2291_v28, %v2228_v26 }
 0x696   : > { %v3436_v31 = vpop.f32.mrf.mxu0 }
 0x697   : > { %v2293_v25 = vadd.f32 %v2292_v19, %v2284_v22  ;;  %v4251_v37 = vadd.f32 %v3670_v35, %v2300_v33 }
 0x699   : > { %v2301_v40 = vadd.f32 %v3189_v30, %v2293_v25  ;;  %2404 = vadd.xlane.f32.xlu1 %v4251_v37 }
 0x69b   : > { %v4255_v42 = vadd.f32 %v3671_v41, %v2301_v40  ;;  %v3190_v40 = vld [vmem:[%s4539_s7] ss:$0 sm:$0xff] }
 0x69d   : > { %2406 = vadd.xlane.f32.xlu0 %v4255_v42 }
 0x722   : > { %v2405_v44 = vpop.xlane.xlu1 %2404 }
 0x723   : > { %v2408_v39 = vmul.f32 0.0078125, %v2405_v44 }
 0x725   : > { %v4259_v46 = vsub.f32 %v4251_v37, %v2408_v39 }
 0x726   : > { %v2407_v34 = vpop.xlane.xlu0 %2406 }
 0x727   : > { %v2409_v24 = vmul.f32 0.0078125, %v2407_v34  ;;  %v2412_v36 = vmul.f32 %v4259_v46, %v4259_v46  ;;  %v2426_v44 = vmul.f32 %v3190_v40, %v4259_v46  ;;  %v3583_v46 = vld [vmem:[%s4543_s11 + $0xf8] sm:$0xff]  }
 0x728   : > { %3323 = vmatprep.subr.bf16.mxu1 %v3583_v46 }
 0x729   : > { %v4264_v43 = vsub.f32 %v4255_v42, %v2409_v24  ;;  %2414 = vadd.xlane.f32.xlu1 %v2412_v36  ;;  %v3191_v36 = vld [vmem:[%s4540_s8] ss:$0 sm:$0xff] }
 0x72b   : > { %v2413_v48 = vmul.f32 %v4264_v43, %v4264_v43  ;;  %v2427_v39 = vmul.f32 %v3190_v40, %v4264_v43  ;;  %v3584_v43 = vld [vmem:[%s4543_s11 + $0x38] sm:$0xff]  }
 0x72d   : > { %2416 = vadd.xlane.f32.xlu0 %v2413_v48 }
 0x7b2   : > { %v2415_v21 = vpop.xlane.xlu1 %2414 }
 0x7b3   : > { %v2418_v22 = vmul.f32 0.007874016, %v2415_v21  ;;  %v3613_v21 = vld [vmem:[%s4543_s11 + $0x80] sm:$0xff]  }
 0x7b5   : > { %3654 = vrsqrt.f32 %v2418_v22  ;;  %vm2430_vm7 = vcmp.eq.f32.partialorder %v2418_v22, inf  ;;  %v2433_v30 = vand.u32 2147483648, %v2418_v22  ;;  %vm2432_vm8 = vcmp.eq.f32.partialorder %v2418_v22, 0.0 }
 0x7b6   : > { %v2417_v23 = vpop.xlane.xlu0 %2416 }
 0x7b7   : > { %v2419_v20 = vmul.f32 0.007874016, %v2417_v23  ;;  %v2472_v23 = vsub.s32 3, %v3977_v0 }
 0x7b9   : > { %3656 = vrsqrt.f32 %v2419_v20  ;;  %vm2437_vm9 = vcmp.eq.f32.partialorder %v2419_v20, inf  ;;  %v2440_v19 = vand.u32 2147483648, %v2419_v20  ;;  %vm2439_vm10 = vcmp.eq.f32.partialorder %v2419_v20, 0.0 }
 0x7c2   : > { %v3655_v32 = vpop.eup %3654 }
 0x7c3   : > { %v2429_v27 = vmul.f32 %v3655_v32, %v2418_v22 }
 0x7c5   : > { %v2431_v47 = vsel %vm2430_vm7, %v2418_v22, %v2429_v27  ;;  %v2338_v22 = vld [vmem:[%s4542_s10] sm:$0xf] }
 0x7c6   : > { %v3657_v28 = vpop.eup %3656  ;;  %v2434_v29 = vsel %vm2432_vm8, %v2433_v30, %v2431_v47  ;;  %v2461_v27 = vrot.slane %v2338_v22, %v538_v9  ;;  %v2469_v30 = vrot.slane %v2338_v22, %v546_v1  ;;  %v2465_v47 = vrot.slane %v2338_v22, %v542_v3 }
 0x7c7   : > { %v2442_v26 = vadd.f32 1e-06, %v2434_v29  ;;  %v2436_v33 = vmul.f32 %v3657_v28, %v2419_v20  ;;  %v2473_v29 = vrot.slane %v2338_v22, %v2472_v23 }
 0x7c9   : > { %3658 = vrcp.f32 %v2442_v26  ;;  %v2438_v31 = vsel %vm2437_vm9, %v2419_v20, %v2436_v33 }
 0x7ca   : > { %v2441_v25 = vsel %vm2439_vm10, %v2440_v19, %v2438_v31 }
 0x7cb   : > { %v2443_v35 = vadd.f32 1e-06, %v2441_v25 }
 0x7cd   : > { %3660 = vrcp.f32 %v2443_v35 }
 0x7d6   : > { %v3659_v41 = vpop.eup %3658 }
 0x7d7   : > { %v2445_v34 = vmul.f32 %v3659_v41, %v2426_v44 }
 0x7d9   : > { %v2454_v49 = vadd.f32 %v3191_v36, %v2445_v34 }
 0x7da   : > { %v3661_v24 = vpop.eup %3660 }
 0x7db   : > { %v2447_v48 = vmul.f32 %v3661_v24, %v2427_v39 }
 0x7dd   : > { %v2455_v50 = vadd.f32 %v3191_v36, %v2447_v48 }
 0x7df   : > { %v2456_v51 = vpack.c.bf16 %v2455_v50, %v2454_v49 }
 0x7e1   : > { %2671 = vmatmul.mubr.bf16.vlgmr.msra.gmra.mxu0 %v2456_v51  ;;  %2714 = vmatmul.mubr.bf16.vlgmr.msra.gmra.mxu1 %v2456_v51 }
 0x7e2   : > { %3302 = vmatpush3.bf16.msra.mxu0 %v3584_v43  ;;  %3324 = vmatpush3.bf16.msra.mxu1 %v3585_v54 }
 0x7e3   : > { %3303 = vmatprep.subr.bf16.mxu0 %v3586_v52  ;;  %3325 = vmatprep.subr.bf16.mxu1 %v3587_v55 }
 0x7e6   : > { %3304 = vmatpush3.bf16.msra.mxu0 %v3588_v45  ;;  %3326 = vmatpush3.bf16.msra.mxu1 %v3589_v56 }
 0x7e7   : > { %3305 = vmatprep.subr.bf16.mxu0 %v3590_v57  ;;  %3327 = vmatprep.subr.bf16.mxu1 %v3591_v58 }
 0x7ea   : > { %3306 = vmatpush3.bf16.msra.mxu0 %v3592_v59  ;;  %3328 = vmatpush3.bf16.msra.mxu1 %v3593_v60 }
 0x7eb   : > { %3307 = vmatprep.subr.bf16.mxu0 %v3594_v61  ;;  %3329 = vmatprep.subr.bf16.mxu1 %v3595_v62 }
 0x7ee   : > { %3308 = vmatpush3.bf16.msra.mxu0 %v3596_v63  ;;  %3330 = vmatpush3.bf16.msra.mxu1 %v3597_v2 }
 0x7ef   : > { %3309 = vmatprep.subr.bf16.mxu0 %v3598_v4  ;;  %3331 = vmatprep.subr.bf16.mxu1 %v3599_v5 }
 0x7f2   : > { %3310 = vmatpush3.bf16.msra.mxu0 %v3600_v6  ;;  %3332 = vmatpush3.bf16.msra.mxu1 %v3601_v7 }
 0x7f3   : > { %3311 = vmatprep.subr.bf16.mxu0 %v3602_v8  ;;  %3333 = vmatprep.subr.bf16.mxu1 %v3603_v10 }
 0x7f6   : > { %3312 = vmatpush3.bf16.msra.mxu0 %v3604_v13  ;;  %3334 = vmatpush3.bf16.msra.mxu1 %v3605_v11 }
 0x7f7   : > { %3313 = vmatprep.subr.bf16.mxu0 %v3606_v12  ;;  %3335 = vmatprep.subr.bf16.mxu1 %v3607_v14 }
 0x7fa   : > { %3314 = vmatpush3.bf16.msra.mxu0 %v3608_v15  ;;  %3336 = vmatpush3.bf16.msra.mxu1 %v3609_v38 }
 0x7fb   : > { %3315 = vmatprep.subr.bf16.mxu0 %v3610_v16  ;;  %3337 = vmatprep.subr.bf16.mxu1 %v3611_v17 }
 0x7fe   : > { %3316 = vmatpush3.bf16.msra.mxu0 %v3612_v18  ;;  %3338 = vmatpush3.bf16.msra.mxu1 %v3613_v21 }
 0x8a1   : > { %v2672_v20 = vpop.f32.mrf.mxu0  ;;  %v2715_v32 = vpop.f32.mrf.mxu1 }
 0x8a2   : > { %v2673_v31 = vadd.f32 %v2672_v20, %v2461_v27  ;;  %v2716_v25 = vadd.f32 %v2715_v32, %v2469_v30  ;;  %v3224_v20 = vld [vmem:[%s4544_s12] ss:$0 sm:$0xff] }
 0x8a3   : > { %v2674_v28 = vpop.f32.mrf.mxu0  ;;  %v2717_v26 = vpop.f32.mrf.mxu1 }
 0x8a4   : > { %v2675_v41 = vadd.f32 %v2674_v28, %v2465_v47  ;;  %v2718_v44 = vadd.f32 %v2717_v26, %v2473_v29 }
 0x8a5   : > { %v2676_v33 = vpop.f32.mrf.mxu0  ;;  %v2719_v19 = vpop.f32.mrf.mxu1 }
 0x8a6   : > { %v2677_v35 = vadd.f32 %v2676_v33, %v2461_v27  ;;  %v2720_v40 = vadd.f32 %v2719_v19, %v2469_v30 }
 0x8a7   : > { %v2678_v39 = vpop.f32.mrf.mxu0  ;;  %v2721_v34 = vpop.f32.mrf.mxu1 }
 0x8a8   : > { %v2724_v9 = vpack.c.bf16 %v2677_v35, %v2673_v31  ;;  %v2726_v24 = vpack.c.bf16 %v2720_v40, %v2716_v25  ;;  %v2679_v36 = vadd.f32 %v2678_v39, %v2465_v47  ;;  %v2722_v1 = vadd.f32 %v2721_v34, %v2473_v29 }
 0x8aa   : > { %v2732_v48 = vmul.bf16 %v2724_v9, %v2724_v9  ;;  %v2734_v0 = vmul.bf16 %v2726_v24, %v2726_v24  ;;  %v2725_v3 = vpack.c.bf16 %v2679_v36, %v2675_v41  ;;  %v2727_v49 = vpack.c.bf16 %v2722_v1, %v2718_v44 }
 0x8ab   : > { %v2728_v15 = vmul.bf16 1056980736, %v2724_v9  ;;  %v2730_v16 = vmul.bf16 1056980736, %v2726_v24 }
 0x8ac   : > { %v2736_v50 = vmul.bf16 %v2732_v48, %v2724_v9  ;;  %v2738_v51 = vmul.bf16 %v2734_v0, %v2726_v24  ;;  %v2733_v53 = vmul.bf16 %v2725_v3, %v2725_v3  ;;  %v2735_v46 = vmul.bf16 %v2727_v49, %v2727_v49 }
 0x8ad   : > { %v2729_v10 = vmul.bf16 1056980736, %v2725_v3  ;;  %v2731_v12 = vmul.bf16 1056980736, %v2727_v49 }
 0x8ae   : > { %v2740_v43 = vmul.bf16 1027030327, %v2736_v50  ;;  %v2742_v54 = vmul.bf16 1027030327, %v2738_v51  ;;  %v2737_v52 = vmul.bf16 %v2733_v53, %v2725_v3  ;;  %v2739_v55 = vmul.bf16 %v2735_v46, %v2727_v49 }
 0x8b0   : > { %v2744_v45 = vadd.bf16 %v2740_v43, %v2724_v9  ;;  %v2746_v56 = vadd.bf16 %v2742_v54, %v2726_v24  ;;  %v2741_v57 = vmul.bf16 1027030327, %v2737_v52  ;;  %v2743_v58 = vmul.bf16 1027030327, %v2739_v55 }
 0x8b2   : > { %v2748_v59 = vmul.bf16 1061961548, %v2744_v45  ;;  %v2750_v60 = vmul.bf16 1061961548, %v2746_v56  ;;  %v2745_v61 = vadd.bf16 %v2741_v57, %v2725_v3  ;;  %v2747_v62 = vadd.bf16 %v2743_v58, %v2727_v49 }
 0x8b4   : > { %3662 = vtanh.bf16 %v2748_v59  ;;  %v2749_v63 = vmul.bf16 1061961548, %v2745_v61  ;;  %v2751_v2 = vmul.bf16 1061961548, %v2747_v62 }
 0x8b5   : > { %3664 = vtanh.bf16 %v2750_v60 }
 0x8b6   : > { %3666 = vtanh.bf16 %v2749_v63 }
 0x8b7   : > { %3668 = vtanh.bf16 %v2751_v2 }
 0x8c2   : > { %v3663_v4 = vpop.eup %3662 }
 0x8c3   : > { %v3665_v5 = vpop.eup %3664  ;;  %v2756_v7 = vadd.bf16 1065369472, %v3663_v4 }
 0x8c4   : > { %v3667_v6 = vpop.eup %3666  ;;  %v2758_v11 = vadd.bf16 1065369472, %v3665_v5 }
 0x8c5   : > { %v3669_v8 = vpop.eup %3668  ;;  %v2757_v13 = vadd.bf16 1065369472, %v3667_v6  ;;  %v2760_v18 = vmul.bf16 %v2756_v7, %v2728_v15 }
 0x8c6   : > { %v2759_v14 = vadd.bf16 1065369472, %v3669_v8  ;;  %v2762_v21 = vmul.bf16 %v2758_v11, %v2730_v16 }
 0x8c7   : > { %v2761_v38 = vmul.bf16 %v2757_v13, %v2729_v10 }
 0x8c8   : > { %v2763_v17 = vmul.bf16 %v2759_v14, %v2731_v12 }
 0x8c9   : > { %2994 = vmatprep.mubr.bf16.mxu0 %v2761_v38 }
 0x8ca   : > { %3035 = vmatprep.mubr.bf16.mxu1 %v2763_v17  ;;  %2995 = vmatmul.mubr.bf16.vlgmr.msra.gmra.mxu0 %v2760_v18 }
 0x8cb   : > { %3036 = vmatmul.mubr.bf16.vlgmr.msra.gmra.mxu1 %v2762_v21 }
 0x98a   : > { %v3317_v22 = vpop.f32.mrf.mxu0 }
 0x98b   : > { %v3339_v23 = vpop.f32.mrf.mxu1 }
 0x98c   : > { %v3318_v32 = vpop.f32.mrf.mxu0 }
 0x98d   : > { %v3319_v27 = vadd.f32 %v3318_v32, %v3317_v22  ;;  %v3340_v30 = vpop.f32.mrf.mxu1 }
 0x98e   : > { %v3320_v47 = vpop.f32.mrf.mxu0  ;;  %v3341_v29 = vadd.f32 %v3340_v30, %v3339_v23 }
 0x98f   : > { %v2997_v28 = vadd.f32 %v3319_v27, %v3224_v20  ;;  %v3342_v26 = vpop.f32.mrf.mxu1 }
 0x990   : > { %v3321_v33 = vpop.f32.mrf.mxu0 }
 0x991   : > { %v3038_v19 = vadd.f32 %v3341_v29, %v2997_v28  ;;  %v3322_v31 = vadd.f32 %v3321_v33, %v3320_v47  ;;  %v3343_v25 = vpop.f32.mrf.mxu1 }
 0x992   : > { %v3344_v41 = vadd.f32 %v3343_v25, %v3342_v26 }
 0x993   : > { %v3044_v35 = vadd.f32 %v3038_v19, %v4251_v37  ;;  %v3000_v40 = vadd.f32 %v3322_v31, %v3224_v20 }
 0x995   : > { %3046 = vst [vmem:[%s433_s20] sm:$0xff] %v3044_v35  ;;  %v3041_v44 = vadd.f32 %v3344_v41, %v3000_v40 }
 0x997   : > { %v3045_v39 = vadd.f32 %v3041_v44, %v4255_v42 }
 0x999   : > { %3047 = vst [vmem:[%s433_s20 + $0x8] sm:$0xff] %v3045_v39 }
 0x99a   : > { %3685 = shalt.err (!%p3682_p3)
}
 0x99b   : > { %s3686_s15 = scalar_lea.hbm %s4490_s24, 256  ;;  %s3690_s0 = scalar_lea.hbm %s4545_s13, 512 }
 0x99c   : > { %p3687_p4 = scmp.ne.s32.totalorder %s4490_s24, %s3686_s15  ;;  %p3691_p9 = scmp.lt.s32.totalorder %s4490_s24, %s4545_s13 }
 0x99d   : > { %p3692_p10 = scmp.lt.s32.totalorder %s3690_s0, %s3686_s15 }
 0x99e   : > { %p3688_p7 = pnand %p3687_p4, %p3853_p5 }
 0x99f   : > { %p3693_p11 = por %p3692_p10, %p3691_p9 }
 0x9a0   : > { %p3689_p8 = pneg %p3688_p7 }
 0x9a2   : > { %p3694_p12 = pnand %p3693_p11, %p3689_p8 }
 0x9a4   : > { %3697 = shalt.err (!%p3694_p12)
}
 0x9a5   : > { %s3743_s27 = smov 128   ;;  %s3744_s30 = smov 8  }
 0x9a6   : > { %3445 = dma.vmem_to_hbm [thread:$0]  (%p3853_p5), %s4484_s21, 256, %s4490_s24, %s4492_s23, %s3743_s27, %s3743_s27, %s3744_s30  }
 0x9a7 PF: > { %p3451_p13 = scmp.ge.s32.totalorder %s3732_s28, 2  ;;  %s3077_s16 = sand.u32 1, %s3720_s25  }
 0x9a8   : > { %s3078_s15 = scalar_lea.sflag [#allocation3], %s3077_s16 }
 0x9a9   : > { %p3448_p0 = pnand %p3451_p13, %p3857_p6 }
 0x9ab   : > { %p3449_p1 = pneg %p3448_p0 }
 0x9ad   : > { %3715 = dma.done.wait (%p3449_p1), %s3078_s15, 256  }
 0x9ae   : > { %3717 = vsyncadd (%p3449_p1), %s3078_s15, 4294967040  ;;  %s4553_s20 = sld [smem:[#allocation5_spill]]  ;;  %p23_p2 = scmp.ge.s32.totalorder %s3840_s14, 4  }
 0x9af   : > { %s4554_s27 = sld [smem:[#allocation6_spill]]  ;;  %s4555_s25 = smov %s3724_s26 }
 0x9b0   : > { %s4557_s28 = smov %s3840_s14  ;;  %25 = sbr.rel (!%p23_p2) target bundleno = 5 (0x5), region = 107 }
 0x9b4   : > { %s4556_s26 = smov %s4553_s20 }
 0x9b5   :  { %3083 = vsyncpa [#allocation3], 1 }
 0x9b6   :  { %3085 = vsyncpa [#allocation3 + $0x1], 1 }

// kernel: bert_forward.2
= control target key start
LH: loop header
LB: loop body
LE: loop exit
PB: predicated region body
PF: predicated region fallthrough
CT: control target
= control target key end

     0   :  { %18 = vsyncpa [#allocation3], 0  ;;  %s4356_s0 = inlined_call_operand.vmem [shape: f32[2,16,128], index: 0, kind: input, shape index: {}]   ;;  %s4357_s1 = inlined_call_operand.vmem [shape: f32[1,128], index: 1, kind: input, shape index: {}]   ;;  %s4358_s2 = inlined_call_operand.vmem [shape: f32[1,128], index: 2, kind: input, shape index: {}]   ;;  %s4359_s3 = inlined_call_operand.hbm [shape: bf16[128,384], index: 3, kind: input, shape index: {}]   ;;  %s4360_s4 = inlined_call_operand.vmem [shape: f32[1,384], index: 4, kind: input, shape index: {}]   ;;  %s4361_s5 = inlined_call_operand.vmem [shape: bf16[4,32,128], index: 5, kind: input, shape index: {}]   ;;  %s4362_s6 = inlined_call_operand.vmem [shape: f32[1,128], index: 6, kind: input, shape index: {}]   ;;  %s4363_s7 = inlined_call_operand.vmem [shape: f32[1,128], index: 7, kind: input, shape index: {}]   ;;  %s4364_s8 = inlined_call_operand.vmem [shape: f32[1,128], index: 8, kind: input, shape index: {}]   ;;  %s4365_s9 = inlined_call_operand.hbm [shape: bf16[128,512], index: 9, kind: input, shape index: {}]   ;;  %s4366_s10 = inlined_call_operand.vmem [shape: f32[1,512], index: 10, kind: input, shape index: {}]   ;;  %s4367_s11 = inlined_call_operand.hbm [shape: bf16[512,128], index: 11, kind: input, shape index: {}]   ;;  %s4368_s12 = inlined_call_operand.vmem [shape: f32[1,128], index: 12, kind: input, shape index: {}]   ;;  %s4369_s13 = inlined_call_operand.vmem [shape: f32[2,16,128], index: 13, kind: output, shape index: {}]  }
   0x1   :  { %19 = vsyncpa [#allocation5], 0  ;;  %s3918_s25 = smov 0  }
   0x2 LB: > { %s3831_s26 = smov [#allocation4]   ;;  %s3924_s28 = sadd.s32 4294967295, %s3829_s25   ;;  %s3829_s25 = sphi %s3918_s25, %s25_s25  }
   0x3   : > { %s380_s27 = sshll.u32 %s3831_s26, 4  ;;  %p3182_p0 = scmp.ge.s32.totalorder %s3829_s25, 1  ;;  %s381_s27 = int_to_ptr.vmem [resolvable:$true] %s380_s27 }
   0x4   : > { %p334_p1 = scmp.lt.s32.totalorder %s3829_s25, 3  ;;  %p3528_p2 = scmp.eq.s32.totalorder %s3924_s28, 0 }
   0x5   : > { %s3832_s30 = smov [#allocation2]   ;;  %s3833_s16 = smov [#allocation6]  }
   0x6   : > { %p3929_p3 = pnand %p3182_p0, %p334_p1  ;;  %s352_s14 = sshll.u32 %s3832_s30, 4  ;;  %s3935_s14 = int_to_ptr.vmem [resolvable:$true] %s352_s14 }
   0x7   : > { %s3943_s17 = sshll.u32 %s3833_s16, 4  ;;  %s3748_s18 = scalar_lea.vmem %s381_s27, 4096  ;;  %s397_s17 = int_to_ptr.vmem [resolvable:$true] %s3943_s17 }
   0x8   : > { %p3518_p4 = pneg %p3929_p3  ;;  %p3749_p7 = scmp.ne.s32.totalorder %s381_s27, %s3748_s18 }
   0x9   : > { %p3756_p10 = scmp.lt.s32.totalorder %s381_s27, %s381_s27  ;;  %p3757_p11 = scmp.lt.s32.totalorder %s3748_s18, %s3748_s18 }
   0xa   : > { %p3939_p5 = pnand %p3528_p2, %p3518_p4 }
   0xb   : > { %p3758_p12 = por %p3757_p11, %p3756_p10 }
   0xc   : > { %p3739_p6 = pneg %p3939_p5 }
   0xe   : > { %p3751_p8 = pnand %p3749_p7, %p3739_p6 }
  0x10   : > { %p3752_p9 = pneg %p3751_p8 }
  0x12   : > { %p3759_p13 = pnand %p3758_p12, %p3752_p9 }
  0x14   : > { %3762 = shalt.err (!%p3759_p13)
}
  0x15   : > { %s3834_s19 = smov 256   ;;  %s3835_s20 = smov 16  }
  0x16   : > { %3524 = dma.hbm_to_vmem [thread:$0]  (!%p3939_p5), %s4365_s9, 4096, %s381_s27, [#allocation5], %s3834_s19, %s3834_s19, %s3835_s20  }
  0x17   : > { %s3774_s23 = scalar_lea.vmem %s3935_s14, 3072  ;;  %p3782_p7 = scmp.lt.s32.totalorder %s3935_s14, %s3935_s14 }
  0x18   : > { %p3775_p0 = scmp.ne.s32.totalorder %s3935_s14, %s3774_s23  ;;  %p3783_p8 = scmp.lt.s32.totalorder %s3774_s23, %s3774_s23 }
  0x1a   : > { %p3777_p1 = pnand %p3775_p0, %p3739_p6  ;;  %p3784_p9 = por %p3783_p8, %p3782_p7 }
  0x1c   : > { %p3778_p4 = pneg %p3777_p1 }
  0x1e   : > { %p3785_p10 = pnand %p3784_p9, %p3778_p4 }
  0x20   : > { %3788 = shalt.err (!%p3785_p10)
}
  0x21   : > { %s3836_s24 = smov 192   ;;  %s3837_s26 = smov 12  }
  0x22   : > { %3521 = dma.hbm_to_vmem [thread:$0]  (!%p3939_p5), %s4359_s3, 3072, %s3935_s14, [#allocation3], %s3836_s24, %s3836_s24, %s3837_s26  }
  0x23   : > { %s3800_s16 = scalar_lea.vmem %s397_s17, 4096  ;;  %p3808_p0 = scmp.lt.s32.totalorder %s397_s17, %s397_s17 }
  0x24   : > { %p3801_p11 = scmp.ne.s32.totalorder %s397_s17, %s3800_s16  ;;  %p3809_p1 = scmp.lt.s32.totalorder %s3800_s16, %s3800_s16 }
  0x26   : > { %p3803_p12 = pnand %p3801_p11, %p3739_p6  ;;  %p3810_p4 = por %p3809_p1, %p3808_p0 }
  0x28   : > { %p3804_p13 = pneg %p3803_p12 }
  0x2a   : > { %p3811_p7 = pnand %p3810_p4, %p3804_p13 }
  0x2c   : > { %3814 = shalt.err (!%p3811_p7)
}
  0x2d   : > { %s3838_s18 = smov 64   ;;  %s3839_s19 = smov 4  }
  0x2e   : > { %3527 = dma.hbm_to_vmem [thread:$0]  (!%p3939_p5), %s4367_s11, 4096, %s397_s17, [#allocation5], %s3838_s18, %s3838_s18, %s3839_s19  }
  0x2f   : > { %423 = sbr.rel (%p3929_p3) target bundleno = 2492 (0x9bc), region = 72 }
  0x34   : > { %3820 = dma.done.wait (%p3528_p2), [#allocation3], 3072  }
  0x35   : > { %3822 = vsyncadd (%p3528_p2), [#allocation3], 4294964224 }
  0x36   : > { %3824 = dma.done.wait (%p3528_p2), [#allocation5], 8192  }
  0x37   : > { %3826 = vsyncadd (%p3528_p2), [#allocation5], 4294959104  ;;  %p475_p6 = scmp.lt.s32.totalorder %s3924_s28, 1  ;;  %v3559_v10 = vld [vmem:[#allocation2 + $0xac] ss:$12 sps:$4 sm:$0xff]   ;;  %v3840_v13 = vmov 0.0   ;;  %v582_v63 = vlaneseq }
  0x38   : > { %v3561_v11 = vld [vmem:[#allocation2 + $0xa8] ss:$12 sps:$4 sm:$0xff]   ;;  %v3562_v12 = vld [vmem:[#allocation2 + $0xb0] ss:$12 sps:$4 sm:$0xff]   ;;  %725 = vmatprep.subr.bf16.mxu0 %v3559_v10  ;;  %3406 = vmatprep.subr.bf16.mxu1 %v3840_v13  ;;  %v3566_v16 = vld [vmem:[#allocation2 + $0x98] ss:$12 sps:$4 sm:$0xff]  }
  0x39   : > { %s4373_s28 = smov (!%p475_p6, %s3924_s28), 1  ;;  %726 = vmatpush1.bf16.msra.mxu0 %v3561_v11  ;;  %3407 = vmatpush3.bf16.msra.mxu1 %v3562_v12  ;;  %v3563_v14 = vld [vmem:[#allocation2 + $0x94] ss:$12 sps:$4 sm:$0xff]   ;;  %v3565_v15 = vld [vmem:[#allocation2 + $0x90] ss:$12 sps:$4 sm:$0xff]   ;;  %v3841_v30 = vmov 0  }
  0x3a   : > { %s3323_s29 = sshll.u32 %s4373_s28, 4  ;;  %3408 = vmatprep.subr.bf16.mxu1 %v3840_v13  ;;  %727 = vmatprep.subr.bf16.mxu0 %v3563_v14  ;;  %v3567_v17 = vld [vmem:[#allocation2 + $0x7c] ss:$12 sps:$4 sm:$0xff]   ;;  %v3569_v18 = vld [vmem:[#allocation2 + $0x78] ss:$12 sps:$4 sm:$0xff]   ;;  %vm3842_vm0 = vmmov 0  }
  0x3b   : > { %s3997_s17 = scalar_lea.vmem %s4356_s0, %s3323_s29  ;;  %v3570_v19 = vld [vmem:[#allocation2 + $0x80] ss:$12 sps:$4 sm:$0xff]   ;;  %v3571_v20 = vld [vmem:[#allocation2 + $0x64] ss:$12 sps:$4 sm:$0xff]   ;;  %v3574_v22 = vld [vmem:[#allocation2 + $0x68] ss:$12 sps:$4 sm:$0xff]   ;;  %757 = vmatprep.mubr.bf16.mxu0 %v3841_v30  ;;  %3422 = vmatprep.mubr.msk.bf16.mxu1 %vm3842_vm0, %v3840_v13  ;;  %s484_s21 = scalar_lea.vmem %s4369_s13, %s3323_s29 }
  0x3c   : > { %v490_v0 = vld [vmem:[%s3997_s17] sm:$0xff]  ;;  %v491_v1 = vld [vmem:[%s3997_s17 + $0x8] sm:$0xff]  ;;  %v3578_v25 = vld [vmem:[#allocation2 + $0x50] ss:$12 sps:$4 sm:$0xff]   ;;  %s3843_s16 = smov 64   ;;  %s3844_s18 = smov 96  }
  0x3d   : > { %494 = vadd.xlane.f32.xlu0 %v490_v0  ;;  %728 = vmatpush1.bf16.msra.mxu0 %v3565_v15  ;;  %v3573_v21 = vld [vmem:[#allocation2 + $0x60] ss:$12 sps:$4 sm:$0xff]   ;;  %v3577_v24 = vld [vmem:[#allocation2 + $0x48] ss:$12 sps:$4 sm:$0xff]   ;;  %v3581_v27 = vld [vmem:[#allocation2 + $0x30] ss:$12 sps:$4 sm:$0xff]  }
  0x3e   : > { %3409 = vmatpush3.bf16.msra.mxu1 %v3566_v16  ;;  %729 = vmatprep.subr.bf16.mxu0 %v3567_v17  ;;  %v3575_v23 = vld [vmem:[#allocation2 + $0x4c] ss:$12 sps:$4 sm:$0xff]   ;;  %v3579_v26 = vld [vmem:[#allocation2 + $0x34] ss:$12 sps:$4 sm:$0xff]   ;;  %v3583_v29 = vld [vmem:[#allocation2 + $0x1c] ss:$12 sps:$4 sm:$0xff]  }
  0x3f   : > { %3410 = vmatprep.subr.bf16.mxu1 %v3840_v13  ;;  %v3582_v28 = vld [vmem:[#allocation2 + $0x38] ss:$12 sps:$4 sm:$0xff]   ;;  %v3586_v32 = vld [vmem:[#allocation2 + $0x20] ss:$12 sps:$4 sm:$0xff]   ;;  %v3590_v35 = vld [vmem:[#allocation2 + $0x8] ss:$12 sps:$4 sm:$0xff]  }
  0x40   : > { %v3585_v31 = vld [vmem:[#allocation2 + $0x18] ss:$12 sps:$4 sm:$0xff]   ;;  %v3589_v34 = vld [vmem:[#allocation2] ss:$12 sps:$4 sm:$0xff]   ;;  %s3845_s19 = smov 32   ;;  %vm1640_vm5 = vcmask 261120  }
  0x41   : > { %496 = vadd.xlane.f32.xlu0 %v491_v1  ;;  %730 = vmatpush1.bf16.msra.mxu0 %v3569_v18  ;;  %v3587_v33 = vld [vmem:[#allocation2 + $0x4] ss:$12 sps:$4 sm:$0xff]   ;;  %v3195_v52 = vld [vmem:[%s4357_s1] ss:$0 sm:$0xff]  ;;  %vm1837_vm6 = vcmask 130048  }
  0x42   : > { %3411 = vmatpush3.bf16.msra.mxu1 %v3570_v19  ;;  %731 = vmatprep.subr.bf16.mxu0 %v3571_v20  ;;  %v3196_v58 = vld [vmem:[%s4358_s2] ss:$0 sm:$0xff] }
  0x43   : > { %3412 = vmatprep.subr.bf16.mxu1 %v3840_v13 }
  0x45   : > { %732 = vmatpush1.bf16.msra.mxu0 %v3573_v21 }
  0x46   : > { %3413 = vmatpush3.bf16.msra.mxu1 %v3574_v22  ;;  %733 = vmatprep.subr.bf16.mxu0 %v3575_v23 }
  0x47   : > { %3414 = vmatprep.subr.bf16.mxu1 %v3840_v13 }
  0x49   : > { %734 = vmatpush1.bf16.msra.mxu0 %v3577_v24 }
  0x4a   : > { %3415 = vmatpush3.bf16.msra.mxu1 %v3578_v25  ;;  %735 = vmatprep.subr.bf16.mxu0 %v3579_v26  ;;  %v3846_v26 = vmov 1983009808  }
  0x4b   : > { %3416 = vmatprep.subr.bf16.mxu1 %v3840_v13 }
  0x4d   : > { %736 = vmatpush1.bf16.msra.mxu0 %v3581_v27  ;;  %v860_v27 = vunpack.c.l.s4 %v3846_v26 }
  0x4e   : > { %3417 = vmatpush3.bf16.msra.mxu1 %v3582_v28  ;;  %737 = vmatprep.subr.bf16.mxu0 %v3583_v29  ;;  %v3847_v29 = vmov 1934713408  }
  0x4f   : > { %3418 = vmatprep.subr.bf16.mxu1 %v3840_v13  ;;  %v861_v28 = vunpack.c.0.s8 %v860_v27 }
  0x51   : > { %738 = vmatpush1.bf16.msra.mxu0 %v3585_v31  ;;  %v891_v31 = vunpack.c.l.s4 %v3847_v29 }
  0x52   : > { %3419 = vmatpush3.bf16.msra.mxu1 %v3586_v32  ;;  %739 = vmatprep.subr.bf16.mxu0 %v3587_v33  ;;  %v4058_v32 = vpack.i.b16 %v3841_v30, %v3841_v30 }
  0x53   : > { %3420 = vmatprep.subr.bf16.mxu1 %v3840_v13 }
  0x55   : > { %740 = vmatpush1.bf16.msra.mxu0 %v3589_v34 }
  0x56   : > { %3421 = vmatpush3.bf16.msra.mxu1 %v3590_v35  ;;  %3426 = vmatprep.subr.bf16.mxu0 %v3840_v13 }
  0x57   : > { %3432 = vmatprep.subr.bf16.mxu1 %v3840_v13 }
  0xc6   : > { %v495_v2 = vpop.xlane.xlu0 %494 }
  0xc7   : > { %v499_v3 = vmul.f32 0.0078125, %v495_v2  ;;  %v580_v2 = vld [vmem:[%s4360_s4] sm:$0x7] }
  0xc9   : > { %v4001_v4 = vsub.f32 %v490_v0, %v499_v3  ;;  %v4034_v0 = vshrl.u32 %v582_v63, 7 }
  0xca   : > { %v497_v5 = vpop.xlane.xlu0 %496 }
  0xcb   : > { %v500_v6 = vmul.f32 0.0078125, %v497_v5  ;;  %v503_v7 = vmul.f32 %v4001_v4, %v4001_v4  ;;  %v517_v54 = vmul.f32 %v3195_v52, %v4001_v4  ;;  %v588_v3 = vsub.s32 1, %v4034_v0 }
  0xcd   : > { %v4005_v8 = vsub.f32 %v491_v1, %v500_v6  ;;  %505 = vadd.xlane.f32.xlu1 %v503_v7  ;;  %v592_v1 = vsub.s32 2, %v4034_v0  ;;  %v589_v10 = vrot.slane %v580_v2, %v588_v3 }
  0xcf   : > { %v504_v9 = vmul.f32 %v4005_v8, %v4005_v8  ;;  %v518_v55 = vmul.f32 %v3195_v52, %v4005_v8  ;;  %v593_v6 = vrot.slane %v580_v2, %v592_v1 }
  0xd1   : > { %507 = vadd.xlane.f32.xlu1 %v504_v9  ;;  %v584_v9 = vsub.s32 0, %v4034_v0 }
  0xd3   : > { %v585_v18 = vrot.slane %v580_v2, %v584_v9 }
 0x156   : > { %v506_v36 = vpop.xlane.xlu1 %505 }
 0x157   : > { %v509_v37 = vmul.f32 0.007874016, %v506_v36 }
 0x159   : > { %3679 = vrsqrt.f32 %v509_v37  ;;  %vm521_vm1 = vcmp.eq.f32.partialorder %v509_v37, inf  ;;  %v524_v42 = vand.u32 2147483648, %v509_v37  ;;  %vm523_vm2 = vcmp.eq.f32.partialorder %v509_v37, 0.0 }
 0x15a   : > { %v508_v38 = vpop.xlane.xlu1 %507 }
 0x15b   : > { %v510_v39 = vmul.f32 0.007874016, %v508_v38  ;;  %v4061_v38 = vsub.s32 %v861_v28, %v4034_v0 }
 0x15d   : > { %3681 = vrsqrt.f32 %v510_v39  ;;  %vm528_vm3 = vcmp.eq.f32.partialorder %v510_v39, inf  ;;  %v531_v48 = vand.u32 2147483648, %v510_v39  ;;  %vm530_vm4 = vcmp.eq.f32.partialorder %v510_v39, 0.0 }
 0x166   : > { %v3680_v40 = vpop.eup %3679 }
 0x167   : > { %v520_v41 = vmul.f32 %v3680_v40, %v509_v37 }
 0x169   : > { %v522_v43 = vsel %vm521_vm1, %v509_v37, %v520_v41 }
 0x16a   : > { %v3682_v44 = vpop.eup %3681  ;;  %v525_v45 = vsel %vm523_vm2, %v524_v42, %v522_v43 }
 0x16b   : > { %v533_v46 = vadd.f32 1e-06, %v525_v45  ;;  %v527_v47 = vmul.f32 %v3682_v44, %v510_v39 }
 0x16d   : > { %3683 = vrcp.f32 %v533_v46  ;;  %v529_v49 = vsel %vm528_vm3, %v510_v39, %v527_v47  ;;  %v892_v39 = vunpack.c.0.s8 %v891_v31 }
 0x16e   : > { %v532_v50 = vsel %vm530_vm4, %v531_v48, %v529_v49 }
 0x16f   : > { %v534_v51 = vadd.f32 1e-06, %v532_v50  ;;  %v4066_v47 = vsub.s32 %v892_v39, %v4034_v0 }
 0x171   : > { %3685 = vrcp.f32 %v534_v51 }
 0x17a   : > { %v3684_v53 = vpop.eup %3683 }
 0x17b   : > { %v536_v56 = vmul.f32 %v3684_v53, %v517_v54 }
 0x17d   : > { %v545_v60 = vadd.f32 %v3196_v58, %v536_v56 }
 0x17e   : > { %v3686_v57 = vpop.eup %3685 }
 0x17f   : > { %v538_v59 = vmul.f32 %v3686_v57, %v518_v55 }
 0x181   : > { %v546_v61 = vadd.f32 %v3196_v58, %v538_v59 }
 0x183   : > { %v547_v62 = vpack.c.bf16 %v546_v61, %v545_v60 }
 0x185   : > { %758 = vmatmul.mubr.bf16.vlgmr.msra.gmra.mxu0 %v547_v62  ;;  %3423 = vmatmul.mubr.bf16.vlgmr.msra.gmra.mxu1 %v547_v62 }
 0x186   : > { %3428 = vmatprep.mubr.msk.bf16.mxu0 %vm3842_vm0, %v3840_v13  ;;  %3434 = vmatprep.mubr.msk.bf16.mxu1 %vm3842_vm0, %v3840_v13 }
 0x245   : > { %v759_v4 = vpop.f32.mrf.mxu0  ;;  %v802_v5 = vpop.f32.mrf.mxu1 }
 0x246   : > { %v803_v14 = vadd.f32 %v802_v5, %v593_v6  ;;  %v760_v24 = vadd.f32 %v759_v4, %v585_v18 }
 0x247   : > { %v761_v7 = vpop.f32.mrf.mxu0  ;;  %v3424_v8 = vpop.f32.mrf.mxu1 }
 0x248   : > { %v762_v19 = vadd.f32 %v761_v7, %v589_v10 }
 0x249   : > { %v763_v11 = vpop.f32.mrf.mxu0  ;;  %v805_v12 = vpop.f32.mrf.mxu1 }
 0x24a   : > { %v806_v15 = vadd.f32 %v805_v12, %v593_v6  ;;  %v764_v22 = vadd.f32 %v763_v11, %v585_v18 }
 0x24b   : > { %v765_v16 = vpop.f32.mrf.mxu0  ;;  %v3425_v17 = vpop.f32.mrf.mxu1 }
 0x24c   : > { %v4048_v20 = vpack.c.bf16 %v806_v15, %v803_v14  ;;  %v766_v21 = vadd.f32 %v765_v16, %v589_v10  ;;  %v809_v25 = vpack.c.bf16 %v764_v22, %v760_v24 }
 0x24e   : > { %v810_v23 = vpack.c.bf16 %v766_v21, %v762_v19  ;;  %v840_v55 = vshrl.u32 %v809_v25, 16 }
 0x250   : > { %1105 = vrot.lane.b32.xlu1 %v810_v23, %s3843_s16  ;;  %1103 = vrot.lane.b32.xlu0 %v810_v23, %s3844_s18  ;;  %v1113_v36 = vshrl.u32 %v810_v23, 16 }
 0x254   : > { %1107 = vrot.lane.b32.xlu1 %v810_v23, %s3845_s19  ;;  %832 = vrot.lane.b32.xlu0 %v809_v25, %s3843_s16 }
 0x258   : > { %830 = vrot.lane.b32.xlu1 %v809_v25, %s3844_s18 }
 0x25c   : > { %834 = vrot.lane.b32.xlu1 %v809_v25, %s3845_s19 }
 0x2c2   : > { %v1106_v33 = vpop.permute.xlu1 %1105  ;;  %v1104_v34 = vpop.permute.xlu0 %1103 }
 0x2c3   : > { %v1111_v35 = vpack.i.b16 %v1104_v34, %v810_v23  ;;  %v1114_v37 = vshrl.u32 %v1104_v34, 16  ;;  %v1121_v45 = vshrl.u32 %v1106_v33, 16 }
 0x2c5   : > { %v1115_v40 = vpack.i.b16 %v1114_v37, %v1113_v36  ;;  %v1125_v41 = vcombine.high %v1111_v35, %v4058_v32  ;;  %v1132_v48 = vrot.slane %v1111_v35, %v4061_v38 }
 0x2c6   : > { %v1108_v42 = vpop.permute.xlu1 %1107  ;;  %v833_v17 = vpop.permute.xlu0 %832 }
 0x2c7   : > { %v1191_v43 = vcombine.high %v1115_v40, %v4058_v32  ;;  %v1119_v44 = vpack.i.b16 %v1108_v42, %v1106_v33  ;;  %v1122_v46 = vshrl.u32 %v1108_v42, 16  ;;  %v1139_v51 = vrot.slane %v1125_v41, %v4061_v38 }
 0x2c8   : > { %v1198_v52 = vrot.slane %v1115_v40, %v4061_v38  ;;  %v848_v29 = vshrl.u32 %v833_v17, 16 }
 0x2c9   : > { %v1140_v49 = vcombine.high %v1119_v44, %v4058_v32  ;;  %v1147_v50 = vrot.slane %v1119_v44, %v4061_v38  ;;  %v1123_v53 = vpack.i.b16 %v1122_v46, %v1121_v45  ;;  %v1205_v56 = vrot.slane %v1191_v43, %v4061_v38 }
 0x2ca   : > { %v831_v54 = vpop.permute.xlu1 %830 }
 0x2cb   : > { %v1154_v57 = vrot.slane %v1140_v49, %v4061_v38  ;;  %v1155_v58 = vcombine.low %v1132_v48, %v1147_v50  ;;  %v1156_v59 = vcombine.high %v1132_v48, %v1147_v50  ;;  %v1206_v60 = vcombine.high %v1123_v53, %v4058_v32 }
 0x2cc   : > { %v1213_v61 = vrot.slane %v1123_v53, %v4061_v38  ;;  %v838_v62 = vpack.i.b16 %v831_v54, %v809_v25  ;;  %v841_v63 = vshrl.u32 %v831_v54, 16 }
 0x2cd   : > { %v1163_v2 = vrot.slane %v1155_v58, %v4066_v47  ;;  %v1170_v4 = vrot.slane %v1156_v59, %v4066_v47  ;;  %v1171_v5 = vcombine.low %v1139_v51, %v1154_v57  ;;  %v1172_v6 = vcombine.high %v1139_v51, %v1154_v57 }
 0x2ce   : > { %v1220_v7 = vrot.slane %v1206_v60, %v4061_v38  ;;  %v1221_v8 = vcombine.low %v1198_v52, %v1213_v61  ;;  %v1222_v10 = vcombine.high %v1198_v52, %v1213_v61  ;;  %v842_v11 = vpack.i.b16 %v841_v63, %v840_v55  ;;  %v835_v25 = vpop.permute.xlu1 %834 }
 0x2cf   : > { %v1179_v12 = vrot.slane %v1171_v5, %v4066_v47  ;;  %v1186_v14 = vrot.slane %v1172_v6, %v4066_v47  ;;  %v1257_v15 = vcombine.low %v1163_v2, %v1170_v4  ;;  %v3225_v16 = vcombine.high %v1163_v2, %v1170_v4 }
 0x2d0   : > { %v1229_v18 = vrot.slane %v1221_v8, %v4066_v47  ;;  %v1236_v19 = vrot.slane %v1222_v10, %v4066_v47  ;;  %v1237_v21 = vcombine.low %v1205_v56, %v1220_v7  ;;  %v1238_v22 = vcombine.high %v1205_v56, %v1220_v7 }
 0x2d1   : > { %v1273_v23 = vcombine.low %v1179_v12, %v1186_v14  ;;  %v3226_v24 = vcombine.high %v1179_v12, %v1186_v14  ;;  %v4087_v28 = vrot.slane %v1257_v15, %v4061_v38  ;;  %v1272_v31 = vrot.slane %v3225_v16, %v4061_v38 }
 0x2d2   : > { %v1245_v26 = vrot.slane %v1237_v21, %v4066_v47  ;;  %v1252_v27 = vrot.slane %v1238_v22, %v4066_v47  ;;  %v1307_v33 = vcombine.low %v1229_v18, %v1236_v19  ;;  %v858_v34 = vcombine.high %v838_v62, %v4058_v32 }
 0x2d3   : > { %v924_v35 = vcombine.high %v842_v11, %v4058_v32  ;;  %v3227_v36 = vcombine.high %v1229_v18, %v1236_v19  ;;  %v865_v37 = vrot.slane %v838_v62, %v4061_v38  ;;  %v846_v39 = vpack.i.b16 %v835_v25, %v833_v17 }
 0x2d4   : > { %v849_v40 = vshrl.u32 %v835_v25, 16  ;;  %v1323_v41 = vcombine.low %v1245_v26, %v1252_v27  ;;  %v931_v42 = vrot.slane %v842_v11, %v4061_v38  ;;  %v1280_v43 = vrot.slane %v1273_v23, %v4061_v38 }
 0x2d5   : > { %v1288_v44 = vrot.slane %v3226_v24, %v4061_v38  ;;  %v3228_v45 = vcombine.high %v1245_v26, %v1252_v27  ;;  %v873_v48 = vcombine.high %v846_v39, %v4058_v32  ;;  %v880_v49 = vrot.slane %v846_v39, %v4061_v38 }
 0x2d6   : > { %v850_v46 = vpack.i.b16 %v849_v40, %v848_v29  ;;  %v872_v50 = vrot.slane %v858_v34, %v4061_v38  ;;  %v938_v51 = vrot.slane %v924_v35, %v4061_v38  ;;  %v1289_v52 = vcombine.low %v4087_v28, %v1272_v31 }
 0x2d7   : > { %v1297_v53 = vcombine.low %v1280_v43, %v1288_v44  ;;  %v887_v54 = vrot.slane %v873_v48, %v4061_v38  ;;  %v888_v55 = vcombine.low %v865_v37, %v880_v49  ;;  %v889_v56 = vcombine.high %v865_v37, %v880_v49 }
 0x2d8   : > { %v939_v57 = vcombine.high %v850_v46, %v4058_v32  ;;  %v946_v58 = vrot.slane %v850_v46, %v4061_v38  ;;  %v1314_v59 = vrot.slane %v1307_v33, %v4061_v38  ;;  %v1322_v60 = vrot.slane %v3227_v36, %v4061_v38 }
 0x2d9   : > { %v1330_v61 = vrot.slane %v1323_v41, %v4061_v38  ;;  %v896_v62 = vrot.slane %v888_v55, %v4066_v47  ;;  %v903_v63 = vrot.slane %v889_v56, %v4066_v47  ;;  %v904_v2 = vcombine.low %v872_v50, %v887_v54 }
 0x2da   : > { %v905_v4 = vcombine.high %v872_v50, %v887_v54  ;;  %v953_v5 = vrot.slane %v939_v57, %v4061_v38  ;;  %v954_v6 = vcombine.low %v931_v42, %v946_v58  ;;  %v955_v7 = vcombine.high %v931_v42, %v946_v58 }
 0x2db   : > { %v1338_v8 = vrot.slane %v3228_v45, %v4061_v38  ;;  %v912_v10 = vrot.slane %v904_v2, %v4066_v47  ;;  %v990_v12 = vcombine.low %v896_v62, %v903_v63  ;;  %v3221_v14 = vcombine.high %v896_v62, %v903_v63 }
 0x2dc   : > { %v919_v11 = vrot.slane %v905_v4, %v4066_v47  ;;  %v962_v15 = vrot.slane %v954_v6, %v4066_v47  ;;  %v969_v16 = vrot.slane %v955_v7, %v4066_v47  ;;  %v970_v17 = vcombine.low %v938_v51, %v953_v5 }
 0x2dd   : > { %v971_v18 = vcombine.high %v938_v51, %v953_v5  ;;  %v997_v19 = vrot.slane %v990_v12, %v4061_v38  ;;  %v1005_v21 = vrot.slane %v3221_v14, %v4061_v38  ;;  %v1304_v31 = vrot.slane %v1297_v53, %v4066_v47 }
 0x2de   : > { %v1006_v22 = vcombine.low %v912_v10, %v919_v11  ;;  %v3222_v23 = vcombine.high %v912_v10, %v919_v11  ;;  %v978_v24 = vrot.slane %v970_v17, %v4066_v47  ;;  %v1040_v26 = vcombine.low %v962_v15, %v969_v16 }
 0x2df   : > { %v985_v25 = vrot.slane %v971_v18, %v4066_v47  ;;  %v3223_v27 = vcombine.high %v962_v15, %v969_v16  ;;  %v1339_v33 = vcombine.low %v1314_v59, %v1322_v60  ;;  %v1296_v40 = vrot.slane %v1289_v52, %v4066_v47 }
 0x2e0   : > { %v1013_v28 = vrot.slane %v1006_v22, %v4061_v38  ;;  %v1021_v29 = vrot.slane %v3222_v23, %v4061_v38  ;;  %v1047_v34 = vrot.slane %v1040_v26, %v4061_v38  ;;  %v1347_v41 = vcombine.low %v1330_v61, %v1338_v8 }
 0x2e1   : > { %v1055_v35 = vrot.slane %v3223_v27, %v4061_v38  ;;  %v1056_v36 = vcombine.low %v978_v24, %v985_v25  ;;  %v3224_v37 = vcombine.high %v978_v24, %v985_v25  ;;  %v1022_v42 = vcombine.low %v997_v19, %v1005_v21 }
 0x2e2   : > { %v1030_v39 = vcombine.low %v1013_v28, %v1021_v29  ;;  %v1305_v46 = vcombine.low %v1296_v40, %v1304_v31  ;;  %v1346_v48 = vrot.slane %v1339_v33, %v4066_v47  ;;  %v1354_v49 = vrot.slane %v1347_v41, %v4066_v47 }
 0x2e3   : > { %v1063_v43 = vrot.slane %v1056_v36, %v4061_v38  ;;  %v1071_v44 = vrot.slane %v3224_v37, %v4061_v38  ;;  %v1072_v45 = vcombine.low %v1047_v34, %v1055_v35  ;;  %v1029_v54 = vrot.slane %v1022_v42, %v4066_v47 }
 0x2e4   : > { %v1355_v51 = vcombine.low %v1346_v48, %v1354_v49  ;;  %v1037_v53 = vrot.slane %v1030_v39, %v4066_v47  ;;  %v1360_v57 = vshrl.u32 %v1305_v46, 16  ;;  %v1356_v59 = vcombine.high %v1346_v48, %v1354_v49 }
 0x2e5   : > { %v1080_v50 = vcombine.low %v1063_v43, %v1071_v44  ;;  %v1079_v52 = vrot.slane %v1072_v45, %v4066_v47  ;;  %v1306_v2 = vcombine.high %v1296_v40, %v1304_v31 }
 0x2e6   : > { %v1359_v56 = vpack.i.b16 %v1355_v51, %v1305_v46  ;;  %v1361_v58 = vshrl.u32 %v1355_v51, 16  ;;  %v1038_v63 = vcombine.low %v1029_v54, %v1037_v53  ;;  %v1367_v6 = vshrl.u32 %v1356_v59, 16 }
 0x2e7   : > { %v1087_v55 = vrot.slane %v1080_v50, %v4066_v47  ;;  %v1365_v8 = vpack.i.b16 %v1356_v59, %v1306_v2  ;;  %v1366_v11 = vshrl.u32 %v1306_v2, 16  ;;  %v1039_v18 = vcombine.high %v1029_v54, %v1037_v53 }
 0x2e8   : > { %v1645_v61 = vsel %vm1640_vm5, %v1359_v56, 0  ;;  %v1362_v62 = vpack.i.b16 %v1361_v58, %v1360_v57  ;;  %v1093_v10 = vshrl.u32 %v1038_v63, 16 }
 0x2e9   : > { %v1088_v60 = vcombine.low %v1079_v52, %v1087_v55  ;;  %3427 = vmatpush3.bf16.xpose.msra.mxu0 %v1645_v61  ;;  %v1368_v14 = vpack.i.b16 %v1367_v6, %v1366_v11  ;;  %v1739_v15 = vsel %vm1640_vm5, %v1365_v8, 0  ;;  %v1089_v16 = vcombine.high %v1079_v52, %v1087_v55 }
 0x2ea   : > { %v1692_v4 = vsel %vm1640_vm5, %v1362_v62, 0  ;;  %3438 = vmatprep.subr.bf16.mxu0 %v3840_v13  ;;  %v1099_v22 = vshrl.u32 %v1039_v18, 16 }
 0x2eb   : > { %v1094_v5 = vshrl.u32 %v1088_v60, 16  ;;  %3433 = vmatpush3.bf16.xpose.msra.mxu1 %v1692_v4  ;;  %v1092_v7 = vpack.i.b16 %v1088_v60, %v1038_v63  ;;  %v1786_v17 = vsel %vm1640_vm5, %v1368_v14, 0  ;;  %v1100_v19 = vshrl.u32 %v1089_v16, 16 }
 0x2ec   : > { %3444 = vmatprep.subr.bf16.mxu1 %v3840_v13  ;;  %v1098_v21 = vpack.i.b16 %v1089_v16, %v1039_v18 }
 0x2ed   : > { %v1095_v12 = vpack.i.b16 %v1094_v5, %v1093_v10  ;;  %v1101_v23 = vpack.i.b16 %v1100_v19, %v1099_v22 }
 0x2f0   : > { %3429 = vmatmul.mubr.msk.bf16.vlgmr.msra.gmra.mxu0 %vm1640_vm5, %v1092_v7 }
 0x2f1   : > { %3439 = vmatpush3.bf16.xpose.msra.mxu0 %v1739_v15  ;;  %3440 = vmatprep.mubr.msk.bf16.mxu0 %vm3842_vm0, %v3840_v13 }
 0x2f2   : > { %3435 = vmatmul.mubr.msk.bf16.vlgmr.msra.gmra.mxu1 %vm1640_vm5, %v1095_v12  ;;  %3450 = vmatprep.subr.bf16.mxu0 %v3840_v13 }
 0x2f3   : > { %3445 = vmatpush3.bf16.xpose.msra.mxu1 %v1786_v17  ;;  %3446 = vmatprep.mubr.msk.bf16.mxu1 %vm3842_vm0, %v3840_v13 }
 0x2f4   : > { %3456 = vmatprep.subr.bf16.mxu1 %v3840_v13 }
 0x2f8   : > { %3441 = vmatmul.mubr.msk.bf16.vlgmr.msra.gmra.mxu0 %vm1640_vm5, %v1098_v21 }
 0x2f9   : > { %3452 = vmatprep.mubr.msk.bf16.mxu0 %vm3842_vm0, %v3840_v13 }
 0x2fa   : > { %3447 = vmatmul.mubr.msk.bf16.vlgmr.msra.gmra.mxu1 %vm1640_vm5, %v1101_v23 }
 0x2fb   : > { %3458 = vmatprep.mubr.msk.bf16.mxu1 %vm3842_vm0, %v3840_v13 }
 0x3b0   : > { %v1681_v24 = vpop.f32.mrf.mxu0 }
 0x3b1   : > { %v1829_v25 = vmul.f32 0.17677669, %v1681_v24 }
 0x3b2   : > { %v3430_v26 = vpop.f32.mrf.mxu0  ;;  %v1728_v27 = vpop.f32.mrf.mxu1 }
 0x3b3   : > { %v1831_v28 = vmul.f32 0.17677669, %v1728_v27  ;;  %v1838_v29 = vsel %vm1837_vm6, %v1829_v25, -inf }
 0x3b4   : > { %v3436_v31 = vpop.f32.mrf.mxu1  ;;  %1839 = vmax.xlane.f32.xlu0 %v1838_v29  ;;  %v1684_v33 = vpop.f32.mrf.mxu0 }
 0x3b5   : > { %v1830_v34 = vmul.f32 0.17677669, %v1684_v33  ;;  %v1844_v39 = vsel %vm1837_vm6, %v1831_v28, -inf }
 0x3b6   : > { %v3431_v35 = vpop.f32.mrf.mxu0  ;;  %v1731_v36 = vpop.f32.mrf.mxu1 }
 0x3b7   : > { %v1832_v37 = vmul.f32 0.17677669, %v1731_v36  ;;  %v1841_v40 = vsel %vm1837_vm6, %v1830_v34, -inf }
 0x3b8   : > { %v3437_v41 = vpop.f32.mrf.mxu1  ;;  %1845 = vmax.xlane.f32.xlu0 %v1844_v39  ;;  %1842 = vmax.xlane.f32.xlu1 %v1841_v40  ;;  %v1775_v42 = vpop.f32.mrf.mxu0 }
 0x3b9   : > { %v4156_v45 = vmul.f32 0.17677669, %v1775_v42  ;;  %v1847_v46 = vsel %vm1837_vm6, %v1832_v37, -inf }
 0x3ba   : > { %v3442_v43 = vpop.f32.mrf.mxu0  ;;  %v1822_v44 = vpop.f32.mrf.mxu1 }
 0x3bb   : > { %v1835_v54 = vmul.f32 0.17677669, %v1822_v44  ;;  %v1850_v55 = vsel %vm1837_vm6, %v4156_v45, -inf }
 0x3bc   : > { %v3448_v48 = vpop.f32.mrf.mxu1  ;;  %1848 = vmax.xlane.f32.xlu0 %v1847_v46  ;;  %v1778_v49 = vpop.f32.mrf.mxu0 }
 0x3bd   : > { %v1834_v50 = vmul.f32 0.17677669, %v1778_v49  ;;  %v1856_v58 = vsel %vm1837_vm6, %v1835_v54, -inf }
 0x3be   : > { %v3443_v51 = vpop.f32.mrf.mxu0  ;;  %v1825_v53 = vpop.f32.mrf.mxu1 }
 0x3bf   : > { %v1836_v52 = vmul.f32 0.17677669, %v1825_v53  ;;  %v1853_v56 = vsel %vm1837_vm6, %v1834_v50, -inf  ;;  %v1380_v53 = vshrl.u32 %v4048_v20, 16 }
 0x3c0   : > { %v3449_v57 = vpop.f32.mrf.mxu1  ;;  %1851 = vmax.xlane.f32.xlu0 %v1850_v55  ;;  %1854 = vmax.xlane.f32.xlu1 %v1853_v56 }
 0x3c1   : > { %v1859_v59 = vsel %vm1837_vm6, %v1836_v52, -inf }
 0x3c4   : > { %1857 = vmax.xlane.f32.xlu0 %v1856_v58  ;;  %1860 = vmax.xlane.f32.xlu1 %v1859_v59 }
 0x3d5   : > { %1372 = vrot.lane.b32.xlu1 %v4048_v20, %s3843_s16 }
 0x3da   : > { %1370 = vrot.lane.b32.xlu0 %v4048_v20, %s3844_s18 }
 0x43d   : > { %v1840_v60 = vpop.xlane.xlu0 %1839 }
 0x43e   : > { %v1862_v61 = vsub.f32 %v1829_v25, %v1840_v60 }
 0x440   : > { %v1870_v62 = vmul.f32 1.442695, %v1862_v61 }
 0x441   : > { %v1846_v63 = vpop.xlane.xlu0 %1845  ;;  %v1843_v2 = vpop.xlane.xlu1 %1842 }
 0x442   : > { %3687 = vpow2.f32 %v1870_v62  ;;  %v1864_v4 = vsub.f32 %v1831_v28, %v1846_v63  ;;  %v1863_v5 = vsub.f32 %v1830_v34, %v1843_v2 }
 0x444   : > { %v1874_v6 = vmul.f32 1.442695, %v1864_v4  ;;  %v1872_v7 = vmul.f32 1.442695, %v1863_v5 }
 0x445   : > { %v1849_v8 = vpop.xlane.xlu0 %1848 }
 0x446   : > { %3689 = vpow2.f32 %v1874_v6  ;;  %v1865_v10 = vsub.f32 %v1832_v37, %v1849_v8 }
 0x447   : > { %3691 = vpow2.f32 %v1872_v7 }
 0x448   : > { %v1876_v11 = vmul.f32 1.442695, %v1865_v10 }
 0x449   : > { %v1852_v12 = vpop.xlane.xlu0 %1851  ;;  %v1855_v14 = vpop.xlane.xlu1 %1854 }
 0x44a   : > { %3693 = vpow2.f32 %v1876_v11  ;;  %v1867_v15 = vsub.f32 %v1834_v50, %v1855_v14  ;;  %v1866_v41 = vsub.f32 %v4156_v45, %v1852_v12 }
 0x44c   : > { %v1880_v21 = vmul.f32 1.442695, %v1867_v15  ;;  %v1878_v42 = vmul.f32 1.442695, %v1866_v41 }
 0x44d   : > { %v1858_v16 = vpop.xlane.xlu0 %1857  ;;  %v1861_v17 = vpop.xlane.xlu1 %1860 }
 0x44e   : > { %v1868_v18 = vsub.f32 %v1835_v54, %v1858_v16  ;;  %v1869_v23 = vsub.f32 %v1836_v52, %v1861_v17 }
 0x44f   : > { %v4168_v19 = vpop.eup %3687 }
 0x450   : > { %v1882_v22 = vmul.f32 1.442695, %v1868_v18  ;;  %v1886_v24 = vsel %vm1837_vm6, %v4168_v19, 0.0  ;;  %v1884_v27 = vmul.f32 1.442695, %v1869_v23 }
 0x451   : > { %1887 = vadd.xlane.f32.xlu0 %v1886_v24  ;;  %v1373_v46 = vpop.permute.xlu1 %1372  ;;  %v1371_v48 = vpop.permute.xlu0 %1370 }
 0x452   : > { %3695 = vpow2.f32 %v1882_v22  ;;  %v1381_v51 = vshrl.u32 %v1371_v48, 16  ;;  %v1378_v54 = vpack.i.b16 %v1371_v48, %v4048_v20  ;;  %v1388_v58 = vshrl.u32 %v1373_v46, 16 }
 0x453   : > { %v4172_v25 = vpop.eup %3689  ;;  %3697 = vpow2.f32 %v1880_v21 }
 0x454   : > { %v4174_v26 = vpop.eup %3691  ;;  %v1892_v28 = vsel %vm1837_vm6, %v4172_v25, 0.0  ;;  %3699 = vpow2.f32 %v1884_v27  ;;  %v1382_v55 = vpack.i.b16 %v1381_v51, %v1380_v53  ;;  %v1392_v56 = vcombine.high %v1378_v54, %v4058_v32 }
 0x455   : > { %1893 = vadd.xlane.f32.xlu0 %v1892_v28  ;;  %v1889_v29 = vsel %vm1837_vm6, %v4174_v26, 0.0  ;;  %3701 = vpow2.f32 %v1878_v42  ;;  %v1399_v61 = vrot.slane %v1378_v54, %v4061_v38 }
 0x456   : > { %1890 = vadd.xlane.f32.xlu1 %v1889_v29  ;;  %v1458_v62 = vcombine.high %v1382_v55, %v4058_v32  ;;  %v1406_v5 = vrot.slane %v1392_v56, %v4061_v38  ;;  %v1465_v11 = vrot.slane %v1382_v55, %v4061_v38 }
 0x457   : > { %v4180_v31 = vpop.eup %3693 }
 0x458   : > { %v1895_v33 = vsel %vm1837_vm6, %v4180_v31, 0.0  ;;  %v1472_v12 = vrot.slane %v1458_v62, %v4061_v38 }
 0x45a   : > { %1896 = vadd.xlane.f32.xlu1 %v1895_v33 }
 0x45f   : > { %v4184_v34 = vpop.eup %3695 }
 0x460   : > { %v1904_v35 = vsel %vm1837_vm6, %v4184_v34, 0.0  ;;  %v4188_v36 = vpop.eup %3697 }
 0x461   : > { %1905 = vadd.xlane.f32.xlu0 %v1904_v35  ;;  %v1901_v37 = vsel %vm1837_vm6, %v4188_v36, 0.0  ;;  %v4192_v39 = vpop.eup %3699 }
 0x462   : > { %v1907_v40 = vsel %vm1837_vm6, %v4192_v39, 0.0  ;;  %v4199_v43 = vpop.eup %3701 }
 0x463   : > { %v1898_v44 = vsel %vm1837_vm6, %v4199_v43, 0.0 }
 0x465   : > { %1902 = vadd.xlane.f32.xlu0 %v1901_v37 }
 0x469   : > { %1908 = vadd.xlane.f32.xlu0 %v1907_v40 }
 0x46b   : > { %1374 = vrot.lane.b32.xlu1 %v4048_v20, %s3845_s19 }
 0x48f   : > { %1899 = vadd.xlane.f32.xlu1 %v1898_v44 }
 0x4da   : > { %v1888_v50 = vpop.xlane.xlu0 %1887 }
 0x4db   : > { %3703 = vrcp.f32 %v1888_v50 }
 0x4de   : > { %v1894_v45 = vpop.xlane.xlu0 %1893 }
 0x4df   : > { %v1891_v49 = vpop.xlane.xlu1 %1890  ;;  %3705 = vrcp.f32 %v1894_v45 }
 0x4e0   : > { %3707 = vrcp.f32 %v1891_v49 }
 0x4e3   : > { %v1897_v52 = vpop.xlane.xlu1 %1896 }
 0x4e4   : > { %3709 = vrcp.f32 %v1897_v52 }
 0x4e7   : > { %v1375_v57 = vpop.permute.xlu1 %1374 }
 0x4e8   : > { %v1386_v59 = vpack.i.b16 %v1375_v57, %v1373_v46  ;;  %v1389_v60 = vshrl.u32 %v1375_v57, 16 }
 0x4ea   : > { %v1390_v63 = vpack.i.b16 %v1389_v60, %v1388_v58  ;;  %v1407_v2 = vcombine.high %v1386_v59, %v4058_v32  ;;  %v1414_v4 = vrot.slane %v1386_v59, %v4061_v38  ;;  %v1906_v20 = vpop.xlane.xlu0 %1905  ;;  %v3704_v60 = vpop.eup %3703 }
 0x4ec   : > { %v1421_v6 = vrot.slane %v1407_v2, %v4061_v38  ;;  %v1422_v7 = vcombine.low %v1399_v61, %v1414_v4  ;;  %v1423_v8 = vcombine.high %v1399_v61, %v1414_v4  ;;  %v1473_v10 = vcombine.high %v1390_v63, %v4058_v32  ;;  %v3706_v2 = vpop.eup %3705 }
 0x4ed   : > { %v1480_v14 = vrot.slane %v1390_v63, %v4061_v38 }
 0x4ee   : > { %v1430_v15 = vrot.slane %v1422_v7, %v4066_v47  ;;  %v1437_v16 = vrot.slane %v1423_v8, %v4066_v47  ;;  %v1438_v17 = vcombine.low %v1406_v5, %v1421_v6  ;;  %v1439_v18 = vcombine.high %v1406_v5, %v1421_v6  ;;  %v4219_v24 = vpop.xlane.xlu0 %1902  ;;  %v3708_v7 = vpop.eup %3707 }
 0x4ef   : > { %v1487_v21 = vrot.slane %v1473_v10, %v4061_v38  ;;  %v1488_v22 = vcombine.low %v1465_v11, %v1480_v14  ;;  %v1489_v23 = vcombine.high %v1465_v11, %v1480_v14 }
 0x4f0   : > { %v1446_v32 = vrot.slane %v1438_v17, %v4066_v47  ;;  %v1453_v27 = vrot.slane %v1439_v18, %v4066_v47  ;;  %v1524_v28 = vcombine.low %v1430_v15, %v1437_v16  ;;  %v3229_v29 = vcombine.high %v1430_v15, %v1437_v16 }
 0x4f1   : > { %v1496_v33 = vrot.slane %v1488_v22, %v4066_v47  ;;  %v1503_v35 = vrot.slane %v1489_v23, %v4066_v47  ;;  %v1504_v37 = vcombine.low %v1472_v12, %v1487_v21  ;;  %v1505_v40 = vcombine.high %v1472_v12, %v1487_v21  ;;  %v3710_v12 = vpop.eup %3709 }
 0x4f2   : > { %v1531_v41 = vrot.slane %v1524_v28, %v4061_v38  ;;  %v1539_v42 = vrot.slane %v3229_v29, %v4061_v38  ;;  %v1540_v44 = vcombine.low %v1446_v32, %v1453_v27  ;;  %v3230_v46 = vcombine.high %v1446_v32, %v1453_v27  ;;  %v1909_v58 = vpop.xlane.xlu0 %1908 }
 0x4f3   : > { %v1512_v48 = vrot.slane %v1504_v37, %v4066_v47  ;;  %v1519_v49 = vrot.slane %v1505_v40, %v4066_v47  ;;  %v1574_v50 = vcombine.low %v1496_v33, %v1503_v35  ;;  %v3231_v51 = vcombine.high %v1496_v33, %v1503_v35 }
 0x4f4   : > { %v1547_v53 = vrot.slane %v1540_v44, %v4061_v38  ;;  %v1555_v54 = vrot.slane %v3230_v46, %v4061_v38  ;;  %v1556_v52 = vcombine.low %v1531_v41, %v1539_v42  ;;  %3711 = vrcp.f32 %v1909_v58 }
 0x4f5   : > { %v1581_v55 = vrot.slane %v1574_v50, %v4061_v38  ;;  %v1589_v45 = vrot.slane %v3231_v51, %v4061_v38  ;;  %v1590_v56 = vcombine.low %v1512_v48, %v1519_v49  ;;  %v3232_v57 = vcombine.high %v1512_v48, %v1519_v49 }
 0x4f6   : > { %v1564_v59 = vcombine.low %v1547_v53, %v1555_v54  ;;  %v1563_v5 = vrot.slane %v1556_v52, %v4066_v47  ;;  %3713 = vrcp.f32 %v1906_v20  ;;  %v1918_v22 = vmul.f32 %v3704_v60, %v4168_v19  ;;  %v3597_v54 = vld [vmem:[%s4361_s5 + $0x28] sm:$0xff]  }
 0x4f7   : > { %v1597_v61 = vrot.slane %v1590_v56, %v4061_v38  ;;  %v1605_v62 = vrot.slane %v3232_v57, %v4061_v38  ;;  %v1606_v63 = vcombine.low %v1581_v55, %v1589_v45  ;;  %v1919_v38 = vmul.f32 %v3708_v7, %v4174_v26  ;;  %v3595_v56 = vld [vmem:[%s4361_s5 + $0x38] sm:$0xff]  }
 0x4f8   : > { %v1571_v4 = vrot.slane %v1564_v59, %v4066_v47  ;;  %v1921_v23 = vmul.f32 %v3710_v12, %v4180_v31  ;;  %3715 = vrcp.f32 %v4219_v24  ;;  %v3592_v24 = vld [vmem:[%s4361_s5 + $0x18] sm:$0xff]   ;;  %v3598_v59 = vld [vmem:[%s4361_s5 + $0x20] sm:$0xff]  }
 0x4f9   : > { %v1614_v6 = vcombine.low %v1597_v61, %v1605_v62  ;;  %v1613_v10 = vrot.slane %v1606_v63, %v4066_v47  ;;  %v1926_v27 = vpack.c.bf16 %v1919_v38, %v1918_v22  ;;  %v3596_v61 = vld [vmem:[%s4361_s5 + $0x30] sm:$0xff]  }
 0x4fa   : > { %v1572_v8 = vcombine.low %v1563_v5, %v1571_v4  ;;  %v1573_v21 = vcombine.high %v1563_v5, %v1571_v4 }
 0x4fb   : > { %v1621_v11 = vrot.slane %v1614_v6, %v4066_v47  ;;  %v1920_v47 = vmul.f32 %v3706_v2, %v4172_v25 }
 0x4fc   : > { %v1628_v17 = vshrl.u32 %v1572_v8, 16  ;;  %v1636_v29 = vshrl.u32 %v1573_v21, 16 }
 0x4fd   : > { %v1622_v14 = vcombine.low %v1613_v10, %v1621_v11  ;;  %v1623_v15 = vcombine.high %v1613_v10, %v1621_v11  ;;  %v1927_v26 = vpack.c.bf16 %v1921_v23, %v1920_v47 }
 0x4ff   : > { %v1626_v16 = vpack.i.b16 %v1622_v14, %v1572_v8  ;;  %v1629_v18 = vshrl.u32 %v1622_v14, 16  ;;  %v1637_v32 = vshrl.u32 %v1623_v15, 16  ;;  %v1634_v28 = vpack.i.b16 %v1623_v15, %v1573_v21 }
 0x501   : > { %3451 = vmatpush3.bf16.msra.mxu0 %v1626_v16  ;;  %v1630_v20 = vpack.i.b16 %v1629_v18, %v1628_v17  ;;  %v3712_v33 = vpop.eup %3711  ;;  %v1638_v19 = vpack.i.b16 %v1637_v32, %v1636_v29 }
 0x502   : > { %3462 = vmatprep.subr.bf16.mxu0 %v3840_v13  ;;  %v1925_v25 = vmul.f32 %v3712_v33, %v4192_v39 }
 0x503   : > { %3457 = vmatpush3.bf16.msra.mxu1 %v1630_v20  ;;  %v3714_v31 = vpop.eup %3713 }
 0x504   : > { %3453 = vmatmul.mubr.msk.bf16.vlgmr.msra.gmra.mxu0 %vm1837_vm6, %v1926_v27  ;;  %3468 = vmatprep.subr.bf16.mxu1 %v3840_v13  ;;  %v1924_v35 = vmul.f32 %v3714_v31, %v4184_v34  ;;  %v3591_v34 = vld [vmem:[%s4361_s5 + $0x8] sm:$0xff]  }
 0x505   : > { %3463 = vmatpush3.bf16.msra.mxu0 %v1634_v28  ;;  %3464 = vmatprep.mubr.msk.bf16.mxu0 %vm3842_vm0, %v3840_v13  ;;  %v3716_v41 = vpop.eup %3715 }
 0x506   : > { %3459 = vmatmul.mubr.msk.bf16.vlgmr.msra.gmra.mxu1 %vm1837_vm6, %v1927_v26  ;;  %3474 = vmatprep.subr.bf16.mxu0 %v3840_v13  ;;  %v1929_v37 = vpack.c.bf16 %v1925_v25, %v1924_v35  ;;  %v1923_v39 = vmul.f32 %v3716_v41, %v4188_v36  ;;  %v3593_v36 = vld [vmem:[%s4361_s5] sm:$0xff]   ;;  %v3736_v41 = vld [vmem:[%s3997_s17 + $0x8] sm:$0xff] }
 0x507   : > { %3469 = vmatpush3.bf16.msra.mxu1 %v1638_v19  ;;  %3470 = vmatprep.mubr.msk.bf16.mxu1 %vm3842_vm0, %v3840_v13  ;;  %v3735_v35 = vld [vmem:[%s3997_s17] sm:$0xff] }
 0x508   : > { %3482 = vmatprep.subr.bf16.mxu1 %v3840_v13 }
 0x50e   : > { %3471 = vmatmul.mubr.msk.bf16.vlgmr.msra.gmra.mxu1 %vm1837_vm6, %v1929_v37 }
 0x50f   : > { %3486 = vmatprep.mubr.msk.bf16.mxu1 %vm3842_vm0, %v3840_v13  ;;  %3483 = vmatpush3.bf16.msra.mxu1 %v3592_v24 }
 0x510   : > { %3484 = vmatprep.subr.bf16.mxu1 %v3840_v13 }
 0x518   : > { %v1900_v40 = vpop.xlane.xlu1 %1899 }
 0x519   : > { %3717 = vrcp.f32 %v1900_v40 }
 0x526   : > { %v3718_v42 = vpop.eup %3717 }
 0x527   : > { %v1922_v44 = vmul.f32 %v3718_v42, %v4199_v43  ;;  %v3594_v43 = vld [vmem:[%s4361_s5 + $0x10] sm:$0xff]  }
 0x528   : > { %3485 = vmatpush3.bf16.msra.mxu1 %v3594_v43 }
 0x529   : > { %v1928_v46 = vpack.c.bf16 %v1923_v39, %v1922_v44  ;;  %3498 = vmatprep.subr.bf16.mxu1 %v3840_v13 }
 0x52b   : > { %3465 = vmatmul.mubr.msk.bf16.vlgmr.msra.gmra.mxu0 %vm1837_vm6, %v1928_v46 }
 0x52c   : > { %3478 = vmatprep.mubr.msk.bf16.mxu0 %vm3842_vm0, %v3840_v13  ;;  %3475 = vmatpush3.bf16.msra.mxu0 %v3591_v34 }
 0x52d   : > { %3476 = vmatprep.subr.bf16.mxu0 %v3840_v13 }
 0x530   : > { %3477 = vmatpush3.bf16.msra.mxu0 %v3593_v36 }
 0x531   : > { %3490 = vmatprep.subr.bf16.mxu0 %v3840_v13 }
 0x5c4   : > { %v1967_v48 = vpop.f32.mrf.mxu0 }
 0x5c6   : > { %v3454_v49 = vpop.f32.mrf.mxu0  ;;  %v2011_v50 = vpop.f32.mrf.mxu1 }
 0x5c7   : > { %v3601_v49 = vld [vmem:[#allocation4 + $0xe4] ss:$16 sps:$4 sm:$0xff]  }
 0x5c8   : > { %v1970_v51 = vpop.f32.mrf.mxu0  ;;  %v3460_v53 = vpop.f32.mrf.mxu1 }
 0x5c9   : > { %v2106_v52 = vpack.c.bf16 %v1970_v51, %v1967_v48  ;;  %v3599_v51 = vld [vmem:[#allocation4 + $0xe0] ss:$16 sps:$4 sm:$0xff]   ;;  %v3602_v53 = vld [vmem:[#allocation4 + $0xe8] ss:$16 sps:$4 sm:$0xff]  }
 0x5ca   : > { %v3455_v55 = vpop.f32.mrf.mxu0  ;;  %v2014_v45 = vpop.f32.mrf.mxu1 }
 0x5cb   : > { %v2107_v57 = vpack.c.bf16 %v2014_v45, %v2011_v50  ;;  %3479 = vmatmul.mubr.msk.bf16.vlgmr.msra.gmra.mxu0 %vm1640_vm5, %v2106_v52  ;;  %v3604_v50 = vld [vmem:[#allocation4 + $0xec] ss:$16 sps:$4 sm:$0xff]   ;;  %v3605_v55 = vld [vmem:[#allocation4 + $0xc0] ss:$16 sps:$4 sm:$0xff]   ;;  %v3608_v45 = vld [vmem:[#allocation4 + $0xc8] ss:$16 sps:$4 sm:$0xff]  }
 0x5cc   : > { %v3461_v58 = vpop.f32.mrf.mxu1  ;;  %3491 = vmatpush3.bf16.msra.mxu0 %v3597_v54  ;;  %3494 = vmatprep.mubr.msk.bf16.mxu0 %vm3842_vm0, %v3840_v13  ;;  %v3607_v54 = vld [vmem:[#allocation4 + $0xc4] ss:$16 sps:$4 sm:$0xff]   ;;  %v3610_v52 = vld [vmem:[#allocation4 + $0xcc] ss:$16 sps:$4 sm:$0xff]  }
 0x5cd   : > { %3487 = vmatmul.mubr.msk.bf16.vlgmr.msra.gmra.mxu1 %vm1640_vm5, %v2107_v57  ;;  %3492 = vmatprep.subr.bf16.mxu0 %v3840_v13  ;;  %v3611_v57 = vld [vmem:[#allocation4 + $0xa0] ss:$16 sps:$4 sm:$0xff]   ;;  %v3614_v58 = vld [vmem:[#allocation4 + $0xa8] ss:$16 sps:$4 sm:$0xff]  }
 0x5ce   : > { %v2099_v60 = vpop.f32.mrf.mxu1  ;;  %3499 = vmatpush3.bf16.msra.mxu1 %v3595_v56  ;;  %3502 = vmatprep.mubr.msk.bf16.mxu1 %vm3842_vm0, %v3840_v13  ;;  %v3613_v56 = vld [vmem:[#allocation4 + $0xa4] ss:$16 sps:$4 sm:$0xff]  }
 0x5cf   : > { %3500 = vmatprep.subr.bf16.mxu1 %v3840_v13 }
 0x5d0   : > { %v3472_v62 = vpop.f32.mrf.mxu1  ;;  %3493 = vmatpush3.bf16.msra.mxu0 %v3598_v59  ;;  %v3616_v59 = vld [vmem:[#allocation4 + $0xac] ss:$16 sps:$4 sm:$0xff]  }
 0x5d1   : > { %2684 = vmatprep.subr.bf16.mxu0 %v3601_v49  ;;  %v3617_v62 = vld [vmem:[#allocation4 + $0x80] ss:$16 sps:$4 sm:$0xff]  }
 0x5d2   : > { %v2102_v63 = vpop.f32.mrf.mxu1  ;;  %3501 = vmatpush3.bf16.msra.mxu1 %v3596_v61  ;;  %v3622_v61 = vld [vmem:[#allocation4 + $0x8c] ss:$16 sps:$4 sm:$0xff]  }
 0x5d3   : > { %v2109_v2 = vpack.c.bf16 %v2102_v63, %v2099_v60  ;;  %2727 = vmatprep.subr.bf16.mxu1 %v3604_v50  ;;  %v3619_v60 = vld [vmem:[#allocation4 + $0x84] ss:$16 sps:$4 sm:$0xff]   ;;  %v3620_v63 = vld [vmem:[#allocation4 + $0x88] ss:$16 sps:$4 sm:$0xff]  }
 0x5d4   : > { %v3473_v4 = vpop.f32.mrf.mxu1 }
 0x5d5   : > { %3503 = vmatmul.mubr.msk.bf16.vlgmr.msra.gmra.mxu1 %vm1640_vm5, %v2109_v2  ;;  %v3625_v2 = vld [vmem:[#allocation4 + $0x64] ss:$16 sps:$4 sm:$0xff]   ;;  %v3628_v4 = vld [vmem:[#allocation4 + $0x6c] ss:$16 sps:$4 sm:$0xff]  }
 0x5d6   : > { %2759 = vmatprep.mubr.bf16.mxu1 %v3841_v30  ;;  %2728 = vmatpush1.bf16.msra.mxu1 %v3602_v53  ;;  %v3647_v53 = vld [vmem:[#allocation6 + $0x78] sm:$0xff]  }
 0x5d7   : > { %2729 = vmatprep.subr.bf16.mxu1 %v3610_v52  ;;  %v3649_v52 = vld [vmem:[#allocation6 + $0x38] sm:$0xff]  }
 0x5da   : > { %2730 = vmatpush1.bf16.msra.mxu1 %v3608_v45  ;;  %v3653_v45 = vld [vmem:[#allocation6 + $0x30] sm:$0xff]  }
 0x5db   : > { %2731 = vmatprep.subr.bf16.mxu1 %v3616_v59  ;;  %v3657_v59 = vld [vmem:[#allocation6 + $0x28] sm:$0xff]  }
 0x5de   : > { %2732 = vmatpush1.bf16.msra.mxu1 %v3614_v58  ;;  %v3656_v58 = vld [vmem:[#allocation6 + $0xe8] sm:$0xff]  }
 0x5df   : > { %2733 = vmatprep.subr.bf16.mxu1 %v3622_v61  ;;  %v3659_v61 = vld [vmem:[#allocation6 + $0x60] sm:$0xff]  }
 0x5e2   : > { %2734 = vmatpush1.bf16.msra.mxu1 %v3620_v63  ;;  %v3661_v63 = vld [vmem:[#allocation6 + $0x20] sm:$0xff]  }
 0x5e3   : > { %2735 = vmatprep.subr.bf16.mxu1 %v3628_v4  ;;  %v3663_v4 = vld [vmem:[#allocation6 + $0x58] sm:$0xff]  }
 0x5eb   : > { %v2055_v5 = vpop.f32.mrf.mxu0 }
 0x5ed   : > { %v3466_v6 = vpop.f32.mrf.mxu0 }
 0x5ee   : > { %v3626_v6 = vld [vmem:[#allocation4 + $0x68] ss:$16 sps:$4 sm:$0xff]  }
 0x5ef   : > { %v2058_v7 = vpop.f32.mrf.mxu0  ;;  %2736 = vmatpush1.bf16.msra.mxu1 %v3626_v6  ;;  %v3665_v6 = vld [vmem:[#allocation6 + $0x18] sm:$0xff]  }
 0x5f0   : > { %v2108_v8 = vpack.c.bf16 %v2058_v7, %v2055_v5  ;;  %v3623_v5 = vld [vmem:[#allocation4 + $0x60] ss:$16 sps:$4 sm:$0xff]   ;;  %v3631_v7 = vld [vmem:[#allocation4 + $0x44] ss:$16 sps:$4 sm:$0xff]  }
 0x5f1   : > { %v3467_v10 = vpop.f32.mrf.mxu0 }
 0x5f2   : > { %3495 = vmatmul.mubr.msk.bf16.vlgmr.msra.gmra.mxu0 %vm1640_vm5, %v2108_v8  ;;  %v3634_v8 = vld [vmem:[#allocation4 + $0x4c] ss:$16 sps:$4 sm:$0xff]   ;;  %v3629_v10 = vld [vmem:[#allocation4 + $0x40] ss:$16 sps:$4 sm:$0xff]  }
 0x5f3   : > { %2716 = vmatprep.mubr.bf16.mxu0 %v3841_v30  ;;  %v3253_v30 = vld [vmem:[%s4362_s6] ss:$0 sm:$0xff]  ;;  %2685 = vmatpush1.bf16.msra.mxu0 %v3599_v51 }
 0x5f4   : > { %2686 = vmatprep.subr.bf16.mxu0 %v3607_v54  ;;  %2737 = vmatprep.subr.bf16.mxu1 %v3634_v8  ;;  %v3648_v54 = vld [vmem:[#allocation6 + $0xf8] sm:$0xff]   ;;  %v3667_v8 = vld [vmem:[#allocation6 + $0x50] sm:$0xff]  }
 0x5f7   : > { %2687 = vmatpush1.bf16.msra.mxu0 %v3605_v55  ;;  %v3650_v55 = vld [vmem:[#allocation6 + $0xb8] sm:$0xff]  }
 0x5f8   : > { %2688 = vmatprep.subr.bf16.mxu0 %v3613_v56  ;;  %v3654_v56 = vld [vmem:[#allocation6 + $0xb0] sm:$0xff]  }
 0x5fb   : > { %2689 = vmatpush1.bf16.msra.mxu0 %v3611_v57  ;;  %v3655_v57 = vld [vmem:[#allocation6 + $0x68] sm:$0xff]  }
 0x5fc   : > { %2690 = vmatprep.subr.bf16.mxu0 %v3619_v60  ;;  %v3658_v60 = vld [vmem:[#allocation6 + $0xa8] sm:$0xff]  }
 0x5ff   : > { %2691 = vmatpush1.bf16.msra.mxu0 %v3617_v62  ;;  %v3660_v62 = vld [vmem:[#allocation6 + $0xe0] sm:$0xff]  }
 0x600   : > { %2692 = vmatprep.subr.bf16.mxu0 %v3625_v2  ;;  %v3662_v2 = vld [vmem:[#allocation6 + $0xa0] sm:$0xff]  }
 0x603   : > { %2693 = vmatpush1.bf16.msra.mxu0 %v3623_v5  ;;  %v3664_v5 = vld [vmem:[#allocation6 + $0xd8] sm:$0xff]  }
 0x604   : > { %2694 = vmatprep.subr.bf16.mxu0 %v3631_v7  ;;  %v3666_v7 = vld [vmem:[#allocation6 + $0x98] sm:$0xff]  }
 0x607   : > { %2695 = vmatpush1.bf16.msra.mxu0 %v3629_v10  ;;  %v3668_v10 = vld [vmem:[#allocation6 + $0xd0] sm:$0xff]  }
 0x68b   : > { %v2159_v13 = vpop.f32.mrf.mxu0 }
 0x68d   : > { %v3480_v11 = vpop.f32.mrf.mxu0  ;;  %v2215_v12 = vpop.f32.mrf.mxu1 }
 0x68e   : > { %v2334_v20 = vadd.f32 %v2215_v12, %v2159_v13  ;;  %v3632_v13 = vld [vmem:[#allocation4 + $0x48] ss:$16 sps:$4 sm:$0xff]   ;;  %v3637_v11 = vld [vmem:[#allocation4 + $0x24] ss:$16 sps:$4 sm:$0xff]   ;;  %v3640_v12 = vld [vmem:[#allocation4 + $0x2c] ss:$16 sps:$4 sm:$0xff]  }
 0x68f   : > { %v2162_v14 = vpop.f32.mrf.mxu0  ;;  %v3488_v15 = vpop.f32.mrf.mxu1  ;;  %2738 = vmatpush1.bf16.msra.mxu1 %v3632_v13  ;;  %2696 = vmatprep.subr.bf16.mxu0 %v3637_v11  ;;  %v3669_v13 = vld [vmem:[#allocation6 + $0x10] sm:$0xff]  }
 0x690   : > { %v3638_v15 = vld [vmem:[#allocation4 + $0x28] ss:$16 sps:$4 sm:$0xff]   ;;  %2739 = vmatprep.subr.bf16.mxu1 %v3640_v12  ;;  %v3670_v11 = vld [vmem:[#allocation6 + $0x90] sm:$0xff]  }
 0x691   : > { %v3481_v38 = vpop.f32.mrf.mxu0  ;;  %v2218_v16 = vpop.f32.mrf.mxu1  ;;  %v3671_v12 = vld [vmem:[#allocation6 + $0x48] sm:$0xff]  }
 0x692   : > { %v2337_v28 = vadd.f32 %v2218_v16, %v2162_v14  ;;  %v3635_v14 = vld [vmem:[#allocation4 + $0x20] ss:$16 sps:$4 sm:$0xff]   ;;  %v3643_v38 = vld [vmem:[#allocation4 + $0x4] ss:$16 sps:$4 sm:$0xff]   ;;  %v3646_v16 = vld [vmem:[#allocation4 + $0xc] ss:$16 sps:$4 sm:$0xff]  }
 0x693   : > { %v3489_v17 = vpop.f32.mrf.mxu1  ;;  %2697 = vmatpush1.bf16.msra.mxu0 %v3635_v14  ;;  %2740 = vmatpush1.bf16.msra.mxu1 %v3638_v15  ;;  %v3672_v14 = vld [vmem:[#allocation6 + $0xc8] sm:$0xff]  }
 0x694   : > { %v3641_v17 = vld [vmem:[#allocation4] ss:$16 sps:$4 sm:$0xff]   ;;  %2698 = vmatprep.subr.bf16.mxu0 %v3643_v38  ;;  %2741 = vmatprep.subr.bf16.mxu1 %v3646_v16  ;;  %v3673_v15 = vld [vmem:[#allocation6 + $0x8] sm:$0xff]  }
 0x695   : > { %v2327_v18 = vpop.f32.mrf.mxu1  ;;  %v3674_v38 = vld [vmem:[#allocation6 + $0x88] sm:$0xff]   ;;  %v3675_v16 = vld [vmem:[#allocation6 + $0x40] sm:$0xff]  }
 0x697   : > { %v3504_v21 = vpop.f32.mrf.mxu1  ;;  %2699 = vmatpush1.bf16.msra.mxu0 %v3641_v17  ;;  %v3676_v17 = vld [vmem:[#allocation6 + $0xc0] sm:$0xff]  }
 0x698   : > { %3362 = vmatprep.subr.bf16.mxu0 %v3647_v53 }
 0x699   : > { %v2330_v22 = vpop.f32.mrf.mxu1 }
 0x69b   : > { %v3505_v23 = vpop.f32.mrf.mxu1 }
 0x6b2   : > { %v2271_v32 = vpop.f32.mrf.mxu0 }
 0x6b3   : > { %v2335_v27 = vadd.f32 %v2334_v20, %v2271_v32 }
 0x6b4   : > { %v3496_v47 = vpop.f32.mrf.mxu0 }
 0x6b5   : > { %v2336_v29 = vadd.f32 %v2335_v27, %v2327_v18  ;;  %v3644_v18 = vld [vmem:[#allocation4 + $0x8] ss:$16 sps:$4 sm:$0xff]  }
 0x6b6   : > { %v2274_v26 = vpop.f32.mrf.mxu0  ;;  %2742 = vmatpush1.bf16.msra.mxu1 %v3644_v18  ;;  %v3677_v18 = vld [vmem:[#allocation6] sm:$0xff]  }
 0x6b7   : > { %v2346_v33 = vadd.f32 %v3253_v30, %v2336_v29  ;;  %v2338_v19 = vadd.f32 %v2337_v28, %v2274_v26  ;;  %3384 = vmatprep.subr.bf16.mxu1 %v3648_v54 }
 0x6b8   : > { %v3497_v31 = vpop.f32.mrf.mxu0 }
 0x6b9   : > { %v2339_v25 = vadd.f32 %v2338_v19, %v2330_v22  ;;  %v4308_v37 = vadd.f32 %v3735_v35, %v2346_v33 }
 0x6bb   : > { %v2347_v40 = vadd.f32 %v3253_v30, %v2339_v25  ;;  %2450 = vadd.xlane.f32.xlu1 %v4308_v37 }
 0x6bd   : > { %v4312_v42 = vadd.f32 %v3736_v41, %v2347_v40  ;;  %v3254_v40 = vld [vmem:[%s4363_s7] ss:$0 sm:$0xff] }
 0x6bf   : > { %2452 = vadd.xlane.f32.xlu0 %v4312_v42 }
 0x744   : > { %v2451_v44 = vpop.xlane.xlu1 %2450 }
 0x745   : > { %v2454_v39 = vmul.f32 0.0078125, %v2451_v44 }
 0x747   : > { %v4316_v46 = vsub.f32 %v4308_v37, %v2454_v39 }
 0x748   : > { %v2453_v34 = vpop.xlane.xlu0 %2452 }
 0x749   : > { %v2455_v24 = vmul.f32 0.0078125, %v2453_v34  ;;  %v2458_v36 = vmul.f32 %v4316_v46, %v4316_v46  ;;  %v2472_v44 = vmul.f32 %v3254_v40, %v4316_v46  ;;  %v3651_v46 = vld [vmem:[#allocation6 + $0x70] sm:$0xff]  }
 0x74b   : > { %v4321_v43 = vsub.f32 %v4312_v42, %v2455_v24  ;;  %2460 = vadd.xlane.f32.xlu1 %v2458_v36  ;;  %v3255_v36 = vld [vmem:[%s4364_s8] ss:$0 sm:$0xff] }
 0x74d   : > { %v2459_v48 = vmul.f32 %v4321_v43, %v4321_v43  ;;  %v2473_v39 = vmul.f32 %v3254_v40, %v4321_v43  ;;  %v3652_v43 = vld [vmem:[#allocation6 + $0xf0] sm:$0xff]  }
 0x74f   : > { %2462 = vadd.xlane.f32.xlu0 %v2459_v48 }
 0x7d4   : > { %v2461_v21 = vpop.xlane.xlu1 %2460 }
 0x7d5   : > { %v2464_v22 = vmul.f32 0.007874016, %v2461_v21  ;;  %v3678_v21 = vld [vmem:[#allocation6 + $0x80] sm:$0xff]  }
 0x7d7   : > { %3719 = vrsqrt.f32 %v2464_v22  ;;  %vm2476_vm7 = vcmp.eq.f32.partialorder %v2464_v22, inf  ;;  %v2479_v30 = vand.u32 2147483648, %v2464_v22  ;;  %vm2478_vm8 = vcmp.eq.f32.partialorder %v2464_v22, 0.0 }
 0x7d8   : > { %v2463_v23 = vpop.xlane.xlu0 %2462 }
 0x7d9   : > { %v2465_v20 = vmul.f32 0.007874016, %v2463_v23  ;;  %v2518_v23 = vsub.s32 3, %v4034_v0 }
 0x7db   : > { %3721 = vrsqrt.f32 %v2465_v20  ;;  %vm2483_vm9 = vcmp.eq.f32.partialorder %v2465_v20, inf  ;;  %v2486_v19 = vand.u32 2147483648, %v2465_v20  ;;  %vm2485_vm10 = vcmp.eq.f32.partialorder %v2465_v20, 0.0 }
 0x7e4   : > { %v3720_v32 = vpop.eup %3719 }
 0x7e5   : > { %v2475_v27 = vmul.f32 %v3720_v32, %v2464_v22 }
 0x7e7   : > { %v2477_v47 = vsel %vm2476_vm7, %v2464_v22, %v2475_v27  ;;  %v2384_v22 = vld [vmem:[%s4366_s10] sm:$0xf] }
 0x7e8   : > { %v3722_v28 = vpop.eup %3721  ;;  %v2480_v29 = vsel %vm2478_vm8, %v2479_v30, %v2477_v47  ;;  %v2507_v27 = vrot.slane %v2384_v22, %v584_v9  ;;  %v2515_v30 = vrot.slane %v2384_v22, %v592_v1  ;;  %v2511_v47 = vrot.slane %v2384_v22, %v588_v3 }
 0x7e9   : > { %v2488_v26 = vadd.f32 1e-06, %v2480_v29  ;;  %v2482_v33 = vmul.f32 %v3722_v28, %v2465_v20  ;;  %v2519_v29 = vrot.slane %v2384_v22, %v2518_v23 }
 0x7eb   : > { %3723 = vrcp.f32 %v2488_v26  ;;  %v2484_v31 = vsel %vm2483_vm9, %v2465_v20, %v2482_v33 }
 0x7ec   : > { %v2487_v25 = vsel %vm2485_vm10, %v2486_v19, %v2484_v31 }
 0x7ed   : > { %v2489_v35 = vadd.f32 1e-06, %v2487_v25 }
 0x7ef   : > { %3725 = vrcp.f32 %v2489_v35 }
 0x7f8   : > { %v3724_v41 = vpop.eup %3723 }
 0x7f9   : > { %v2491_v34 = vmul.f32 %v3724_v41, %v2472_v44 }
 0x7fb   : > { %v2500_v49 = vadd.f32 %v3255_v36, %v2491_v34 }
 0x7fc   : > { %v3726_v24 = vpop.eup %3725 }
 0x7fd   : > { %v2493_v48 = vmul.f32 %v3726_v24, %v2473_v39 }
 0x7ff   : > { %v2501_v50 = vadd.f32 %v3255_v36, %v2493_v48 }
 0x801   : > { %v2502_v51 = vpack.c.bf16 %v2501_v50, %v2500_v49 }
 0x803   : > { %2717 = vmatmul.mubr.bf16.vlgmr.msra.gmra.mxu0 %v2502_v51  ;;  %2760 = vmatmul.mubr.bf16.vlgmr.msra.gmra.mxu1 %v2502_v51 }
 0x804   : > { %3363 = vmatpush3.bf16.msra.mxu0 %v3649_v52  ;;  %3385 = vmatpush3.bf16.msra.mxu1 %v3650_v55 }
 0x805   : > { %3364 = vmatprep.subr.bf16.mxu0 %v3651_v46  ;;  %3386 = vmatprep.subr.bf16.mxu1 %v3652_v43 }
 0x808   : > { %3365 = vmatpush3.bf16.msra.mxu0 %v3653_v45  ;;  %3387 = vmatpush3.bf16.msra.mxu1 %v3654_v56 }
 0x809   : > { %3366 = vmatprep.subr.bf16.mxu0 %v3655_v57  ;;  %3388 = vmatprep.subr.bf16.mxu1 %v3656_v58 }
 0x80c   : > { %3367 = vmatpush3.bf16.msra.mxu0 %v3657_v59  ;;  %3389 = vmatpush3.bf16.msra.mxu1 %v3658_v60 }
 0x80d   : > { %3368 = vmatprep.subr.bf16.mxu0 %v3659_v61  ;;  %3390 = vmatprep.subr.bf16.mxu1 %v3660_v62 }
 0x810   : > { %3369 = vmatpush3.bf16.msra.mxu0 %v3661_v63  ;;  %3391 = vmatpush3.bf16.msra.mxu1 %v3662_v2 }
 0x811   : > { %3370 = vmatprep.subr.bf16.mxu0 %v3663_v4  ;;  %3392 = vmatprep.subr.bf16.mxu1 %v3664_v5 }
 0x814   : > { %3371 = vmatpush3.bf16.msra.mxu0 %v3665_v6  ;;  %3393 = vmatpush3.bf16.msra.mxu1 %v3666_v7 }
 0x815   : > { %3372 = vmatprep.subr.bf16.mxu0 %v3667_v8  ;;  %3394 = vmatprep.subr.bf16.mxu1 %v3668_v10 }
 0x818   : > { %3373 = vmatpush3.bf16.msra.mxu0 %v3669_v13  ;;  %3395 = vmatpush3.bf16.msra.mxu1 %v3670_v11 }
 0x819   : > { %3374 = vmatprep.subr.bf16.mxu0 %v3671_v12  ;;  %3396 = vmatprep.subr.bf16.mxu1 %v3672_v14 }
 0x81c   : > { %3375 = vmatpush3.bf16.msra.mxu0 %v3673_v15  ;;  %3397 = vmatpush3.bf16.msra.mxu1 %v3674_v38 }
 0x81d   : > { %3376 = vmatprep.subr.bf16.mxu0 %v3675_v16  ;;  %3398 = vmatprep.subr.bf16.mxu1 %v3676_v17 }
 0x820   : > { %3377 = vmatpush3.bf16.msra.mxu0 %v3677_v18  ;;  %3399 = vmatpush3.bf16.msra.mxu1 %v3678_v21 }
 0x8c3   : > { %v2718_v20 = vpop.f32.mrf.mxu0  ;;  %v2761_v32 = vpop.f32.mrf.mxu1 }
 0x8c4   : > { %v2719_v31 = vadd.f32 %v2718_v20, %v2507_v27  ;;  %v2762_v25 = vadd.f32 %v2761_v32, %v2515_v30  ;;  %v3288_v20 = vld [vmem:[%s4368_s12] ss:$0 sm:$0xff] }
 0x8c5   : > { %v2720_v28 = vpop.f32.mrf.mxu0  ;;  %v2763_v26 = vpop.f32.mrf.mxu1 }
 0x8c6   : > { %v2721_v41 = vadd.f32 %v2720_v28, %v2511_v47  ;;  %v2764_v44 = vadd.f32 %v2763_v26, %v2519_v29 }
 0x8c7   : > { %v2722_v33 = vpop.f32.mrf.mxu0  ;;  %v2765_v19 = vpop.f32.mrf.mxu1 }
 0x8c8   : > { %v2723_v35 = vadd.f32 %v2722_v33, %v2507_v27  ;;  %v2766_v40 = vadd.f32 %v2765_v19, %v2515_v30 }
 0x8c9   : > { %v2724_v39 = vpop.f32.mrf.mxu0  ;;  %v2767_v34 = vpop.f32.mrf.mxu1 }
 0x8ca   : > { %v2770_v9 = vpack.c.bf16 %v2723_v35, %v2719_v31  ;;  %v2772_v24 = vpack.c.bf16 %v2766_v40, %v2762_v25  ;;  %v2725_v36 = vadd.f32 %v2724_v39, %v2511_v47  ;;  %v2768_v1 = vadd.f32 %v2767_v34, %v2519_v29 }
 0x8cc   : > { %v2778_v48 = vmul.bf16 %v2770_v9, %v2770_v9  ;;  %v2780_v0 = vmul.bf16 %v2772_v24, %v2772_v24  ;;  %v2771_v3 = vpack.c.bf16 %v2725_v36, %v2721_v41  ;;  %v2773_v49 = vpack.c.bf16 %v2768_v1, %v2764_v44 }
 0x8cd   : > { %v2774_v15 = vmul.bf16 1056980736, %v2770_v9  ;;  %v2776_v16 = vmul.bf16 1056980736, %v2772_v24 }
 0x8ce   : > { %v2782_v50 = vmul.bf16 %v2778_v48, %v2770_v9  ;;  %v2784_v51 = vmul.bf16 %v2780_v0, %v2772_v24  ;;  %v2779_v53 = vmul.bf16 %v2771_v3, %v2771_v3  ;;  %v2781_v54 = vmul.bf16 %v2773_v49, %v2773_v49 }
 0x8cf   : > { %v2775_v10 = vmul.bf16 1056980736, %v2771_v3  ;;  %v2777_v12 = vmul.bf16 1056980736, %v2773_v49 }
 0x8d0   : > { %v2786_v52 = vmul.bf16 1027030327, %v2782_v50  ;;  %v2788_v55 = vmul.bf16 1027030327, %v2784_v51  ;;  %v2783_v46 = vmul.bf16 %v2779_v53, %v2771_v3  ;;  %v2785_v43 = vmul.bf16 %v2781_v54, %v2773_v49 }
 0x8d2   : > { %v2790_v45 = vadd.bf16 %v2786_v52, %v2770_v9  ;;  %v2792_v56 = vadd.bf16 %v2788_v55, %v2772_v24  ;;  %v2787_v57 = vmul.bf16 1027030327, %v2783_v46  ;;  %v2789_v58 = vmul.bf16 1027030327, %v2785_v43 }
 0x8d4   : > { %v2794_v59 = vmul.bf16 1061961548, %v2790_v45  ;;  %v2796_v60 = vmul.bf16 1061961548, %v2792_v56  ;;  %v2791_v61 = vadd.bf16 %v2787_v57, %v2771_v3  ;;  %v2793_v62 = vadd.bf16 %v2789_v58, %v2773_v49 }
 0x8d6   : > { %3727 = vtanh.bf16 %v2794_v59  ;;  %v2795_v63 = vmul.bf16 1061961548, %v2791_v61  ;;  %v2797_v2 = vmul.bf16 1061961548, %v2793_v62 }
 0x8d7   : > { %3729 = vtanh.bf16 %v2796_v60 }
 0x8d8   : > { %3731 = vtanh.bf16 %v2795_v63 }
 0x8d9   : > { %3733 = vtanh.bf16 %v2797_v2 }
 0x8e4   : > { %v3728_v4 = vpop.eup %3727 }
 0x8e5   : > { %v3730_v5 = vpop.eup %3729  ;;  %v2802_v7 = vadd.bf16 1065369472, %v3728_v4 }
 0x8e6   : > { %v3732_v6 = vpop.eup %3731  ;;  %v2804_v11 = vadd.bf16 1065369472, %v3730_v5 }
 0x8e7   : > { %v3734_v8 = vpop.eup %3733  ;;  %v2803_v13 = vadd.bf16 1065369472, %v3732_v6  ;;  %v2806_v18 = vmul.bf16 %v2802_v7, %v2774_v15 }
 0x8e8   : > { %v2805_v14 = vadd.bf16 1065369472, %v3734_v8  ;;  %v2808_v21 = vmul.bf16 %v2804_v11, %v2776_v16 }
 0x8e9   : > { %v2807_v38 = vmul.bf16 %v2803_v13, %v2775_v10 }
 0x8ea   : > { %v2809_v17 = vmul.bf16 %v2805_v14, %v2777_v12 }
 0x8eb   : > { %3040 = vmatprep.mubr.bf16.mxu0 %v2807_v38 }
 0x8ec   : > { %3081 = vmatprep.mubr.bf16.mxu1 %v2809_v17  ;;  %3041 = vmatmul.mubr.bf16.vlgmr.msra.gmra.mxu0 %v2806_v18 }
 0x8ed   : > { %3082 = vmatmul.mubr.bf16.vlgmr.msra.gmra.mxu1 %v2808_v21 }
 0x9ac   : > { %v3378_v22 = vpop.f32.mrf.mxu0 }
 0x9ad   : > { %v3400_v23 = vpop.f32.mrf.mxu1 }
 0x9ae   : > { %v3379_v32 = vpop.f32.mrf.mxu0 }
 0x9af   : > { %v3380_v27 = vadd.f32 %v3379_v32, %v3378_v22  ;;  %v3401_v30 = vpop.f32.mrf.mxu1 }
 0x9b0   : > { %v3381_v47 = vpop.f32.mrf.mxu0  ;;  %v3402_v29 = vadd.f32 %v3401_v30, %v3400_v23 }
 0x9b1   : > { %v3043_v28 = vadd.f32 %v3380_v27, %v3288_v20  ;;  %v3403_v26 = vpop.f32.mrf.mxu1 }
 0x9b2   : > { %v3382_v33 = vpop.f32.mrf.mxu0 }
 0x9b3   : > { %v3084_v19 = vadd.f32 %v3402_v29, %v3043_v28  ;;  %v3383_v31 = vadd.f32 %v3382_v33, %v3381_v47  ;;  %v3404_v25 = vpop.f32.mrf.mxu1 }
 0x9b4   : > { %v3405_v41 = vadd.f32 %v3404_v25, %v3403_v26 }
 0x9b5   : > { %v3090_v35 = vadd.f32 %v3084_v19, %v4308_v37  ;;  %v3046_v40 = vadd.f32 %v3383_v31, %v3288_v20 }
 0x9b7   : > { %3092 = vst [vmem:[%s484_s21] sm:$0xff] %v3090_v35  ;;  %v3087_v44 = vadd.f32 %v3405_v41, %v3046_v40 }
 0x9b9   : > { %v3091_v39 = vadd.f32 %v3087_v44, %v4312_v42 }
 0x9bb   : > { %3093 = vst [vmem:[%s484_s21 + $0x8] sm:$0xff] %v3091_v39 }
 0x9bc PF: > { %s25_s25 = sadd.s32 1, %s3829_s25  }
 0x9bd   : > { %p22_p2 = scmp.ge.s32.totalorder %s25_s25, 4  }
 0x9bf   :  { %24 = sbr.rel (!%p22_p2) target bundleno = 2 (0x2), region = 115 }
 0x9c4   :  { %3115 = vsyncpa [#allocation3], 1 }
 0x9c5   :  { %3117 = vsyncpa [#allocation3 + $0x1], 1 }
 0x9c6   :  { %3118 = vsyncpa [#allocation5], 1 }

</bundles_post_ra>
